<compile_context>
chip_gen: v5e
topology: v5e:2x2
jax: 0.10.0
libtpu: 0.0.40
codegen_flags: <defaults>
</compile_context>

<pallas_src>
import jax
import jax.numpy as jnp
from jax.experimental import pallas as pl
from jax.experimental.pallas import tpu as pltpu

INPUT_DIM = 33
NUM_HIDDEN_LAYERS_RED = 5
RED_FIRST_UNITS = 512
RED_HIDDEN_UNITS = 512
RED_OUTPUT_DIM = 33
OUT_PAD = 128                      # lane-dense padded output width

NUM_MID = NUM_HIDDEN_LAYERS_RED    # five identical 512x512 hidden linears

# Layer dims of the Sequential:
#   Linear(33,512)+ReLU, Linear(512,512)+ReLU, 4x(Linear(512,512)+ReLU),
#   Linear(512,33)+Sigmoid
LAYER_DIMS = (
    [(INPUT_DIM, RED_FIRST_UNITS)]
    + [(RED_HIDDEN_UNITS, RED_HIDDEN_UNITS)] * NUM_MID
    + [(RED_HIDDEN_UNITS, RED_OUTPUT_DIM)]
)
NUM_LINEARS = len(LAYER_DIMS)      # 7

MAX_TM = 512                       # max batch rows per grid step


def red_mlp_kernel(x_ref, w1_ref, b1_ref, wm_ref, bm_ref, w7_ref, b7_ref, out_ref):
    """Whole forward pass for one batch tile. Weights bf16, accumulation f32."""
    h = x_ref[...].astype(jnp.bfloat16)

    # Layer 1: (TM, 33) @ (33, 512) + b, ReLU
    z = jnp.dot(h, w1_ref[...], preferred_element_type=jnp.float32) + b1_ref[...]
    h = jnp.maximum(z, 0.0).astype(jnp.bfloat16)

    # Layers 2..6: five stacked (512, 512) linears + ReLU, statically unrolled.
    for i in range(NUM_MID):
        z = jnp.dot(h, wm_ref[i], preferred_element_type=jnp.float32) + bm_ref[i]
        h = jnp.maximum(z, 0.0).astype(jnp.bfloat16)

    # Layer 7: lane-dense padded (512, 128) weights; sigmoid output (EUP).
    z = jnp.dot(h, w7_ref[...], preferred_element_type=jnp.float32) + b7_ref[...]
    out_ref[...] = jax.nn.sigmoid(z).astype(out_ref.dtype)


def init_params(key):
    """PyTorch nn.Linear default init: U(-1/sqrt(fan_in), 1/sqrt(fan_in)). f32."""
    params = []
    for (fan_in, fan_out) in LAYER_DIMS:
        key, kw, kb = jax.random.split(key, 3)
        bound = 1.0 / jnp.sqrt(jnp.float32(fan_in))
        w = jax.random.uniform(kw, (fan_in, fan_out), jnp.float32, -bound, bound)
        b = jax.random.uniform(kb, (1, fan_out), jnp.float32, -bound, bound)
        params.append((w, b))
    return params


def pack_params(params):
    """bf16 weights, stacked middle layers, lane-dense padded last layer."""
    w1, b1 = params[0]
    mid = params[1:1 + NUM_MID]
    w7, b7 = params[-1]

    w1_bf = w1.astype(jnp.bfloat16)                                   # (33, 512)
    wm_bf = jnp.stack([w.astype(jnp.bfloat16) for (w, _) in mid], 0)  # (5, 512, 512)
    bm_f32 = jnp.stack([b for (_, b) in mid], 0)                      # (5, 1, 512) f32

    w7_pad = jnp.zeros((RED_HIDDEN_UNITS, OUT_PAD), jnp.bfloat16)
    w7_pad = w7_pad.at[:, :RED_OUTPUT_DIM].set(w7.astype(jnp.bfloat16))
    b7_pad = jnp.zeros((1, OUT_PAD), jnp.float32)
    b7_pad = b7_pad.at[:, :RED_OUTPUT_DIM].set(b7)
    return (w1_bf, b1, wm_bf, bm_f32, w7_pad, b7_pad)


def red_model_forward(x, packed):
    w1, b1, wm, bm, w7p, b7p = packed
    B = x.shape[0]

    # Batch tiling: multiple of 8 sublanes; up to MAX_TM rows per tile so the
    # MXU is well fed at large batch while all weights remain VMEM-resident.
    B_pad = max(8, ((B + 7) // 8) * 8)
    if B_pad <= MAX_TM:
        TM = B_pad
    else:
        TM = MAX_TM
        B_pad = ((B + TM - 1) // TM) * TM
    if B_pad != B:
        x = jnp.pad(x, ((0, B_pad - B), (0, 0)))

    grid = (B_pad // TM,)

    out = pl.pallas_call(
        red_mlp_kernel,
        out_shape=jax.ShapeDtypeStruct((B_pad, OUT_PAD), jnp.float32),
        grid=grid,
        in_specs=[
            pl.BlockSpec((TM, INPUT_DIM), lambda i: (i, 0)),                     # x tile
            pl.BlockSpec((INPUT_DIM, RED_FIRST_UNITS), lambda i: (0, 0)),        # w1
            pl.BlockSpec((1, RED_FIRST_UNITS), lambda i: (0, 0)),                # b1
            pl.BlockSpec((NUM_MID, RED_HIDDEN_UNITS, RED_HIDDEN_UNITS),
                         lambda i: (0, 0, 0)),                                   # w2..w6
            pl.BlockSpec((NUM_MID, 1, RED_HIDDEN_UNITS), lambda i: (0, 0, 0)),   # b2..b6
            pl.BlockSpec((RED_HIDDEN_UNITS, OUT_PAD), lambda i: (0, 0)),         # w7 (padded)
            pl.BlockSpec((1, OUT_PAD), lambda i: (0, 0)),                        # b7 (padded)
        ],
        out_specs=pl.BlockSpec((TM, OUT_PAD), lambda i: (i, 0)),
        compiler_params=pltpu.CompilerParams(
            dimension_semantics=("parallel",),
            vmem_limit_bytes=32 << 20,
        ),
    )(x, w1, b1, wm, bm, w7p, b7p)

    return out[:B, :RED_OUTPUT_DIM]


def red_model_reference_f32(x, params):
    """Pure-f32 pure-JAX reference (original module numerics)."""
    h = x
    for i, (w, b) in enumerate(params):
        z = h @ w + b
        h = jnp.maximum(z, 0.0) if i < NUM_LINEARS - 1 else jax.nn.sigmoid(z)
    return h


def red_model_reference_bf16(x, params):
    """Pure-JAX reference matching the kernel numerics (bf16 ops, f32 accum)."""
    h = x.astype(jnp.bfloat16)
    for i, (w, b) in enumerate(params):
        z = jnp.dot(h, w.astype(jnp.bfloat16),
                    preferred_element_type=jnp.float32) + b
        if i < NUM_LINEARS - 1:
            h = jnp.maximum(z, 0.0).astype(jnp.bfloat16)
        else:
            h = jax.nn.sigmoid(z)
    return h


if __name__ == "__main__":
    key = jax.random.PRNGKey(0)
    key, kx = jax.random.split(key)

    batch = 8
    x = jax.random.normal(kx, (batch, INPUT_DIM), jnp.float32)

    params = init_params(key)          # f32 master params (PyTorch-style init)
    packed = pack_params(params)       # bf16 / stacked / padded kernel params

    out = red_model_forward(x, packed)
    out = jax.block_until_ready(out)
    assert out.shape == (batch, RED_OUTPUT_DIM)

    # Exact-semantics check vs. a reference with identical bf16 casts.
    ref_bf16 = red_model_reference_bf16(x, params)
    assert jnp.allclose(out, ref_bf16, atol=5e-3, rtol=5e-3), \
        "mismatch vs bf16-matched reference"

    # Sanity check vs. the full-f32 original module (looser: bf16 weight quant).
    ref_f32 = red_model_reference_f32(x, params)
    assert jnp.allclose(out, ref_f32, atol=5e-2), "mismatch vs f32 reference"

    print("KERNEL_OK")
</pallas_src>

<mosaic_0001>
module attributes {stable_mosaic.version = 11 : i64} {
  func.func @red_mlp_kernel(%arg0: i32, %arg1: memref<8x33xf32, #tpu.memory_space<vmem>>, %arg2: memref<33x512xbf16, #tpu.memory_space<vmem>>, %arg3: memref<1x512xf32, #tpu.memory_space<vmem>>, %arg4: memref<5x512x512xbf16, #tpu.memory_space<vmem>>, %arg5: memref<5x1x512xf32, #tpu.memory_space<vmem>>, %arg6: memref<512x128xbf16, #tpu.memory_space<vmem>>, %arg7: memref<1x128xf32, #tpu.memory_space<vmem>>, %arg8: memref<8x128xf32, #tpu.memory_space<vmem>>) attributes {dimension_semantics = [#tpu.dimension_semantics<parallel>], iteration_bounds = array<i64: 1>, scalar_prefetch = 0 : i64, scratch_operands = 0 : i64, tpu.core_type = #tpu.core_type<tc>, window_params = [{transform_indices = @transform_0, window_bounds = array<i64: 8, 33>}, {pipeline_mode = #tpu.pipeline_mode<synchronous>, transform_indices = @transform_1, window_bounds = array<i64: 33, 512>}, {pipeline_mode = #tpu.pipeline_mode<synchronous>, transform_indices = @transform_2, window_bounds = array<i64: 1, 512>}, {pipeline_mode = #tpu.pipeline_mode<synchronous>, transform_indices = @transform_3, window_bounds = array<i64: 5, 512, 512>}, {pipeline_mode = #tpu.pipeline_mode<synchronous>, transform_indices = @transform_4, window_bounds = array<i64: 5, 1, 512>}, {pipeline_mode = #tpu.pipeline_mode<synchronous>, transform_indices = @transform_5, window_bounds = array<i64: 512, 128>}, {pipeline_mode = #tpu.pipeline_mode<synchronous>, transform_indices = @transform_6, window_bounds = array<i64: 1, 128>}, {transform_indices = @transform_7, window_bounds = array<i64: 8, 128>}]} {
    %c0 = arith.constant 0 : index
    %c0_0 = arith.constant 0 : index
    %0 = vector.load %arg1[%c0, %c0_0] : memref<8x33xf32, #tpu.memory_space<vmem>>, vector<8x33xf32>
    %1 = arith.truncf %0 : vector<8x33xf32> to vector<8x33xbf16>
    %c0_1 = arith.constant 0 : index
    %c0_2 = arith.constant 0 : index
    %2 = vector.load %arg2[%c0_1, %c0_2] : memref<33x512xbf16, #tpu.memory_space<vmem>>, vector<33x512xbf16>
    %cst = arith.constant dense<0.000000e+00> : vector<8x512xf32>
    %3 = tpu.matmul %1, %2, %cst {dimension_numbers = #tpu.dot_dimension_numbers<[1], [0], [0], [1], [0, 0, 1, 1], [], []>} : vector<8x33xbf16>, vector<33x512xbf16>, vector<8x512xf32> -> vector<8x512xf32>
    %c0_3 = arith.constant 0 : index
    %c0_4 = arith.constant 0 : index
    %4 = vector.load %arg3[%c0_3, %c0_4] : memref<1x512xf32, #tpu.memory_space<vmem>>, vector<1x512xf32>
    %5 = vector.broadcast %4 : vector<1x512xf32> to vector<8x512xf32>
    %6 = arith.addf %3, %5 : vector<8x512xf32>
    %cst_5 = arith.constant 0.000000e+00 : f32
    %7 = vector.broadcast %cst_5 : f32 to vector<8x512xf32>
    %8 = arith.maximumf %6, %7 : vector<8x512xf32>
    %9 = arith.truncf %8 : vector<8x512xf32> to vector<8x512xbf16>
    %c0_6 = arith.constant 0 : index
    %c0_7 = arith.constant 0 : index
    %c0_8 = arith.constant 0 : index
    %10 = vector.load %arg4[%c0_6, %c0_7, %c0_8] : memref<5x512x512xbf16, #tpu.memory_space<vmem>>, vector<1x512x512xbf16>
    %11 = vector.shape_cast %10 : vector<1x512x512xbf16> to vector<512x512xbf16>
    %cst_9 = arith.constant dense<0.000000e+00> : vector<8x512xf32>
    %12 = tpu.matmul %9, %11, %cst_9 {dimension_numbers = #tpu.dot_dimension_numbers<[1], [0], [0], [1], [0, 0, 1, 1], [], []>} : vector<8x512xbf16>, vector<512x512xbf16>, vector<8x512xf32> -> vector<8x512xf32>
    %c0_10 = arith.constant 0 : index
    %c0_11 = arith.constant 0 : index
    %c0_12 = arith.constant 0 : index
    %13 = vector.load %arg5[%c0_10, %c0_11, %c0_12] : memref<5x1x512xf32, #tpu.memory_space<vmem>>, vector<1x1x512xf32>
    %14 = vector.shape_cast %13 : vector<1x1x512xf32> to vector<1x512xf32>
    %15 = vector.broadcast %14 : vector<1x512xf32> to vector<8x512xf32>
    %16 = arith.addf %12, %15 : vector<8x512xf32>
    %cst_13 = arith.constant 0.000000e+00 : f32
    %17 = vector.broadcast %cst_13 : f32 to vector<8x512xf32>
    %18 = arith.maximumf %16, %17 : vector<8x512xf32>
    %19 = arith.truncf %18 : vector<8x512xf32> to vector<8x512xbf16>
    %c1 = arith.constant 1 : index
    %c0_14 = arith.constant 0 : index
    %c0_15 = arith.constant 0 : index
    %20 = vector.load %arg4[%c1, %c0_14, %c0_15] : memref<5x512x512xbf16, #tpu.memory_space<vmem>>, vector<1x512x512xbf16>
    %21 = vector.shape_cast %20 : vector<1x512x512xbf16> to vector<512x512xbf16>
    %cst_16 = arith.constant dense<0.000000e+00> : vector<8x512xf32>
    %22 = tpu.matmul %19, %21, %cst_16 {dimension_numbers = #tpu.dot_dimension_numbers<[1], [0], [0], [1], [0, 0, 1, 1], [], []>} : vector<8x512xbf16>, vector<512x512xbf16>, vector<8x512xf32> -> vector<8x512xf32>
    %c1_17 = arith.constant 1 : index
    %c0_18 = arith.constant 0 : index
    %c0_19 = arith.constant 0 : index
    %23 = vector.load %arg5[%c1_17, %c0_18, %c0_19] : memref<5x1x512xf32, #tpu.memory_space<vmem>>, vector<1x1x512xf32>
    %24 = vector.shape_cast %23 : vector<1x1x512xf32> to vector<1x512xf32>
    %25 = vector.broadcast %24 : vector<1x512xf32> to vector<8x512xf32>
    %26 = arith.addf %22, %25 : vector<8x512xf32>
    %cst_20 = arith.constant 0.000000e+00 : f32
    %27 = vector.broadcast %cst_20 : f32 to vector<8x512xf32>
    %28 = arith.maximumf %26, %27 : vector<8x512xf32>
    %29 = arith.truncf %28 : vector<8x512xf32> to vector<8x512xbf16>
    %c2 = arith.constant 2 : index
    %c0_21 = arith.constant 0 : index
    %c0_22 = arith.constant 0 : index
    %30 = vector.load %arg4[%c2, %c0_21, %c0_22] : memref<5x512x512xbf16, #tpu.memory_space<vmem>>, vector<1x512x512xbf16>
    %31 = vector.shape_cast %30 : vector<1x512x512xbf16> to vector<512x512xbf16>
    %cst_23 = arith.constant dense<0.000000e+00> : vector<8x512xf32>
    %32 = tpu.matmul %29, %31, %cst_23 {dimension_numbers = #tpu.dot_dimension_numbers<[1], [0], [0], [1], [0, 0, 1, 1], [], []>} : vector<8x512xbf16>, vector<512x512xbf16>, vector<8x512xf32> -> vector<8x512xf32>
    %c2_24 = arith.constant 2 : index
    %c0_25 = arith.constant 0 : index
    %c0_26 = arith.constant 0 : index
    %33 = vector.load %arg5[%c2_24, %c0_25, %c0_26] : memref<5x1x512xf32, #tpu.memory_space<vmem>>, vector<1x1x512xf32>
    %34 = vector.shape_cast %33 : vector<1x1x512xf32> to vector<1x512xf32>
    %35 = vector.broadcast %34 : vector<1x512xf32> to vector<8x512xf32>
    %36 = arith.addf %32, %35 : vector<8x512xf32>
    %cst_27 = arith.constant 0.000000e+00 : f32
    %37 = vector.broadcast %cst_27 : f32 to vector<8x512xf32>
    %38 = arith.maximumf %36, %37 : vector<8x512xf32>
    %39 = arith.truncf %38 : vector<8x512xf32> to vector<8x512xbf16>
    %c3 = arith.constant 3 : index
    %c0_28 = arith.constant 0 : index
    %c0_29 = arith.constant 0 : index
    %40 = vector.load %arg4[%c3, %c0_28, %c0_29] : memref<5x512x512xbf16, #tpu.memory_space<vmem>>, vector<1x512x512xbf16>
    %41 = vector.shape_cast %40 : vector<1x512x512xbf16> to vector<512x512xbf16>
    %cst_30 = arith.constant dense<0.000000e+00> : vector<8x512xf32>
    %42 = tpu.matmul %39, %41, %cst_30 {dimension_numbers = #tpu.dot_dimension_numbers<[1], [0], [0], [1], [0, 0, 1, 1], [], []>} : vector<8x512xbf16>, vector<512x512xbf16>, vector<8x512xf32> -> vector<8x512xf32>
    %c3_31 = arith.constant 3 : index
    %c0_32 = arith.constant 0 : index
    %c0_33 = arith.constant 0 : index
    %43 = vector.load %arg5[%c3_31, %c0_32, %c0_33] : memref<5x1x512xf32, #tpu.memory_space<vmem>>, vector<1x1x512xf32>
    %44 = vector.shape_cast %43 : vector<1x1x512xf32> to vector<1x512xf32>
    %45 = vector.broadcast %44 : vector<1x512xf32> to vector<8x512xf32>
    %46 = arith.addf %42, %45 : vector<8x512xf32>
    %cst_34 = arith.constant 0.000000e+00 : f32
    %47 = vector.broadcast %cst_34 : f32 to vector<8x512xf32>
    %48 = arith.maximumf %46, %47 : vector<8x512xf32>
    %49 = arith.truncf %48 : vector<8x512xf32> to vector<8x512xbf16>
    %c4 = arith.constant 4 : index
    %c0_35 = arith.constant 0 : index
    %c0_36 = arith.constant 0 : index
    %50 = vector.load %arg4[%c4, %c0_35, %c0_36] : memref<5x512x512xbf16, #tpu.memory_space<vmem>>, vector<1x512x512xbf16>
    %51 = vector.shape_cast %50 : vector<1x512x512xbf16> to vector<512x512xbf16>
    %cst_37 = arith.constant dense<0.000000e+00> : vector<8x512xf32>
    %52 = tpu.matmul %49, %51, %cst_37 {dimension_numbers = #tpu.dot_dimension_numbers<[1], [0], [0], [1], [0, 0, 1, 1], [], []>} : vector<8x512xbf16>, vector<512x512xbf16>, vector<8x512xf32> -> vector<8x512xf32>
    %c4_38 = arith.constant 4 : index
    %c0_39 = arith.constant 0 : index
    %c0_40 = arith.constant 0 : index
    %53 = vector.load %arg5[%c4_38, %c0_39, %c0_40] : memref<5x1x512xf32, #tpu.memory_space<vmem>>, vector<1x1x512xf32>
    %54 = vector.shape_cast %53 : vector<1x1x512xf32> to vector<1x512xf32>
    %55 = vector.broadcast %54 : vector<1x512xf32> to vector<8x512xf32>
    %56 = arith.addf %52, %55 : vector<8x512xf32>
    %cst_41 = arith.constant 0.000000e+00 : f32
    %57 = vector.broadcast %cst_41 : f32 to vector<8x512xf32>
    %58 = arith.maximumf %56, %57 : vector<8x512xf32>
    %59 = arith.truncf %58 : vector<8x512xf32> to vector<8x512xbf16>
    %c0_42 = arith.constant 0 : index
    %c0_43 = arith.constant 0 : index
    %60 = vector.load %arg6[%c0_42, %c0_43] : memref<512x128xbf16, #tpu.memory_space<vmem>>, vector<512x128xbf16>
    %cst_44 = arith.constant dense<0.000000e+00> : vector<8x128xf32>
    %61 = tpu.matmul %59, %60, %cst_44 {dimension_numbers = #tpu.dot_dimension_numbers<[1], [0], [0], [1], [0, 0, 1, 1], [], []>} : vector<8x512xbf16>, vector<512x128xbf16>, vector<8x128xf32> -> vector<8x128xf32>
    %c0_45 = arith.constant 0 : index
    %c0_46 = arith.constant 0 : index
    %62 = vector.load %arg7[%c0_45, %c0_46] : memref<1x128xf32, #tpu.memory_space<vmem>>, vector<1x128xf32>
    %63 = vector.broadcast %62 : vector<1x128xf32> to vector<8x128xf32>
    %64 = arith.addf %61, %63 : vector<8x128xf32>
    %65 = arith.negf %64 : vector<8x128xf32>
    %66 = math.exp %65 : vector<8x128xf32>
    %cst_47 = arith.constant 1.000000e+00 : f32
    %67 = vector.broadcast %cst_47 : f32 to vector<8x128xf32>
    %68 = arith.addf %67, %66 : vector<8x128xf32>
    %69 = arith.divf %67, %68 : vector<8x128xf32>
    %c0_48 = arith.constant 0 : index
    %c0_49 = arith.constant 0 : index
    %70 = vector.load %arg8[%c0_48, %c0_49] : memref<8x128xf32, #tpu.memory_space<vmem>>, vector<8x128xf32>
    tpu.vector_store %arg8[%c0_48, %c0_49], %69 {strides = array<i32>} : memref<8x128xf32, #tpu.memory_space<vmem>>, vector<8x128xf32>,
    return
  }
  func.func @transform_0(%arg0: i32) -> (i32, i32) {
    %c0_i32 = arith.constant 0 : i32
    %c0_i32_0 = arith.constant 0 : i32
    return %arg0, %c0_i32 : i32, i32
  }
  func.func @transform_1(%arg0: i32) -> (i32, i32) {
    %c0_i32 = arith.constant 0 : i32
    %c0_i32_0 = arith.constant 0 : i32
    %c0_i32_1 = arith.constant 0 : i32
    return %c0_i32, %c0_i32_0 : i32, i32
  }
  func.func @transform_2(%arg0: i32) -> (i32, i32) {
    %c0_i32 = arith.constant 0 : i32
    %c0_i32_0 = arith.constant 0 : i32
    %c0_i32_1 = arith.constant 0 : i32
    return %c0_i32, %c0_i32_0 : i32, i32
  }
  func.func @transform_3(%arg0: i32) -> (i32, i32, i32) {
    %c0_i32 = arith.constant 0 : i32
    %c0_i32_0 = arith.constant 0 : i32
    %c0_i32_1 = arith.constant 0 : i32
    %c0_i32_2 = arith.constant 0 : i32
    return %c0_i32, %c0_i32_0, %c0_i32_1 : i32, i32, i32
  }
  func.func @transform_4(%arg0: i32) -> (i32, i32, i32) {
    %c0_i32 = arith.constant 0 : i32
    %c0_i32_0 = arith.constant 0 : i32
    %c0_i32_1 = arith.constant 0 : i32
    %c0_i32_2 = arith.constant 0 : i32
    return %c0_i32, %c0_i32_0, %c0_i32_1 : i32, i32, i32
  }
  func.func @transform_5(%arg0: i32) -> (i32, i32) {
    %c0_i32 = arith.constant 0 : i32
    %c0_i32_0 = arith.constant 0 : i32
    %c0_i32_1 = arith.constant 0 : i32
    return %c0_i32, %c0_i32_0 : i32, i32
  }
  func.func @transform_6(%arg0: i32) -> (i32, i32) {
    %c0_i32 = arith.constant 0 : i32
    %c0_i32_0 = arith.constant 0 : i32
    %c0_i32_1 = arith.constant 0 : i32
    return %c0_i32, %c0_i32_0 : i32, i32
  }
  func.func @transform_7(%arg0: i32) -> (i32, i32) {
    %c0_i32 = arith.constant 0 : i32
    %c0_i32_0 = arith.constant 0 : i32
    return %arg0, %c0_i32 : i32, i32
  }
}

</mosaic_0001>

<bundles_post_ra>
// kernel: tpu_custom_call.1
= control target key start
LH: loop header
LB: loop body
LE: loop exit
PB: predicated region body
PF: predicated region fallthrough
CT: control target
= control target key end

     0   :  { %12 = vsyncpa [#allocation3], 0  ;;  %s9588_s0 = inlined_call_operand.hbm [shape: f32[8,33], index: 0, kind: input, shape index: {}]   ;;  %s9589_s1 = inlined_call_operand.hbm [shape: bf16[33,512], index: 1, kind: input, shape index: {}]   ;;  %s9590_s2 = inlined_call_operand.hbm [shape: f32[1,512], index: 2, kind: input, shape index: {}]   ;;  %s9591_s3 = inlined_call_operand.hbm [shape: bf16[5,512,512], index: 3, kind: input, shape index: {}]   ;;  %s9592_s4 = inlined_call_operand.hbm [shape: f32[5,1,512], index: 4, kind: input, shape index: {}]   ;;  %s9593_s5 = inlined_call_operand.hbm [shape: bf16[512,128], index: 5, kind: input, shape index: {}]   ;;  %s9594_s6 = inlined_call_operand.hbm [shape: f32[1,128], index: 6, kind: input, shape index: {}]   ;;  %s9595_s7 = inlined_call_operand.hbm [shape: f32[8,128], index: 7, kind: output, shape index: {}]  }
   0x1   :  { %13 = vsyncpa [#allocation6], 0 }
   0x2   :  { %14 = vsyncpa [#allocation9], 0 }
   0x3   :  { %15 = vsyncpa [#allocation12], 0  ;;  %s32_s26 = sshll.u32 %s9589_s1, 4  ;;  %s33_s26 = int_to_ptr.hbm [resolvable:$true] %s32_s26 }
   0x4   :  { %16 = vsyncpa [#allocation4], 0  ;;  %s9237_s27 = smov [#allocation5]   ;;  %s56_s8 = sshll.u32 %s9591_s3, 4  ;;  %s57_s8 = int_to_ptr.hbm [resolvable:$true] %s56_s8 }
   0x5   :  { %s34_s28 = sshll.u32 %s9237_s27, 4  ;;  %s9238_s9 = smov 256   ;;  %s35_s28 = int_to_ptr.vmem [resolvable:$true] %s34_s28 }
   0x6   :  { %s9239_s10 = smov 16   ;;  %s9240_s11 = smov [#allocation8]  }
   0x7   :  { %40 = dma.hbm_to_vmem [thread:$0]  %s33_s26, 1280, %s35_s28, [#allocation6], %s9238_s9, %s9238_s9, %s9239_s10  }
   0x8   :  { %s58_s12 = sshll.u32 %s9240_s11, 4  ;;  %s82_s1 = sshll.u32 %s9593_s5, 4  ;;  %s59_s12 = int_to_ptr.vmem [resolvable:$true] %s58_s12  ;;  %s83_s1 = int_to_ptr.hbm [resolvable:$true] %s82_s1 }
   0x9   :  { %64 = dma.hbm_to_vmem [thread:$0]  %s57_s8, 81920, %s59_s12, [#allocation9], %s9238_s9, %s9238_s9, %s9239_s10  }
   0xa   :  { %s9241_s15 = smov [#allocation11]   ;;  %s22_s3 = sshll.u32 %s9588_s0, 4  ;;  %s23_s3 = int_to_ptr.hbm [resolvable:$true] %s22_s3 }
   0xb   :  { %s84_s16 = sshll.u32 %s9241_s15, 4  ;;  %s9242_s19 = smov 64   ;;  %s85_s16 = int_to_ptr.vmem [resolvable:$true] %s84_s16 }
   0xc   :  { %s9243_s20 = smov 4   ;;  %s9244_s21 = smov [#allocation2]  }
   0xd   :  { %90 = dma.hbm_to_vmem [thread:$0]  %s83_s1, 4096, %s85_s16, [#allocation12], %s9242_s19, %s9242_s19, %s9243_s20  }
   0xe   :  { %s24_s22 = sshll.u32 %s9244_s21, 4  ;;  %s46_s25 = sshll.u32 %s9590_s2, 4  ;;  %s25_s22 = int_to_ptr.vmem [resolvable:$true] %s24_s22  ;;  %s47_s25 = int_to_ptr.hbm [resolvable:$true] %s46_s25 }
   0xf   :  { %27 = dma.hbm_to_vmem [thread:$0]  %s23_s3, 128, %s25_s22, [#allocation3]  }
  0x10   :  { %s69_s27 = sshll.u32 %s9592_s4, 4  ;;  %s9245_s28 = smov [#allocation7]   ;;  %s70_s27 = int_to_ptr.hbm [resolvable:$true] %s69_s27 }
  0x11   :  { %s48_s29 = sshll.u32 %s9245_s28, 4  ;;  %s9246_s0 = smov [#allocation10]   ;;  %s49_s29 = int_to_ptr.vmem [resolvable:$true] %s48_s29 }
  0x12   :  { %51 = dma.hbm_to_vmem [thread:$0]  %s47_s25, 64, %s49_s29, [#allocation6]  }
  0x13   :  { %s71_s30 = sshll.u32 %s9246_s0, 4  ;;  %s96_s10 = sshll.u32 %s9594_s6, 4  ;;  %s72_s30 = int_to_ptr.vmem [resolvable:$true] %s71_s30  ;;  %s97_s10 = int_to_ptr.hbm [resolvable:$true] %s96_s10 }
  0x14   :  { %77 = dma.hbm_to_vmem [thread:$0]  %s70_s27, 320, %s72_s30, [#allocation9], %s9242_s19, %s9242_s19, %s9243_s20  }
  0x15   :  { %s9247_s2 = smov [#allocation13]  }
  0x16   :  { %s98_s11 = sshll.u32 %s9247_s2, 4  ;;  %s99_s11 = int_to_ptr.vmem [resolvable:$true] %s98_s11 }
  0x17   :  { %101 = dma.hbm_to_vmem [thread:$0]  %s97_s10, 16, %s99_s11, [#allocation12]  }
  0x18   :  { %9227 = dma.done.wait [#allocation3], 128  }
  0x19   :  { %9228 = vsyncadd [#allocation3], 4294967168 }
  0x1a   :  { %9229 = dma.done.wait [#allocation6], 1344  }
  0x1b   :  { %9230 = vsyncadd [#allocation6], 4294965952 }
  0x1c   :  { %9231 = dma.done.wait [#allocation9], 82240  }
  0x1d   :  { %9232 = vsyncadd [#allocation9], 4294885056 }
  0x1e   :  { %9233 = dma.done.wait [#allocation12], 4112  }
  0x1f   :  { %9234 = vsyncadd [#allocation12], 4294963184  ;;  %vm207_vm0 = vcmask 1040384   ;;  %v141_v0 = vld [vmem:[#allocation5 + $0x40] sm:$0x11]  ;;  %v9248_v6 = vmov 0  }
  0x20   :  { %v142_v1 = vld [vmem:[#allocation5 + $0x48] sm:$0x11]  ;;  %v179_v2 = vunpack.c.l.b16 %v141_v0  ;;  %v180_v3 = vunpack.c.h.b16 %v141_v0  ;;  %v209_v7 = vsel %vm207_vm0, 65535, %v9248_v6  ;;  %v5630_v12 = vld [vmem:[#allocation5 + $0x20] sm:$0xf]  ;;  %v131_v42 = vld [vmem:[#allocation2] sm:$0xff] }
  0x21   :  { %v181_v4 = vunpack.c.l.b16 %v142_v1  ;;  %v182_v5 = vunpack.c.h.b16 %v142_v1  ;;  %v8343_v13 = vld [vmem:[#allocation5 + $0x2c] sm:$0xf0]  ;;  %v8341_v14 = vld [vmem:[#allocation5 + $0x24] sm:$0xf]  ;;  %v5632_v15 = vld [vmem:[#allocation5 + $0x30] sm:$0xf0]  ;;  %v132_v52 = vpack.c.bf16 %v131_v42, %v131_v42 }
  0x22   :  { %v191_v8 = vpack.c.b16 %v179_v2, %v179_v2  ;;  %v192_v9 = vpack.c.b16 %v180_v3, %v180_v3  ;;  %v5638_v16 = vld [vmem:[#allocation5 + $0x28] sm:$0xf]  ;;  %v8344_v21 = vld [vmem:[#allocation5 + $0x34] sm:$0xf0]  ;;  %v8342_v22 = vld [vmem:[#allocation5 + $0x2c] sm:$0xf]  ;;  %v5631_v24 = vor.u32 %v8343_v13, %v5630_v12  ;;  %v5635_v25 = vor.u32 %v8341_v14, %v5632_v15 }
  0x23   :  { %v193_v10 = vpack.c.b16 %v181_v4, %v181_v4  ;;  %v194_v11 = vpack.c.b16 %v182_v5, %v182_v5  ;;  %v5640_v23 = vld [vmem:[#allocation5 + $0x38] sm:$0xf0]  ;;  %v5614_v26 = vld [vmem:[#allocation5] sm:$0xf]  ;;  %v8339_v27 = vld [vmem:[#allocation5 + $0xc] sm:$0xf0]  ;;  %v5639_v29 = vor.u32 %v8344_v21, %v5638_v16 }
  0x24   :  { %v211_v17 = vand.u32 %v209_v7, %v191_v8  ;;  %v214_v18 = vand.u32 %v209_v7, %v192_v9  ;;  %v8337_v28 = vld [vmem:[#allocation5 + $0x4] sm:$0xf]  ;;  %v5643_v30 = vor.u32 %v8342_v22, %v5640_v23  ;;  %v5616_v31 = vld [vmem:[#allocation5 + $0x10] sm:$0xf0]  ;;  %v5622_v32 = vld [vmem:[#allocation5 + $0x8] sm:$0xf]  ;;  %v5615_v40 = vor.u32 %v8339_v27, %v5614_v26 }
  0x25   :  { %v217_v19 = vand.u32 %v209_v7, %v193_v10  ;;  %v220_v20 = vand.u32 %v209_v7, %v194_v11  ;;  %v8340_v33 = vld [vmem:[#allocation5 + $0x14] sm:$0xf0]  ;;  %v8338_v34 = vld [vmem:[#allocation5 + $0xc] sm:$0xf]  ;;  %v5624_v35 = vld [vmem:[#allocation5 + $0x18] sm:$0xf0]  ;;  %v5619_v41 = vor.u32 %v8337_v28, %v5616_v31 }
  0x26   :  { %227 = vmatpush.bf16.msra.mxu0 %v211_v17  ;;  %240 = vmatpush.bf16.msra.mxu1 %v214_v18  ;;  %v5762_v36 = vld [vmem:[#allocation8 + $0xe0] sm:$0xf]  ;;  %v8375_v37 = vld [vmem:[#allocation8 + $0xec] sm:$0xf0]  ;;  %v5623_v43 = vor.u32 %v8340_v33, %v5622_v32  ;;  %v5627_v44 = vor.u32 %v8338_v34, %v5624_v35  ;;  %vm203_vm1 = vcmask 269312   ;;  %s9249_s4 = smov [#allocation14]  }
  0x27   :  { %253 = vmatpush.bf16.msra.mxu2 %v217_v19  ;;  %266 = vmatpush.bf16.msra.mxu3 %v220_v20  ;;  %v5890_v38 = vld [vmem:[#allocation8 + $0x1e0] sm:$0xf]  ;;  %v8407_v39 = vld [vmem:[#allocation8 + $0x1ec] sm:$0xf0]  ;;  %v5763_v47 = vor.u32 %v8375_v37, %v5762_v36  ;;  %s5597_s6 = sshll.u32 %s9249_s4, 4  ;;  %s5599_s14 = sshll.u32 %s9595_s7, 4  ;;  %s5598_s6 = int_to_ptr.vmem [resolvable:$true] %s5597_s6  ;;  %s5600_s14 = int_to_ptr.hbm [resolvable:$true] %s5599_s14 }
  0x28   :  { %v5746_v45 = vld [vmem:[#allocation8 + $0xc0] sm:$0xf]  ;;  %v5891_v48 = vor.u32 %v8407_v39, %v5890_v38  ;;  %v8439_v49 = vld [vmem:[#allocation8 + $0x2ec] sm:$0xf0] }
  0x29   :  { %v6018_v46 = vld [vmem:[#allocation8 + $0x2e0] sm:$0xf]  ;;  %v8471_v51 = vld [vmem:[#allocation8 + $0x3ec] sm:$0xf0] }
  0x2a   :  { %228 = vmatpush.bf16.msra.mxu0 %v5631_v24  ;;  %241 = vmatpush.bf16.msra.mxu1 %v5635_v25  ;;  %v6146_v50 = vld [vmem:[#allocation8 + $0x3e0] sm:$0xf]  ;;  %v8371_v53 = vld [vmem:[#allocation8 + $0xcc] sm:$0xf0]  ;;  %v6019_v56 = vor.u32 %v8439_v49, %v6018_v46 }
  0x2b   :  { %254 = vmatpush.bf16.msra.mxu2 %v5639_v29  ;;  %267 = vmatpush.bf16.msra.mxu3 %v5643_v30  ;;  %v5874_v54 = vld [vmem:[#allocation8 + $0x1c0] sm:$0xf]  ;;  %v8403_v55 = vld [vmem:[#allocation8 + $0x1cc] sm:$0xf0]  ;;  %v6147_v57 = vor.u32 %v8471_v51, %v6146_v50  ;;  %v5747_v60 = vor.u32 %v8371_v53, %v5746_v45 }
  0x2c   :  { %v5730_v58 = vld [vmem:[#allocation8 + $0xa0] sm:$0xf]  ;;  %v5875_v61 = vor.u32 %v8403_v55, %v5874_v54  ;;  %v8435_v62 = vld [vmem:[#allocation8 + $0x2cc] sm:$0xf0] }
  0x2d   :  { %v6002_v59 = vld [vmem:[#allocation8 + $0x2c0] sm:$0xf]  ;;  %v8467_v0 = vld [vmem:[#allocation8 + $0x3cc] sm:$0xf0] }
  0x2e   :  { %229 = vmatpush.bf16.msra.mxu0 %v5615_v40  ;;  %242 = vmatpush.bf16.msra.mxu1 %v5619_v41  ;;  %v6130_v63 = vld [vmem:[#allocation8 + $0x3c0] sm:$0xf]  ;;  %v8367_v1 = vld [vmem:[#allocation8 + $0xac] sm:$0xf0]  ;;  %v6003_v4 = vor.u32 %v8435_v62, %v6002_v59 }
  0x2f   :  { %255 = vmatpush.bf16.msra.mxu2 %v5623_v43  ;;  %268 = vmatpush.bf16.msra.mxu3 %v5627_v44  ;;  %v5858_v2 = vld [vmem:[#allocation8 + $0x1a0] sm:$0xf]  ;;  %v8399_v3 = vld [vmem:[#allocation8 + $0x1ac] sm:$0xf0]  ;;  %v6131_v5 = vor.u32 %v8467_v0, %v6130_v63  ;;  %v5731_v8 = vor.u32 %v8367_v1, %v5730_v58  ;;  %v8373_v0 = vld [vmem:[#allocation8 + $0xe4] sm:$0xf] }
  0x30   :  { %v5714_v6 = vld [vmem:[#allocation8 + $0x80] sm:$0xf]  ;;  %v5859_v9 = vor.u32 %v8399_v3, %v5858_v2  ;;  %v8431_v10 = vld [vmem:[#allocation8 + $0x2ac] sm:$0xf0]  ;;  %v5764_v1 = vld [vmem:[#allocation8 + $0xf0] sm:$0xf0] }
  0x31   :  { %5644 = vmatmul.msk.bf16.vlgmr.msra.gmra.mxu0 %vm203_vm1, %v132_v52  ;;  %5645 = vmatmul.msk.bf16.vlgmr.msra.gmra.mxu1 %vm203_vm1, %v132_v52  ;;  %v5986_v7 = vld [vmem:[#allocation8 + $0x2a0] sm:$0xf]  ;;  %v8463_v12 = vld [vmem:[#allocation8 + $0x3ac] sm:$0xf0]  ;;  %v8405_v2 = vld [vmem:[#allocation8 + $0x1e4] sm:$0xf] }
  0x32   :  { %1060 = vmatpush.bf16.msrb.mxu0 %v5763_v47  ;;  %1073 = vmatpush.bf16.msrb.mxu1 %v5891_v48  ;;  %v6114_v11 = vld [vmem:[#allocation8 + $0x3a0] sm:$0xf]  ;;  %v8363_v13 = vld [vmem:[#allocation8 + $0x8c] sm:$0xf0]  ;;  %v5987_v16 = vor.u32 %v8431_v10, %v5986_v7  ;;  %v5892_v3 = vld [vmem:[#allocation8 + $0x1f0] sm:$0xf0] }
  0x33   :  { %5646 = vmatmul.msk.bf16.vlgmr.msra.gmra.mxu2 %vm203_vm1, %v132_v52  ;;  %5647 = vmatmul.msk.bf16.vlgmr.msra.gmra.mxu3 %vm203_vm1, %v132_v52  ;;  %v5842_v14 = vld [vmem:[#allocation8 + $0x180] sm:$0xf]  ;;  %v8395_v15 = vld [vmem:[#allocation8 + $0x18c] sm:$0xf0]  ;;  %v6115_v17 = vor.u32 %v8463_v12, %v6114_v11  ;;  %v5715_v20 = vor.u32 %v8363_v13, %v5714_v6  ;;  %v8369_v11 = vld [vmem:[#allocation8 + $0xc4] sm:$0xf] }
  0x34   :  { %1086 = vmatpush.bf16.msrb.mxu2 %v6019_v56  ;;  %1099 = vmatpush.bf16.msrb.mxu3 %v6147_v57  ;;  %v5698_v18 = vld [vmem:[#allocation8 + $0x60] sm:$0xf]  ;;  %v5843_v21 = vor.u32 %v8395_v15, %v5842_v14  ;;  %v8427_v22 = vld [vmem:[#allocation8 + $0x28c] sm:$0xf0]  ;;  %v8437_v13 = vld [vmem:[#allocation8 + $0x2e4] sm:$0xf]  ;;  %v5767_v14 = vor.u32 %v8373_v0, %v5764_v1  ;;  %v5895_v15 = vor.u32 %v8405_v2, %v5892_v3 }
  0x35   :  { %v5970_v19 = vld [vmem:[#allocation8 + $0x280] sm:$0xf]  ;;  %v8459_v24 = vld [vmem:[#allocation8 + $0x38c] sm:$0xf0]  ;;  %v8353_v0 = vld [vmem:[#allocation8 + $0x44] sm:$0xf] }
  0x36   :  { %1061 = vmatpush.bf16.msrb.mxu0 %v5747_v60  ;;  %1074 = vmatpush.bf16.msrb.mxu1 %v5875_v61  ;;  %v6098_v23 = vld [vmem:[#allocation8 + $0x380] sm:$0xf]  ;;  %v8359_v25 = vld [vmem:[#allocation8 + $0x6c] sm:$0xf0]  ;;  %v5971_v28 = vor.u32 %v8427_v22, %v5970_v19  ;;  %v5748_v19 = vld [vmem:[#allocation8 + $0xd0] sm:$0xf0] }
  0x37   :  { %v5826_v26 = vld [vmem:[#allocation8 + $0x160] sm:$0xf]  ;;  %v8391_v27 = vld [vmem:[#allocation8 + $0x16c] sm:$0xf0]  ;;  %v6099_v29 = vor.u32 %v8459_v24, %v6098_v23  ;;  %v5699_v32 = vor.u32 %v8359_v25, %v5698_v18  ;;  %v6148_v18 = vld [vmem:[#allocation8 + $0x3f0] sm:$0xf0] }
  0x38   :  { %1087 = vmatpush.bf16.msrb.mxu2 %v6003_v4  ;;  %1100 = vmatpush.bf16.msrb.mxu3 %v6131_v5  ;;  %v5682_v30 = vld [vmem:[#allocation8 + $0x40] sm:$0xf]  ;;  %v5827_v33 = vor.u32 %v8391_v27, %v5826_v26  ;;  %v8423_v34 = vld [vmem:[#allocation8 + $0x26c] sm:$0xf0]  ;;  %v8365_v26 = vld [vmem:[#allocation8 + $0xa4] sm:$0xf] }
  0x39   :  { %v5954_v31 = vld [vmem:[#allocation8 + $0x260] sm:$0xf]  ;;  %v8455_v36 = vld [vmem:[#allocation8 + $0x36c] sm:$0xf0]  ;;  %v8433_v27 = vld [vmem:[#allocation8 + $0x2c4] sm:$0xf] }
  0x3a   :  { %1062 = vmatpush.bf16.msrb.mxu0 %v5731_v8  ;;  %1075 = vmatpush.bf16.msrb.mxu1 %v5859_v9  ;;  %v6082_v35 = vld [vmem:[#allocation8 + $0x360] sm:$0xf]  ;;  %v8355_v37 = vld [vmem:[#allocation8 + $0x4c] sm:$0xf0]  ;;  %v5955_v40 = vor.u32 %v8423_v34, %v5954_v31  ;;  %v8465_v31 = vld [vmem:[#allocation8 + $0x3c4] sm:$0xf] }
  0x3b   :  { %v5810_v38 = vld [vmem:[#allocation8 + $0x140] sm:$0xf]  ;;  %v8387_v39 = vld [vmem:[#allocation8 + $0x14c] sm:$0xf0]  ;;  %v6083_v41 = vor.u32 %v8455_v36, %v6082_v35  ;;  %v5683_v44 = vor.u32 %v8355_v37, %v5682_v30  ;;  %v6004_v30 = vld [vmem:[#allocation8 + $0x2d0] sm:$0xf0] }
  0x3c   :  { %1088 = vmatpush.bf16.msrb.mxu2 %v5987_v16  ;;  %1101 = vmatpush.bf16.msrb.mxu3 %v6115_v17  ;;  %v5666_v42 = vld [vmem:[#allocation8 + $0x20] sm:$0xf]  ;;  %v5811_v45 = vor.u32 %v8387_v39, %v5810_v38  ;;  %v8419_v46 = vld [vmem:[#allocation8 + $0x24c] sm:$0xf0]  ;;  %v6020_v16 = vld [vmem:[#allocation8 + $0x2f0] sm:$0xf0]  ;;  %v6007_v36 = vor.u32 %v8433_v27, %v6004_v30 }
  0x3d   :  { %v5938_v43 = vld [vmem:[#allocation8 + $0x240] sm:$0xf]  ;;  %v8451_v48 = vld [vmem:[#allocation8 + $0x34c] sm:$0xf0]  ;;  %v8469_v17 = vld [vmem:[#allocation8 + $0x3e4] sm:$0xf]  ;;  %v6023_v24 = vor.u32 %v8437_v13, %v6020_v16 }
  0x3e   :  { %1063 = vmatpush.bf16.msrb.mxu0 %v5715_v20  ;;  %1076 = vmatpush.bf16.msrb.mxu1 %v5843_v21  ;;  %v6066_v47 = vld [vmem:[#allocation8 + $0x340] sm:$0xf]  ;;  %v8351_v49 = vld [vmem:[#allocation8 + $0x2c] sm:$0xf0]  ;;  %v5939_v52 = vor.u32 %v8419_v46, %v5938_v43  ;;  %v8401_v20 = vld [vmem:[#allocation8 + $0x1c4] sm:$0xf]  ;;  %v6151_v25 = vor.u32 %v8469_v17, %v6148_v18 }
  0x3f   :  { %v5794_v50 = vld [vmem:[#allocation8 + $0x120] sm:$0xf]  ;;  %v8383_v51 = vld [vmem:[#allocation8 + $0x12c] sm:$0xf0]  ;;  %v6067_v53 = vor.u32 %v8451_v48, %v6066_v47  ;;  %v5667_v57 = vor.u32 %v8351_v49, %v5666_v42  ;;  %v5876_v21 = vld [vmem:[#allocation8 + $0x1d0] sm:$0xf0] }
  0x40   :  { %1089 = vmatpush.bf16.msrb.mxu2 %v5971_v28  ;;  %1102 = vmatpush.bf16.msrb.mxu3 %v6099_v29  ;;  %v5650_v54 = vld [vmem:[#allocation8] sm:$0xf]  ;;  %v8347_v55 = vld [vmem:[#allocation8 + $0xc] sm:$0xf0]  ;;  %v5795_v58 = vor.u32 %v8383_v51, %v5794_v50  ;;  %v5751_v28 = vor.u32 %v8369_v11, %v5748_v19  ;;  %v5879_v29 = vor.u32 %v8401_v20, %v5876_v21  ;;  %v8397_v34 = vld [vmem:[#allocation8 + $0x1a4] sm:$0xf] }
  0x41   :  { %v5922_v56 = vld [vmem:[#allocation8 + $0x220] sm:$0xf]  ;;  %v8415_v59 = vld [vmem:[#allocation8 + $0x22c] sm:$0xf0]  ;;  %v5651_v9 = vor.u32 %v8347_v55, %v5650_v54  ;;  %v5860_v35 = vld [vmem:[#allocation8 + $0x1b0] sm:$0xf0] }
  0x42   :  { %1064 = vmatpush.bf16.msrb.mxu0 %v5699_v32  ;;  %1077 = vmatpush.bf16.msrb.mxu1 %v5827_v33  ;;  %v6050_v60 = vld [vmem:[#allocation8 + $0x320] sm:$0xf]  ;;  %v8447_v61 = vld [vmem:[#allocation8 + $0x32c] sm:$0xf0]  ;;  %v5923_v4 = vor.u32 %v8415_v59, %v5922_v56  ;;  %v6132_v32 = vld [vmem:[#allocation8 + $0x3d0] sm:$0xf0] }
  0x43   :  { %v5778_v62 = vld [vmem:[#allocation8 + $0x100] sm:$0xf]  ;;  %v8379_v63 = vld [vmem:[#allocation8 + $0x10c] sm:$0xf0]  ;;  %v6051_v5 = vor.u32 %v8447_v61, %v6050_v60  ;;  %v5732_v33 = vld [vmem:[#allocation8 + $0xb0] sm:$0xf0]  ;;  %v6135_v37 = vor.u32 %v8465_v31, %v6132_v32 }
  0x44   :  { %1090 = vmatpush.bf16.msrb.mxu2 %v5955_v40  ;;  %1103 = vmatpush.bf16.msrb.mxu3 %v6083_v41  ;;  %v5906_v6 = vld [vmem:[#allocation8 + $0x200] sm:$0xf]  ;;  %v8411_v7 = vld [vmem:[#allocation8 + $0x20c] sm:$0xf0]  ;;  %v5779_v10 = vor.u32 %v8379_v63, %v5778_v62  ;;  %v8361_v38 = vld [vmem:[#allocation8 + $0x84] sm:$0xf]  ;;  %v5735_v40 = vor.u32 %v8365_v26, %v5732_v33  ;;  %v5863_v41 = vor.u32 %v8397_v34, %v5860_v35 }
  0x45   :  { %v6034_v8 = vld [vmem:[#allocation8 + $0x300] sm:$0xf]  ;;  %v8443_v12 = vld [vmem:[#allocation8 + $0x30c] sm:$0xf0]  ;;  %v5907_v22 = vor.u32 %v8411_v7, %v5906_v6  ;;  %v8429_v39 = vld [vmem:[#allocation8 + $0x2a4] sm:$0xf] }
  0x46   :  { %1065 = vmatpush.bf16.msrb.mxu0 %v5683_v44  ;;  %1078 = vmatpush.bf16.msrb.mxu1 %v5811_v45  ;;  %v6035_v23 = vor.u32 %v8443_v12, %v6034_v8  ;;  %v5988_v42 = vld [vmem:[#allocation8 + $0x2b0] sm:$0xf0]  ;;  %v8461_v43 = vld [vmem:[#allocation8 + $0x3a4] sm:$0xf] }
  0x47   :  { %v6116_v44 = vld [vmem:[#allocation8 + $0x3b0] sm:$0xf0]  ;;  %v8393_v46 = vld [vmem:[#allocation8 + $0x184] sm:$0xf]  ;;  %v5991_v48 = vor.u32 %v8429_v39, %v5988_v42  ;;  %v143_v42 = vld [vmem:[#allocation7] sm:$0xf] }
  0x48   :  { %1091 = vmatpush.bf16.msrb.mxu2 %v5939_v52  ;;  %1104 = vmatpush.bf16.msrb.mxu3 %v6067_v53  ;;  %v5716_v45 = vld [vmem:[#allocation8 + $0x90] sm:$0xf0]  ;;  %v6119_v49 = vor.u32 %v8461_v43, %v6116_v44  ;;  %v8357_v50 = vld [vmem:[#allocation8 + $0x64] sm:$0xf]  ;;  %v145_v43 = vperm.slane %v143_v42, 0  ;;  %v146_v44 = vperm.slane %v143_v42, 1 }
  0x49   :  { %v5844_v47 = vld [vmem:[#allocation8 + $0x190] sm:$0xf0]  ;;  %v8425_v51 = vld [vmem:[#allocation8 + $0x284] sm:$0xf]  ;;  %v5719_v52 = vor.u32 %v8361_v38, %v5716_v45 }
  0x4a   :  { %1066 = vmatpush.bf16.msrb.mxu0 %v5667_v57  ;;  %1079 = vmatpush.bf16.msrb.mxu1 %v5795_v58  ;;  %v5847_v53 = vor.u32 %v8393_v46, %v5844_v47  ;;  %v5972_v54 = vld [vmem:[#allocation8 + $0x290] sm:$0xf0]  ;;  %v8457_v55 = vld [vmem:[#allocation8 + $0x384] sm:$0xf]  ;;  %v5770_v47 = vld [vmem:[#allocation8 + $0xe8] sm:$0xf] }
  0x4b   :  { %v6100_v56 = vld [vmem:[#allocation8 + $0x390] sm:$0xf0]  ;;  %v8389_v58 = vld [vmem:[#allocation8 + $0x164] sm:$0xf]  ;;  %v5975_v60 = vor.u32 %v8425_v51, %v5972_v54  ;;  %v5898_v51 = vld [vmem:[#allocation8 + $0x1e8] sm:$0xf] }
  0x4c   :  { %1092 = vmatpush.bf16.msrb.mxu2 %v5923_v4  ;;  %1105 = vmatpush.bf16.msrb.mxu3 %v6051_v5  ;;  %v5700_v57 = vld [vmem:[#allocation8 + $0x70] sm:$0xf0]  ;;  %v6103_v61 = vor.u32 %v8457_v55, %v6100_v56  ;;  %v8385_v2 = vld [vmem:[#allocation8 + $0x144] sm:$0xf]  ;;  %v147_v55 = vperm.slane %v143_v42, 2  ;;  %v148_v56 = vperm.slane %v143_v42, 3 }
  0x4d   :  { %v5828_v59 = vld [vmem:[#allocation8 + $0x170] sm:$0xf0]  ;;  %v5703_v62 = vor.u32 %v8357_v50, %v5700_v57  ;;  %v8421_v6 = vld [vmem:[#allocation8 + $0x264] sm:$0xf]  ;;  %v8376_v50 = vld [vmem:[#allocation8 + $0xf4] sm:$0xf0] }
  0x4e   :  { %1067 = vmatpush.bf16.msrb.mxu0 %v5651_v9  ;;  %1080 = vmatpush.bf16.msrb.mxu1 %v5779_v10  ;;  %v5831_v63 = vor.u32 %v8389_v58, %v5828_v59  ;;  %v5684_v1 = vld [vmem:[#allocation8 + $0x50] sm:$0xf0]  ;;  %v8453_v8 = vld [vmem:[#allocation8 + $0x364] sm:$0xf]  ;;  %v5771_v57 = vor.u32 %v8376_v50, %v5770_v47  ;;  %v5754_v59 = vld [vmem:[#allocation8 + $0xc8] sm:$0xf] }
  0x4f   :  { %v5812_v3 = vld [vmem:[#allocation8 + $0x150] sm:$0xf0]  ;;  %v5687_v4 = vor.u32 %v8353_v0, %v5684_v1  ;;  %v8349_v12 = vld [vmem:[#allocation8 + $0x24] sm:$0xf]  ;;  %v8404_v0 = vld [vmem:[#allocation8 + $0x1d4] sm:$0xf0] }
  0x50   :  { %1093 = vmatpush.bf16.msrb.mxu2 %v5907_v22  ;;  %1106 = vmatpush.bf16.msrb.mxu3 %v6035_v23  ;;  %v5815_v5 = vor.u32 %v8385_v2, %v5812_v3  ;;  %v5956_v7 = vld [vmem:[#allocation8 + $0x270] sm:$0xf0]  ;;  %v8417_v18 = vld [vmem:[#allocation8 + $0x244] sm:$0xf]  ;;  %v8464_v42 = vld [vmem:[#allocation8 + $0x3b4] sm:$0xf0] }
  0x51   :  { %v5959_v9 = vor.u32 %v8421_v6, %v5956_v7  ;;  %v6084_v10 = vld [vmem:[#allocation8 + $0x370] sm:$0xf0]  ;;  %v8449_v20 = vld [vmem:[#allocation8 + $0x344] sm:$0xf]  ;;  %v6154_v6 = vld [vmem:[#allocation8 + $0x3e8] sm:$0xf] }
  0x52   :  { %1112 = vmatpush.bf16.msra.mxu0 %v5767_v14  ;;  %1125 = vmatpush.bf16.msra.mxu1 %v5895_v15  ;;  %v6087_v11 = vor.u32 %v8453_v8, %v6084_v10  ;;  %v5668_v13 = vld [vmem:[#allocation8 + $0x30] sm:$0xf0]  ;;  %v8381_v15 = vld [vmem:[#allocation8 + $0x124] sm:$0xf]  ;;  %v8428_v50 = vld [vmem:[#allocation8 + $0x294] sm:$0xf0] }
  0x53   :  { %v5671_v14 = vor.u32 %v8349_v12, %v5668_v13  ;;  %v5796_v16 = vld [vmem:[#allocation8 + $0x130] sm:$0xf0]  ;;  %v8377_v26 = vld [vmem:[#allocation8 + $0x104] sm:$0xf]  ;;  %v8472_v12 = vld [vmem:[#allocation8 + $0x3f4] sm:$0xf0] }
  0x54   :  { %1138 = vmatpush.bf16.msra.mxu2 %v6023_v24  ;;  %1151 = vmatpush.bf16.msra.mxu3 %v6151_v25  ;;  %v5799_v17 = vor.u32 %v8381_v15, %v5796_v16  ;;  %v5940_v19 = vld [vmem:[#allocation8 + $0x250] sm:$0xf0]  ;;  %v8345_v24 = vld [vmem:[#allocation8 + $0x4] sm:$0xf]  ;;  %v5738_v13 = vld [vmem:[#allocation8 + $0xa8] sm:$0xf] }
  0x55   :  { %v5943_v21 = vor.u32 %v8417_v18, %v5940_v19  ;;  %v6068_v22 = vld [vmem:[#allocation8 + $0x350] sm:$0xf0]  ;;  %v8413_v30 = vld [vmem:[#allocation8 + $0x224] sm:$0xf]  ;;  %v5866_v15 = vld [vmem:[#allocation8 + $0x1a8] sm:$0xf] }
  0x56   :  { %1113 = vmatpush.bf16.msra.mxu0 %v5751_v28  ;;  %1126 = vmatpush.bf16.msra.mxu1 %v5879_v29  ;;  %v6071_v23 = vor.u32 %v8449_v20, %v6068_v22  ;;  %v5652_v25 = vld [vmem:[#allocation8 + $0x10] sm:$0xf0]  ;;  %v8445_v33 = vld [vmem:[#allocation8 + $0x324] sm:$0xf]  ;;  %v8400_v16 = vld [vmem:[#allocation8 + $0x1b4] sm:$0xf0]  ;;  %v6155_v20 = vor.u32 %v8472_v12, %v6154_v6 }
  0x57   :  { %v5655_v27 = vor.u32 %v8345_v24, %v5652_v25  ;;  %v5780_v28 = vld [vmem:[#allocation8 + $0x110] sm:$0xf0]  ;;  %v8441_v39 = vld [vmem:[#allocation8 + $0x304] sm:$0xf]  ;;  %v6010_v22 = vld [vmem:[#allocation8 + $0x2c8] sm:$0xf] }
  0x58   :  { %1139 = vmatpush.bf16.msra.mxu2 %v6007_v36  ;;  %1152 = vmatpush.bf16.msra.mxu3 %v6135_v37  ;;  %v5783_v29 = vor.u32 %v8377_v26, %v5780_v28  ;;  %v5924_v31 = vld [vmem:[#allocation8 + $0x230] sm:$0xf0]  ;;  %v8409_v36 = vld [vmem:[#allocation8 + $0x204] sm:$0xf]  ;;  %v5867_v26 = vor.u32 %v8400_v16, %v5866_v15  ;;  %v8468_v28 = vld [vmem:[#allocation8 + $0x3d4] sm:$0xf0] }
  0x59   :  { %v5927_v32 = vor.u32 %v8413_v30, %v5924_v31  ;;  %v6052_v34 = vld [vmem:[#allocation8 + $0x330] sm:$0xf0]  ;;  %v8364_v30 = vld [vmem:[#allocation8 + $0x94] sm:$0xf0]  ;;  %v5850_v31 = vld [vmem:[#allocation8 + $0x188] sm:$0xf] }
  0x5a   :  { %1114 = vmatpush.bf16.msra.mxu0 %v5735_v40  ;;  %1127 = vmatpush.bf16.msra.mxu1 %v5863_v41  ;;  %v6055_v35 = vor.u32 %v8445_v33, %v6052_v34  ;;  %v5908_v37 = vld [vmem:[#allocation8 + $0x210] sm:$0xf0]  ;;  %v8352_v6 = vld [vmem:[#allocation8 + $0x34] sm:$0xf0] }
  0x5b   :  { %v5911_v38 = vor.u32 %v8409_v36, %v5908_v37  ;;  %v6036_v40 = vld [vmem:[#allocation8 + $0x310] sm:$0xf0]  ;;  %v5994_v37 = vld [vmem:[#allocation8 + $0x2a8] sm:$0xf]  ;;  %v8420_v12 = vld [vmem:[#allocation8 + $0x254] sm:$0xf0] }
  0x5c   :  { %1140 = vmatpush.bf16.msra.mxu2 %v5991_v48  ;;  %1153 = vmatpush.bf16.msra.mxu3 %v6119_v49  ;;  %v6039_v41 = vor.u32 %v8441_v39, %v6036_v40  ;;  %v8432_v40 = vld [vmem:[#allocation8 + $0x2b4] sm:$0xf0] }
  0x5d   :  { %v5995_v47 = vor.u32 %v8432_v40, %v5994_v37  ;;  %v8370_v37 = vld [vmem:[#allocation8 + $0xcc] sm:$0xf] }
  0x5e   :  { %1115 = vmatpush.bf16.msra.mxu0 %v5719_v52  ;;  %1128 = vmatpush.bf16.msra.mxu1 %v5847_v53  ;;  %v8408_v52 = vld [vmem:[#allocation8 + $0x1f4] sm:$0xf0] }
  0x5f   :  { %v5899_v58 = vor.u32 %v8408_v52, %v5898_v51  ;;  %v6106_v51 = vld [vmem:[#allocation8 + $0x388] sm:$0xf]  ;;  %v8460_v52 = vld [vmem:[#allocation8 + $0x394] sm:$0xf0] }
  0x60   :  { %1141 = vmatpush.bf16.msra.mxu2 %v5975_v60  ;;  %1154 = vmatpush.bf16.msra.mxu3 %v6103_v61  ;;  %v8372_v60 = vld [vmem:[#allocation8 + $0xd4] sm:$0xf0] }
  0x61   :  { %v5755_v3 = vor.u32 %v8372_v60, %v5754_v59  ;;  %v6107_v60 = vor.u32 %v8460_v52, %v6106_v51 }
  0x62   :  { %1116 = vmatpush.bf16.msra.mxu0 %v5703_v62  ;;  %1129 = vmatpush.bf16.msra.mxu1 %v5831_v63  ;;  %v5882_v63 = vld [vmem:[#allocation8 + $0x1c8] sm:$0xf] }
  0x64   :  { %1142 = vmatpush.bf16.msra.mxu2 %v5959_v9  ;;  %1155 = vmatpush.bf16.msra.mxu3 %v6087_v11  ;;  %v5883_v11 = vor.u32 %v8404_v0, %v5882_v63  ;;  %v5962_v63 = vld [vmem:[#allocation8 + $0x268] sm:$0xf]  ;;  %v8424_v0 = vld [vmem:[#allocation8 + $0x274] sm:$0xf0] }
  0x66   :  { %1117 = vmatpush.bf16.msra.mxu0 %v5687_v4  ;;  %1130 = vmatpush.bf16.msra.mxu1 %v5815_v5  ;;  %v6026_v4 = vld [vmem:[#allocation8 + $0x2e8] sm:$0xf]  ;;  %v8440_v5 = vld [vmem:[#allocation8 + $0x2f4] sm:$0xf0] }
  0x67   :  { %v6027_v19 = vor.u32 %v8440_v5, %v6026_v4  ;;  %v5674_v5 = vld [vmem:[#allocation8 + $0x28] sm:$0xf] }
  0x68   :  { %1143 = vmatpush.bf16.msra.mxu2 %v5943_v21  ;;  %1156 = vmatpush.bf16.msra.mxu3 %v6071_v23  ;;  %v8436_v23 = vld [vmem:[#allocation8 + $0x2d4] sm:$0xf0]  ;;  %v5675_v15 = vor.u32 %v8352_v6, %v5674_v5  ;;  %v8362_v5 = vld [vmem:[#allocation8 + $0x8c] sm:$0xf]  ;;  %v5724_v6 = vld [vmem:[#allocation8 + $0x98] sm:$0xf0] }
  0x6a   :  { %1118 = vmatpush.bf16.msra.mxu0 %v5671_v14  ;;  %1131 = vmatpush.bf16.msra.mxu1 %v5799_v17  ;;  %v8368_v14 = vld [vmem:[#allocation8 + $0xb4] sm:$0xf0] }
  0x6b   :  { %v5739_v21 = vor.u32 %v8368_v14, %v5738_v13  ;;  %v6074_v13 = vld [vmem:[#allocation8 + $0x348] sm:$0xf]  ;;  %v8452_v14 = vld [vmem:[#allocation8 + $0x354] sm:$0xf0] }
  0x6c   :  { %1144 = vmatpush.bf16.msra.mxu2 %v5927_v32  ;;  %1157 = vmatpush.bf16.msra.mxu3 %v6055_v35  ;;  %v8396_v32 = vld [vmem:[#allocation8 + $0x194] sm:$0xf0]  ;;  %v6011_v35 = vor.u32 %v8436_v23, %v6010_v22  ;;  %v5772_v22 = vld [vmem:[#allocation8 + $0xf8] sm:$0xf0] }
  0x6d   :  { %v5851_v39 = vor.u32 %v8396_v32, %v5850_v31  ;;  %v6058_v31 = vld [vmem:[#allocation8 + $0x328] sm:$0xf]  ;;  %v8448_v32 = vld [vmem:[#allocation8 + $0x334] sm:$0xf0] }
  0x6e   :  { %1119 = vmatpush.bf16.msra.mxu0 %v5655_v27  ;;  %1132 = vmatpush.bf16.msra.mxu1 %v5783_v29  ;;  %v6138_v27 = vld [vmem:[#allocation8 + $0x3c8] sm:$0xf] }
  0x6f   :  { %v5722_v29 = vld [vmem:[#allocation8 + $0x88] sm:$0xf]  ;;  %v6139_v36 = vor.u32 %v8468_v28, %v6138_v27  ;;  %v8406_v27 = vld [vmem:[#allocation8 + $0x1ec] sm:$0xf]  ;;  %v5900_v28 = vld [vmem:[#allocation8 + $0x1f8] sm:$0xf0] }
  0x70   :  { %1145 = vmatpush.bf16.msra.mxu2 %v5911_v38  ;;  %1158 = vmatpush.bf16.msra.mxu3 %v6039_v41  ;;  %v5723_v38 = vor.u32 %v8364_v30, %v5722_v29  ;;  %v6122_v41 = vld [vmem:[#allocation8 + $0x3a8] sm:$0xf]  ;;  %v8416_v30 = vld [vmem:[#allocation8 + $0x234] sm:$0xf0] }
  0x71   :  { %v5930_v29 = vld [vmem:[#allocation8 + $0x228] sm:$0xf] }
  0x72   :  { %v5931_v40 = vor.u32 %v8416_v30, %v5930_v29 }
  0xae   :  { %v231_v45 = vpop.f32.mrf.mxu0  ;;  %v244_v46 = vpop.f32.mrf.mxu1 }
  0xaf   :  { %v232_v48 = vadd.f32 %v231_v45, %v145_v43  ;;  %v245_v49 = vadd.f32 %v244_v46, %v146_v44  ;;  %v5706_v43 = vld [vmem:[#allocation8 + $0x68] sm:$0xf]  ;;  %v8360_v44 = vld [vmem:[#allocation8 + $0x74] sm:$0xf0] }
  0xb0   :  { %v5834_v45 = vld [vmem:[#allocation8 + $0x168] sm:$0xf]  ;;  %v8392_v46 = vld [vmem:[#allocation8 + $0x174] sm:$0xf0] }
  0xb1   :  { %v274_v53 = vmax.f32 %v232_v48, 0.0  ;;  %v275_v54 = vmax.f32 %v245_v49, 0.0  ;;  %v6123_v48 = vor.u32 %v8464_v42, %v6122_v41  ;;  %v5978_v49 = vld [vmem:[#allocation8 + $0x288] sm:$0xf]  ;;  %v6059_v41 = vor.u32 %v8448_v32, %v6058_v31  ;;  %v5884_v42 = vld [vmem:[#allocation8 + $0x1d8] sm:$0xf0] }
  0xb2   :  { %v5979_v59 = vor.u32 %v8428_v50, %v5978_v49  ;;  %v8470_v49 = vld [vmem:[#allocation8 + $0x3ec] sm:$0xf]  ;;  %v6156_v50 = vld [vmem:[#allocation8 + $0x3f8] sm:$0xf0] }
  0xb3   :  { %v9315_v61 = vpack.c.bf16 %v274_v53, %v274_v53  ;;  %v9317_v62 = vpack.c.bf16 %v275_v54, %v275_v54  ;;  %v5707_v53 = vor.u32 %v8360_v44, %v5706_v43  ;;  %v5835_v54 = vor.u32 %v8392_v46, %v5834_v45  ;;  %v5914_v43 = vld [vmem:[#allocation8 + $0x208] sm:$0xf]  ;;  %v8412_v44 = vld [vmem:[#allocation8 + $0x214] sm:$0xf0]  ;;  %v8354_v31 = vld [vmem:[#allocation8 + $0x4c] sm:$0xf] }
  0xb4   :  { %v6042_v45 = vld [vmem:[#allocation8 + $0x308] sm:$0xf]  ;;  %v8444_v46 = vld [vmem:[#allocation8 + $0x314] sm:$0xf0]  ;;  %v5692_v32 = vld [vmem:[#allocation8 + $0x58] sm:$0xf0] }
  0xb5   :  { %1068 = vmatmul.bf16.vlgmr.msrb.gmra.mxu0 %v9315_v61  ;;  %1081 = vmatmul.bf16.vlgmr.msrb.gmra.mxu1 %v9317_v62 }
  0xb6   :  { %v257_v1 = vpop.f32.mrf.mxu2  ;;  %v270_v2 = vpop.f32.mrf.mxu3  ;;  %1164 = vmatpush.bf16.msrb.mxu0 %v5771_v57  ;;  %1177 = vmatpush.bf16.msrb.mxu1 %v5899_v58  ;;  %v5818_v57 = vld [vmem:[#allocation8 + $0x148] sm:$0xf]  ;;  %v8388_v58 = vld [vmem:[#allocation8 + $0x154] sm:$0xf0] }
  0xb7   :  { %v258_v7 = vadd.f32 %v257_v1, %v147_v55  ;;  %v271_v8 = vadd.f32 %v270_v2, %v148_v56  ;;  %v233_v9 = vpop.f32.mrf.mxu0  ;;  %v246_v10 = vpop.f32.mrf.mxu1  ;;  %v5690_v55 = vld [vmem:[#allocation8 + $0x48] sm:$0xf]  ;;  %v8356_v56 = vld [vmem:[#allocation8 + $0x54] sm:$0xf0]  ;;  %v5819_v4 = vor.u32 %v8388_v58, %v5818_v57  ;;  %v8398_v57 = vld [vmem:[#allocation8 + $0x1ac] sm:$0xf] }
  0xb8   :  { %v6090_v1 = vld [vmem:[#allocation8 + $0x368] sm:$0xf]  ;;  %v8456_v2 = vld [vmem:[#allocation8 + $0x374] sm:$0xf0]  ;;  %v5963_v9 = vor.u32 %v8424_v0, %v5962_v63  ;;  %v5868_v58 = vld [vmem:[#allocation8 + $0x1b8] sm:$0xf0] }
  0xb9   :  { %v276_v17 = vmax.f32 %v258_v7, 0.0  ;;  %v277_v18 = vmax.f32 %v271_v8, 0.0  ;;  %v5802_v7 = vld [vmem:[#allocation8 + $0x128] sm:$0xf]  ;;  %v8384_v8 = vld [vmem:[#allocation8 + $0x134] sm:$0xf0]  ;;  %v6091_v10 = vor.u32 %v8456_v2, %v6090_v1 }
  0xba   :  { %1165 = vmatpush.bf16.msrb.mxu0 %v5755_v3  ;;  %1178 = vmatpush.bf16.msrb.mxu1 %v5883_v11  ;;  %v5691_v3 = vor.u32 %v8356_v56, %v5690_v55  ;;  %v5946_v11 = vld [vmem:[#allocation8 + $0x248] sm:$0xf]  ;;  %v5803_v16 = vor.u32 %v8384_v8, %v5802_v7  ;;  %v6043_v55 = vor.u32 %v8444_v46, %v6042_v45  ;;  %v5740_v56 = vld [vmem:[#allocation8 + $0xb8] sm:$0xf0]  ;;  %v8434_v63 = vld [vmem:[#allocation8 + $0x2cc] sm:$0xf] }
  0xbb   :  { %v9321_v24 = vpack.c.bf16 %v276_v17, %v276_v17  ;;  %v9323_v25 = vpack.c.bf16 %v277_v18, %v277_v18  ;;  %v5658_v17 = vld [vmem:[#allocation8 + $0x8] sm:$0xf]  ;;  %v8348_v18 = vld [vmem:[#allocation8 + $0x14] sm:$0xf0]  ;;  %v5947_v23 = vor.u32 %v8420_v12, %v5946_v11  ;;  %v6012_v0 = vld [vmem:[#allocation8 + $0x2d8] sm:$0xf0] }
  0xbc   :  { %v8466_v1 = vld [vmem:[#allocation8 + $0x3cc] sm:$0xf]  ;;  %v6140_v2 = vld [vmem:[#allocation8 + $0x3d8] sm:$0xf0] }
  0xbd   :  { %1094 = vmatmul.bf16.vlgmr.msrb.gmra.mxu2 %v9321_v24  ;;  %1107 = vmatmul.bf16.vlgmr.msrb.gmra.mxu3 %v9323_v25  ;;  %v8394_v7 = vld [vmem:[#allocation8 + $0x18c] sm:$0xf]  ;;  %v5852_v8 = vld [vmem:[#allocation8 + $0x198] sm:$0xf0] }
  0xbe   :  { %1190 = vmatpush.bf16.msrb.mxu2 %v6027_v19  ;;  %1203 = vmatpush.bf16.msrb.mxu3 %v6155_v20  ;;  %v259_v33 = vpop.f32.mrf.mxu2  ;;  %v272_v34 = vpop.f32.mrf.mxu3  ;;  %v5786_v19 = vld [vmem:[#allocation8 + $0x108] sm:$0xf]  ;;  %v8380_v20 = vld [vmem:[#allocation8 + $0x114] sm:$0xf0]  ;;  %v8430_v11 = vld [vmem:[#allocation8 + $0x2ac] sm:$0xf] }
  0xbf   :  { %1166 = vmatpush.bf16.msrb.mxu0 %v5739_v21  ;;  %1179 = vmatpush.bf16.msrb.mxu1 %v5867_v26  ;;  %v8374_v21 = vld [vmem:[#allocation8 + $0xec] sm:$0xf]  ;;  %v6075_v26 = vor.u32 %v8452_v14, %v6074_v13  ;;  %v5659_v33 = vor.u32 %v8348_v18, %v5658_v17  ;;  %v5787_v34 = vor.u32 %v8380_v20, %v5786_v19  ;;  %v5996_v12 = vld [vmem:[#allocation8 + $0x2b8] sm:$0xf0] }
  0xc0   :  { %v8462_v13 = vld [vmem:[#allocation8 + $0x3ac] sm:$0xf]  ;;  %v6124_v14 = vld [vmem:[#allocation8 + $0x3b8] sm:$0xf0] }
  0xc1   :  { %v8358_v17 = vld [vmem:[#allocation8 + $0x6c] sm:$0xf]  ;;  %v5708_v18 = vld [vmem:[#allocation8 + $0x78] sm:$0xf0] }
  0xc2   :  { %1191 = vmatpush.bf16.msrb.mxu2 %v6011_v35  ;;  %1204 = vmatpush.bf16.msrb.mxu3 %v6139_v36  ;;  %v5775_v35 = vor.u32 %v8374_v21, %v5772_v22  ;;  %v5903_v36 = vor.u32 %v8406_v27, %v5900_v28  ;;  %v8390_v19 = vld [vmem:[#allocation8 + $0x16c] sm:$0xf]  ;;  %v5836_v20 = vld [vmem:[#allocation8 + $0x178] sm:$0xf0]  ;;  %v5999_v21 = vor.u32 %v8430_v11, %v5996_v12  ;;  %v6258_v11 = vld [vmem:[#allocation8 + $0x4c0] sm:$0xf] }
  0xc3   :  { %1167 = vmatpush.bf16.msrb.mxu0 %v5723_v38  ;;  %1180 = vmatpush.bf16.msrb.mxu1 %v5851_v39  ;;  %v5756_v38 = vld [vmem:[#allocation8 + $0xd8] sm:$0xf0]  ;;  %v8402_v39 = vld [vmem:[#allocation8 + $0x1cc] sm:$0xf]  ;;  %v6127_v22 = vor.u32 %v8462_v13, %v6124_v14  ;;  %v5711_v29 = vor.u32 %v8358_v17, %v5708_v18  ;;  %v5839_v30 = vor.u32 %v8390_v19, %v5836_v20  ;;  %v8531_v17 = vld [vmem:[#allocation8 + $0x5cc] sm:$0xf0] }
  0xc4   :  { %v5759_v51 = vor.u32 %v8370_v37, %v5756_v38  ;;  %v5887_v52 = vor.u32 %v8402_v39, %v5884_v42  ;;  %v8458_v27 = vld [vmem:[#allocation8 + $0x38c] sm:$0xf]  ;;  %v6108_v28 = vld [vmem:[#allocation8 + $0x398] sm:$0xf0] }
  0xc5   :  { %1120 = vmatmul.bf16.vlgmr.msra.gmra.mxu0 %v9315_v61  ;;  %1133 = vmatmul.bf16.vlgmr.msra.gmra.mxu1 %v9317_v62  ;;  %v8422_v37 = vld [vmem:[#allocation8 + $0x26c] sm:$0xf]  ;;  %v5964_v38 = vld [vmem:[#allocation8 + $0x278] sm:$0xf0] }
  0xc6   :  { %1192 = vmatpush.bf16.msrb.mxu2 %v5995_v47  ;;  %1205 = vmatpush.bf16.msrb.mxu3 %v6123_v48  ;;  %v8438_v47 = vld [vmem:[#allocation8 + $0x2ec] sm:$0xf]  ;;  %v6028_v48 = vld [vmem:[#allocation8 + $0x2f8] sm:$0xf0] }
  0xc7   :  { %1168 = vmatpush.bf16.msrb.mxu0 %v5707_v53  ;;  %1181 = vmatpush.bf16.msrb.mxu1 %v5835_v54  ;;  %v8366_v53 = vld [vmem:[#allocation8 + $0xac] sm:$0xf]  ;;  %v5915_v54 = vor.u32 %v8412_v44, %v5914_v43  ;;  %v5676_v44 = vld [vmem:[#allocation8 + $0x38] sm:$0xf0] }
  0xc8   :  { %v8454_v39 = vld [vmem:[#allocation8 + $0x36c] sm:$0xf]  ;;  %v5804_v46 = vld [vmem:[#allocation8 + $0x138] sm:$0xf0] }
  0xc9   :  { %v8350_v43 = vld [vmem:[#allocation8 + $0x2c] sm:$0xf]  ;;  %v5916_v18 = vld [vmem:[#allocation8 + $0x218] sm:$0xf0] }
  0xca   :  { %1193 = vmatpush.bf16.msrb.mxu2 %v5979_v59  ;;  %1206 = vmatpush.bf16.msrb.mxu3 %v6107_v60  ;;  %v6031_v59 = vor.u32 %v8438_v47, %v6028_v48  ;;  %v6159_v60 = vor.u32 %v8470_v49, %v6156_v50  ;;  %v8382_v45 = vld [vmem:[#allocation8 + $0x12c] sm:$0xf]  ;;  %v5967_v47 = vor.u32 %v8422_v37, %v5964_v38  ;;  %v5948_v50 = vld [vmem:[#allocation8 + $0x258] sm:$0xf0]  ;;  %v6226_v37 = vld [vmem:[#allocation8 + $0x480] sm:$0xf] }
  0xcb   :  { %1169 = vmatpush.bf16.msrb.mxu0 %v5691_v3  ;;  %1182 = vmatpush.bf16.msrb.mxu1 %v5819_v4  ;;  %v5743_v3 = vor.u32 %v8366_v53, %v5740_v56  ;;  %v5871_v4 = vor.u32 %v8398_v57, %v5868_v58  ;;  %v8418_v49 = vld [vmem:[#allocation8 + $0x24c] sm:$0xf]  ;;  %v5679_v53 = vor.u32 %v8350_v43, %v5676_v44  ;;  %v5660_v56 = vld [vmem:[#allocation8 + $0x18] sm:$0xf0]  ;;  %v8487_v44 = vld [vmem:[#allocation8 + $0x46c] sm:$0xf0] }
  0xcc   :  { %v8378_v57 = vld [vmem:[#allocation8 + $0x10c] sm:$0xf]  ;;  %v5788_v58 = vld [vmem:[#allocation8 + $0x118] sm:$0xf0] }
  0xcd   :  { %1146 = vmatmul.bf16.vlgmr.msra.gmra.mxu2 %v9321_v24  ;;  %1159 = vmatmul.bf16.vlgmr.msra.gmra.mxu3 %v9323_v25  ;;  %v8442_v19 = vld [vmem:[#allocation8 + $0x30c] sm:$0xf]  ;;  %v6044_v20 = vld [vmem:[#allocation8 + $0x318] sm:$0xf0] }
  0xce   :  { %1194 = vmatpush.bf16.msrb.mxu2 %v5963_v9  ;;  %1207 = vmatpush.bf16.msrb.mxu3 %v6091_v10  ;;  %v6015_v9 = vor.u32 %v8434_v63, %v6012_v0  ;;  %v6143_v10 = vor.u32 %v8466_v1, %v6140_v2  ;;  %v5951_v63 = vor.u32 %v8418_v49, %v5948_v50  ;;  %v8503_v1 = vld [vmem:[#allocation8 + $0x4ec] sm:$0xf0]  ;;  %v6402_v2 = vld [vmem:[#allocation8 + $0x5e0] sm:$0xf] }
  0xcf   :  { %1170 = vmatpush.bf16.msrb.mxu0 %v5675_v15  ;;  %1183 = vmatpush.bf16.msrb.mxu1 %v5803_v16  ;;  %v5727_v15 = vor.u32 %v8362_v5, %v5724_v6  ;;  %v5855_v16 = vor.u32 %v8394_v7, %v5852_v8  ;;  %v8446_v5 = vld [vmem:[#allocation8 + $0x32c] sm:$0xf]  ;;  %v6060_v6 = vld [vmem:[#allocation8 + $0x338] sm:$0xf0]  ;;  %v5791_v8 = vor.u32 %v8378_v57, %v5788_v58  ;;  %v8483_v50 = vld [vmem:[#allocation8 + $0x44c] sm:$0xf0] }
  0xd0   :  { %v6063_v14 = vor.u32 %v8446_v5, %v6060_v6  ;;  %v8475_v57 = vld [vmem:[#allocation8 + $0x40c] sm:$0xf0]  ;;  %v8501_v58 = vld [vmem:[#allocation8 + $0x4e4] sm:$0xf]  ;;  %v6306_v6 = vld [vmem:[#allocation8 + $0x520] sm:$0xf] }
  0xd2   :  { %1195 = vmatpush.bf16.msrb.mxu2 %v5947_v23  ;;  %1208 = vmatpush.bf16.msrb.mxu3 %v6075_v26  ;;  %v8426_v23 = vld [vmem:[#allocation8 + $0x28c] sm:$0xf]  ;;  %v5980_v26 = vld [vmem:[#allocation8 + $0x298] sm:$0xf0] }
  0xd3   :  { %1171 = vmatpush.bf16.msrb.mxu0 %v5659_v33  ;;  %1184 = vmatpush.bf16.msrb.mxu1 %v5787_v34  ;;  %v8386_v33 = vld [vmem:[#allocation8 + $0x14c] sm:$0xf]  ;;  %v5820_v34 = vld [vmem:[#allocation8 + $0x158] sm:$0xf0] }
  0xd4   :  { %v5823_v42 = vor.u32 %v8386_v33, %v5820_v34  ;;  %v6514_v34 = vld [vmem:[#allocation8 + $0x6c0] sm:$0xf] }
  0xd6   :  { %1196 = vmatpush.bf16.msrb.mxu2 %v5931_v40  ;;  %1209 = vmatpush.bf16.msrb.mxu3 %v6059_v41  ;;  %v6092_v40 = vld [vmem:[#allocation8 + $0x378] sm:$0xf0]  ;;  %v5695_v41 = vor.u32 %v8354_v31, %v5692_v32  ;;  %v6370_v31 = vld [vmem:[#allocation8 + $0x5a0] sm:$0xf]  ;;  %v8527_v32 = vld [vmem:[#allocation8 + $0x5ac] sm:$0xf0] }
  0xd7   :  { %1216 = vmatpush.bf16.msra.mxu0 %v5775_v35  ;;  %1229 = vmatpush.bf16.msra.mxu1 %v5903_v36  ;;  %v5983_v35 = vor.u32 %v8426_v23, %v5980_v26  ;;  %v6111_v36 = vor.u32 %v8458_v27, %v6108_v28  ;;  %v6095_v48 = vor.u32 %v8454_v39, %v6092_v40  ;;  %v8491_v39 = vld [vmem:[#allocation8 + $0x48c] sm:$0xf0]  ;;  %v6354_v40 = vld [vmem:[#allocation8 + $0x580] sm:$0xf] }
  0xd8   :  { %1172 = vmatmul.bf16.vlgmr.msrb.gmra.mxu0 %v9315_v61  ;;  %1185 = vmatmul.bf16.vlgmr.msrb.gmra.mxu1 %v9317_v62  ;;  %v6047_v28 = vor.u32 %v8442_v19, %v6044_v20  ;;  %v6371_v38 = vor.u32 %v8527_v32, %v6370_v31  ;;  %v8555_v19 = vld [vmem:[#allocation8 + $0x68c] sm:$0xf0]  ;;  %v8481_v32 = vld [vmem:[#allocation8 + $0x444] sm:$0xf] }
  0xda   :  { %1197 = vmatpush.bf16.msrb.mxu2 %v5915_v54  ;;  %1210 = vmatpush.bf16.msrb.mxu3 %v6043_v55  ;;  %v5807_v54 = vor.u32 %v8382_v45, %v5804_v46  ;;  %v8346_v55 = vld [vmem:[#allocation8 + $0xc] sm:$0xf]  ;;  %v6338_v45 = vld [vmem:[#allocation8 + $0x560] sm:$0xf]  ;;  %v8519_v46 = vld [vmem:[#allocation8 + $0x56c] sm:$0xf0] }
  0xdb   :  { %1217 = vmatpush.bf16.msra.mxu0 %v5759_v51  ;;  %1230 = vmatpush.bf16.msra.mxu1 %v5887_v52  ;;  %v8450_v51 = vld [vmem:[#allocation8 + $0x34c] sm:$0xf]  ;;  %v6076_v52 = vld [vmem:[#allocation8 + $0x358] sm:$0xf0]  ;;  %v5663_v7 = vor.u32 %v8346_v55, %v5660_v56  ;;  %v6339_v49 = vor.u32 %v8519_v46, %v6338_v45  ;;  %v6162_v56 = vld [vmem:[#allocation8 + $0x400] sm:$0xf] }
  0xdc   :  { %v6079_v0 = vor.u32 %v8450_v51, %v6076_v52  ;;  %v6322_v51 = vld [vmem:[#allocation8 + $0x540] sm:$0xf]  ;;  %v8515_v52 = vld [vmem:[#allocation8 + $0x54c] sm:$0xf0] }
  0xdd   :  { %1198 = vmatmul.bf16.vlgmr.msrb.gmra.mxu2 %v9321_v24  ;;  %1211 = vmatmul.bf16.vlgmr.msrb.gmra.mxu3 %v9323_v25  ;;  %v6434_v45 = vld [vmem:[#allocation8 + $0x620] sm:$0xf]  ;;  %v8543_v46 = vld [vmem:[#allocation8 + $0x62c] sm:$0xf0] }
  0xde   :  { %1242 = vmatpush.bf16.msra.mxu2 %v6031_v59  ;;  %1255 = vmatpush.bf16.msra.mxu3 %v6159_v60  ;;  %v8414_v59 = vld [vmem:[#allocation8 + $0x22c] sm:$0xf]  ;;  %v6274_v60 = vld [vmem:[#allocation8 + $0x4e0] sm:$0xf] }
  0xdf   :  { %1218 = vmatpush.bf16.msra.mxu0 %v5743_v3  ;;  %1231 = vmatpush.bf16.msra.mxu1 %v5871_v4  ;;  %v8535_v3 = vld [vmem:[#allocation8 + $0x5ec] sm:$0xf0]  ;;  %v5932_v4 = vld [vmem:[#allocation8 + $0x238] sm:$0xf0] }
  0xe0   :  { %v6403_v12 = vor.u32 %v8535_v3, %v6402_v2  ;;  %v5935_v13 = vor.u32 %v8414_v59, %v5932_v4  ;;  %v6276_v59 = vld [vmem:[#allocation8 + $0x4f0] sm:$0xf0]  ;;  %v8493_v3 = vld [vmem:[#allocation8 + $0x4a4] sm:$0xf] }
  0xe1   :  { %v6244_v4 = vld [vmem:[#allocation8 + $0x4b0] sm:$0xf0] }
  0xe2   :  { %1243 = vmatpush.bf16.msra.mxu2 %v6015_v9  ;;  %1256 = vmatpush.bf16.msra.mxu3 %v6143_v10  ;;  %v8410_v9 = vld [vmem:[#allocation8 + $0x20c] sm:$0xf]  ;;  %v6275_v10 = vor.u32 %v8503_v1, %v6274_v60  ;;  %v6163_v60 = vor.u32 %v8475_v57, %v6162_v56  ;;  %v6260_v1 = vld [vmem:[#allocation8 + $0x4d0] sm:$0xf0]  ;;  %v6247_v5 = vor.u32 %v8493_v3, %v6244_v4  ;;  %v8599_v56 = vld [vmem:[#allocation8 + $0x7ec] sm:$0xf0] }
  0xe3   :  { %1219 = vmatpush.bf16.msra.mxu0 %v5727_v15  ;;  %1232 = vmatpush.bf16.msra.mxu1 %v5855_v16  ;;  %v8499_v15 = vld [vmem:[#allocation8 + $0x4cc] sm:$0xf0]  ;;  %v6386_v16 = vld [vmem:[#allocation8 + $0x5c0] sm:$0xf]  ;;  %v5919_v27 = vor.u32 %v8410_v9, %v5916_v18  ;;  %v8517_v57 = vld [vmem:[#allocation8 + $0x564] sm:$0xf] }
  0xe4   :  { %v6259_v23 = vor.u32 %v8499_v15, %v6258_v11  ;;  %v6387_v26 = vor.u32 %v8531_v17, %v6386_v16  ;;  %v8489_v11 = vld [vmem:[#allocation8 + $0x484] sm:$0xf]  ;;  %v8507_v15 = vld [vmem:[#allocation8 + $0x50c] sm:$0xf0]  ;;  %v6482_v16 = vld [vmem:[#allocation8 + $0x680] sm:$0xf] }
  0xe5   :  { %v6483_v20 = vor.u32 %v8555_v19, %v6482_v16  ;;  %v8595_v3 = vld [vmem:[#allocation8 + $0x7cc] sm:$0xf0]  ;;  %v6308_v16 = vld [vmem:[#allocation8 + $0x530] sm:$0xf0] }
  0xe6   :  { %1244 = vmatpush.bf16.msra.mxu2 %v5999_v21  ;;  %1257 = vmatpush.bf16.msra.mxu3 %v6127_v22  ;;  %v6530_v21 = vld [vmem:[#allocation8 + $0x6e0] sm:$0xf]  ;;  %v8567_v22 = vld [vmem:[#allocation8 + $0x6ec] sm:$0xf0] }
  0xe7   :  { %1220 = vmatpush.bf16.msra.mxu0 %v5711_v29  ;;  %1233 = vmatpush.bf16.msra.mxu1 %v5839_v30  ;;  %v6242_v29 = vld [vmem:[#allocation8 + $0x4a0] sm:$0xf]  ;;  %v8495_v30 = vld [vmem:[#allocation8 + $0x4ac] sm:$0xf0]  ;;  %v6531_v33 = vor.u32 %v8567_v22, %v6530_v21  ;;  %v8485_v21 = vld [vmem:[#allocation8 + $0x464] sm:$0xf] }
  0xe8   :  { %v6212_v22 = vld [vmem:[#allocation8 + $0x470] sm:$0xf0] }
  0xea   :  { %1245 = vmatpush.bf16.msra.mxu2 %v5983_v35  ;;  %1258 = vmatpush.bf16.msra.mxu3 %v6111_v36  ;;  %v8563_v35 = vld [vmem:[#allocation8 + $0x6cc] sm:$0xf0]  ;;  %v6243_v36 = vor.u32 %v8495_v30, %v6242_v29  ;;  %v6215_v29 = vor.u32 %v8485_v21, %v6212_v22  ;;  %v6500_v21 = vld [vmem:[#allocation8 + $0x6b0] sm:$0xf0] }
  0xeb   :  { %1221 = vmatpush.bf16.msra.mxu0 %v5695_v41  ;;  %1234 = vmatpush.bf16.msra.mxu1 %v5823_v42  ;;  %v8523_v41 = vld [vmem:[#allocation8 + $0x58c] sm:$0xf0]  ;;  %v6210_v42 = vld [vmem:[#allocation8 + $0x460] sm:$0xf] }
  0xec   :  { %v6355_v43 = vor.u32 %v8523_v41, %v6354_v40  ;;  %v8477_v41 = vld [vmem:[#allocation8 + $0x424] sm:$0xf] }
  0xee   :  { %1246 = vmatpush.bf16.msra.mxu2 %v5967_v47  ;;  %1259 = vmatpush.bf16.msra.mxu3 %v6095_v48  ;;  %v6211_v47 = vor.u32 %v8487_v44, %v6210_v42  ;;  %v6194_v48 = vld [vmem:[#allocation8 + $0x440] sm:$0xf]  ;;  %v6372_v42 = vld [vmem:[#allocation8 + $0x5b0] sm:$0xf0] }
  0xef   :  { %1222 = vmatpush.bf16.msra.mxu0 %v5679_v53  ;;  %1235 = vmatpush.bf16.msra.mxu1 %v5807_v54  ;;  %v6178_v53 = vld [vmem:[#allocation8 + $0x420] sm:$0xf]  ;;  %v8479_v54 = vld [vmem:[#allocation8 + $0x42c] sm:$0xf0] }
  0xf0   :  { %v6179_v55 = vor.u32 %v8479_v54, %v6178_v53  ;;  %v8539_v53 = vld [vmem:[#allocation8 + $0x60c] sm:$0xf0]  ;;  %v6658_v54 = vld [vmem:[#allocation8 + $0x7e0] sm:$0xf] }
  0xf2   :  { %1247 = vmatpush.bf16.msra.mxu2 %v5951_v63  ;;  %1260 = vmatpush.bf16.msra.mxu3 %v6079_v0  ;;  %v6279_v63 = vor.u32 %v8501_v58, %v6276_v59  ;;  %v8497_v0 = vld [vmem:[#allocation8 + $0x4c4] sm:$0xf]  ;;  %v6340_v58 = vld [vmem:[#allocation8 + $0x570] sm:$0xf0]  ;;  %v6659_v59 = vor.u32 %v8599_v56, %v6658_v54  ;;  %v6282_v56 = vld [vmem:[#allocation8 + $0x4e8] sm:$0xf] }
  0xf3   :  { %1223 = vmatpush.bf16.msra.mxu0 %v5663_v7  ;;  %1236 = vmatpush.bf16.msra.mxu1 %v5791_v8  ;;  %v6263_v2 = vor.u32 %v8497_v0, %v6260_v1  ;;  %v8511_v7 = vld [vmem:[#allocation8 + $0x52c] sm:$0xf0]  ;;  %v6498_v8 = vld [vmem:[#allocation8 + $0x6a0] sm:$0xf]  ;;  %v6532_v0 = vld [vmem:[#allocation8 + $0x6f0] sm:$0xf0] }
  0xf4   :  { %v6307_v9 = vor.u32 %v8511_v7, %v6306_v6  ;;  %v6324_v6 = vld [vmem:[#allocation8 + $0x550] sm:$0xf0]  ;;  %v8561_v7 = vld [vmem:[#allocation8 + $0x6c4] sm:$0xf] }
  0xf5   :  { %v6436_v54 = vld [vmem:[#allocation8 + $0x630] sm:$0xf0] }
  0xf6   :  { %1248 = vmatpush.bf16.msra.mxu2 %v5935_v13  ;;  %1261 = vmatpush.bf16.msra.mxu3 %v6063_v14  ;;  %v6290_v14 = vld [vmem:[#allocation8 + $0x500] sm:$0xf] }
  0xf7   :  { %2056 = vmatpush.bf16.msrb.mxu0 %v6275_v10  ;;  %2069 = vmatpush.bf16.msrb.mxu1 %v6403_v12  ;;  %v8559_v10 = vld [vmem:[#allocation8 + $0x6ac] sm:$0xf0]  ;;  %v6228_v12 = vld [vmem:[#allocation8 + $0x490] sm:$0xf0]  ;;  %v6291_v18 = vor.u32 %v8507_v15, %v6290_v14  ;;  %v8509_v15 = vld [vmem:[#allocation8 + $0x524] sm:$0xf] }
  0xf8   :  { %1224 = vmatmul.bf16.vlgmr.msra.gmra.mxu0 %v9315_v61  ;;  %1237 = vmatmul.bf16.vlgmr.msra.gmra.mxu1 %v9317_v62  ;;  %v6515_v61 = vor.u32 %v8563_v35, %v6514_v34  ;;  %v6227_v62 = vor.u32 %v8491_v39, %v6226_v37  ;;  %v6499_v13 = vor.u32 %v8559_v10, %v6498_v8  ;;  %v8529_v34 = vld [vmem:[#allocation8 + $0x5c4] sm:$0xf]  ;;  %v6388_v35 = vld [vmem:[#allocation8 + $0x5d0] sm:$0xf0]  ;;  %v8547_v39 = vld [vmem:[#allocation8 + $0x64c] sm:$0xf0] }
  0xf9   :  { %v6231_v17 = vor.u32 %v8489_v11, %v6228_v12  ;;  %v6391_v37 = vor.u32 %v8529_v34, %v6388_v35  ;;  %v9339_v11 = vld [vmem:[#allocation10] sm:$0xf] }
  0xfa   :  { %1249 = vmatpush.bf16.msra.mxu2 %v5919_v27  ;;  %1262 = vmatpush.bf16.msra.mxu3 %v6047_v28  ;;  %v6466_v27 = vld [vmem:[#allocation8 + $0x660] sm:$0xf]  ;;  %v8551_v28 = vld [vmem:[#allocation8 + $0x66c] sm:$0xf0] }
  0xfb   :  { %2057 = vmatpush.bf16.msrb.mxu0 %v6259_v23  ;;  %2070 = vmatpush.bf16.msrb.mxu1 %v6387_v26  ;;  %v8533_v23 = vld [vmem:[#allocation8 + $0x5e4] sm:$0xf]  ;;  %v6404_v26 = vld [vmem:[#allocation8 + $0x5f0] sm:$0xf0]  ;;  %v6467_v31 = vor.u32 %v8551_v28, %v6466_v27  ;;  %v6626_v12 = vld [vmem:[#allocation8 + $0x7a0] sm:$0xf] }
  0xfc   :  { %v6407_v30 = vor.u32 %v8533_v23, %v6404_v26  ;;  %v412_v23 = vperm.slane %v9339_v11, 0  ;;  %v6610_v26 = vld [vmem:[#allocation8 + $0x780] sm:$0xf]  ;;  %v8587_v27 = vld [vmem:[#allocation8 + $0x78c] sm:$0xf0] }
  0xfd   :  { %1250 = vmatmul.bf16.vlgmr.msra.gmra.mxu2 %v9321_v24  ;;  %1263 = vmatmul.bf16.vlgmr.msra.gmra.mxu3 %v9323_v25  ;;  %v6195_v24 = vor.u32 %v8483_v50, %v6194_v48  ;;  %v6323_v25 = vor.u32 %v8515_v52, %v6322_v51  ;;  %v8473_v48 = vld [vmem:[#allocation8 + $0x404] sm:$0xf]  ;;  %v6356_v51 = vld [vmem:[#allocation8 + $0x590] sm:$0xf0]  ;;  %v6611_v28 = vor.u32 %v8587_v27, %v6610_v26 }
  0xfe   :  { %2082 = vmatpush.bf16.msrb.mxu2 %v6531_v33  ;;  %v6196_v33 = vld [vmem:[#allocation8 + $0x450] sm:$0xf0]  ;;  %v8521_v50 = vld [vmem:[#allocation8 + $0x584] sm:$0xf]  ;;  %2095 = vmatpush.bf16.msrb.mxu3 %v6659_v59 }
  0xff   :  { %2058 = vmatpush.bf16.msrb.mxu0 %v6243_v36  ;;  %2071 = vmatpush.bf16.msrb.mxu1 %v6371_v38  ;;  %v6199_v36 = vor.u32 %v8481_v32, %v6196_v33  ;;  %v6450_v38 = vld [vmem:[#allocation8 + $0x640] sm:$0xf]  ;;  %v6484_v33 = vld [vmem:[#allocation8 + $0x690] sm:$0xf0] }
 0x100   :  { %v6451_v40 = vor.u32 %v8547_v39, %v6450_v38  ;;  %v8549_v39 = vld [vmem:[#allocation8 + $0x664] sm:$0xf] }
 0x102   :  { %2083 = vmatpush.bf16.msrb.mxu2 %v6515_v61  ;;  %v6180_v61 = vld [vmem:[#allocation8 + $0x430] sm:$0xf0] }
 0x103   :  { %2059 = vmatpush.bf16.msrb.mxu0 %v6227_v62  ;;  %2072 = vmatpush.bf16.msrb.mxu1 %v6355_v43  ;;  %v8525_v62 = vld [vmem:[#allocation8 + $0x5a4] sm:$0xf]  ;;  %v6183_v43 = vor.u32 %v8477_v41, %v6180_v61 }
 0x104   :  { %v6375_v44 = vor.u32 %v8525_v62, %v6372_v42 }
 0x106   :  { %2084 = vmatpush.bf16.msrb.mxu2 %v6499_v13  ;;  %v8591_v13 = vld [vmem:[#allocation8 + $0x7ac] sm:$0xf0] }
 0x107   :  { %2060 = vmatpush.bf16.msrb.mxu0 %v6211_v47  ;;  %2073 = vmatpush.bf16.msrb.mxu1 %v6339_v49  ;;  %v6435_v47 = vor.u32 %v8543_v46, %v6434_v45  ;;  %v6164_v49 = vld [vmem:[#allocation8 + $0x410] sm:$0xf0]  ;;  %v6627_v14 = vor.u32 %v8591_v13, %v6626_v12  ;;  %v8545_v46 = vld [vmem:[#allocation8 + $0x644] sm:$0xf] }
 0x108   :  { %v6167_v52 = vor.u32 %v8473_v48, %v6164_v49  ;;  %v6660_v13 = vld [vmem:[#allocation8 + $0x7f0] sm:$0xf0] }
 0x10a   :  { %2085 = vmatpush.bf16.msrb.mxu2 %v6483_v20  ;;  %v6311_v20 = vor.u32 %v8509_v15, %v6308_v16 }
 0x10b   :  { %2061 = vmatpush.bf16.msrb.mxu0 %v6195_v24  ;;  %2074 = vmatpush.bf16.msrb.mxu1 %v6323_v25  ;;  %v6359_v24 = vor.u32 %v8521_v50, %v6356_v51  ;;  %v6418_v25 = vld [vmem:[#allocation8 + $0x600] sm:$0xf] }
 0x10e   :  { %2086 = vmatpush.bf16.msrb.mxu2 %v6467_v31  ;;  %v8553_v31 = vld [vmem:[#allocation8 + $0x684] sm:$0xf] }
 0x10f   :  { %2062 = vmatpush.bf16.msrb.mxu0 %v6179_v55  ;;  %2075 = vmatpush.bf16.msrb.mxu1 %v6307_v9  ;;  %v6419_v55 = vor.u32 %v8539_v53, %v6418_v25  ;;  %v6516_v9 = vld [vmem:[#allocation8 + $0x6d0] sm:$0xf0]  ;;  %v6487_v34 = vor.u32 %v8553_v31, %v6484_v33  ;;  %v8541_v53 = vld [vmem:[#allocation8 + $0x624] sm:$0xf]  ;;  %v8492_v31 = vld [vmem:[#allocation8 + $0x494] sm:$0xf0] }
 0x110   :  { %v6519_v10 = vor.u32 %v8561_v7, %v6516_v9  ;;  %v8597_v7 = vld [vmem:[#allocation8 + $0x7e4] sm:$0xf]  ;;  %v6266_v9 = vld [vmem:[#allocation8 + $0x4c8] sm:$0xf]  ;;  %v6628_v33 = vld [vmem:[#allocation8 + $0x7b0] sm:$0xf0] }
 0x111   :  { %v6663_v16 = vor.u32 %v8597_v7, %v6660_v13  ;;  %v6170_v13 = vld [vmem:[#allocation8 + $0x408] sm:$0xf] }
 0x112   :  { %2087 = vmatpush.bf16.msrb.mxu2 %v6451_v40  ;;  %v6468_v40 = vld [vmem:[#allocation8 + $0x670] sm:$0xf0] }
 0x113   :  { %2063 = vmatpush.bf16.msrb.mxu0 %v6163_v60  ;;  %2076 = vmatpush.bf16.msrb.mxu1 %v6291_v18  ;;  %v6343_v60 = vor.u32 %v8517_v57, %v6340_v58  ;;  %v6471_v62 = vor.u32 %v8549_v39, %v6468_v40  ;;  %v8504_v57 = vld [vmem:[#allocation8 + $0x4f4] sm:$0xf0]  ;;  %v6439_v58 = vor.u32 %v8541_v53, %v6436_v54  ;;  %v6218_v39 = vld [vmem:[#allocation8 + $0x468] sm:$0xf]  ;;  %v8581_v53 = vld [vmem:[#allocation8 + $0x764] sm:$0xf] }
 0x114   :  { %v8488_v40 = vld [vmem:[#allocation8 + $0x474] sm:$0xf0]  ;;  %v6596_v54 = vld [vmem:[#allocation8 + $0x770] sm:$0xf0] }
 0x116   :  { %2088 = vmatpush.bf16.msrb.mxu2 %v6435_v47  ;;  %v6452_v47 = vld [vmem:[#allocation8 + $0x650] sm:$0xf0] }
 0x117   :  { %2108 = vmatpush.bf16.msra.mxu0 %v6279_v63  ;;  %2121 = vmatpush.bf16.msra.mxu1 %v6407_v30  ;;  %v8565_v63 = vld [vmem:[#allocation8 + $0x6e4] sm:$0xf]  ;;  %v6292_v30 = vld [vmem:[#allocation8 + $0x510] sm:$0xf0]  ;;  %v6455_v48 = vor.u32 %v8545_v46, %v6452_v47 }
 0x118   :  { %v6535_v1 = vor.u32 %v8565_v63, %v6532_v0  ;;  %v413_v0 = vperm.slane %v9339_v11, 1 }
 0x11a   :  { %2089 = vmatpush.bf16.msrb.mxu2 %v6419_v55 }
 0x11b   :  { %2109 = vmatpush.bf16.msra.mxu0 %v6263_v2  ;;  %2122 = vmatpush.bf16.msra.mxu1 %v6391_v37  ;;  %v6642_v2 = vld [vmem:[#allocation8 + $0x7c0] sm:$0xf]  ;;  %v8583_v37 = vld [vmem:[#allocation8 + $0x76c] sm:$0xf0] }
 0x11c   :  { %v6643_v4 = vor.u32 %v8595_v3, %v6642_v2  ;;  %v8571_v2 = vld [vmem:[#allocation8 + $0x70c] sm:$0xf0]  ;;  %v6283_v3 = vor.u32 %v8504_v57, %v6282_v56 }
 0x11e   :  { %2134 = vmatpush.bf16.msra.mxu2 %v6535_v1  ;;  %2096 = vmatpush.bf16.msrb.mxu3 %v6643_v4  ;;  %v6546_v1 = vld [vmem:[#allocation8 + $0x700] sm:$0xf] }
 0x11f   :  { %2110 = vmatpush.bf16.msra.mxu0 %v6247_v5  ;;  %2123 = vmatpush.bf16.msra.mxu1 %v6375_v44  ;;  %v8513_v5 = vld [vmem:[#allocation8 + $0x544] sm:$0xf]  ;;  %v8579_v44 = vld [vmem:[#allocation8 + $0x74c] sm:$0xf0]  ;;  %v6547_v4 = vor.u32 %v8571_v2, %v6546_v1  ;;  %v6378_v1 = vld [vmem:[#allocation8 + $0x5a8] sm:$0xf] }
 0x120   :  { %v6327_v8 = vor.u32 %v8513_v5, %v6324_v6  ;;  %v8537_v5 = vld [vmem:[#allocation8 + $0x604] sm:$0xf]  ;;  %v6420_v6 = vld [vmem:[#allocation8 + $0x610] sm:$0xf0]  ;;  %v8528_v2 = vld [vmem:[#allocation8 + $0x5b4] sm:$0xf0] }
 0x121   :  { %v6423_v12 = vor.u32 %v8537_v5, %v6420_v6 }
 0x122   :  { %2135 = vmatpush.bf16.msra.mxu2 %v6519_v10  ;;  %2097 = vmatpush.bf16.msrb.mxu3 %v6627_v14  ;;  %v8500_v10 = vld [vmem:[#allocation8 + $0x4d4] sm:$0xf0] }
 0x123   :  { %2111 = vmatpush.bf16.msra.mxu0 %v6231_v17  ;;  %2124 = vmatpush.bf16.msra.mxu1 %v6359_v24  ;;  %v8557_v17 = vld [vmem:[#allocation8 + $0x6a4] sm:$0xf]  ;;  %v8575_v24 = vld [vmem:[#allocation8 + $0x72c] sm:$0xf0] }
 0x124   :  { %v6503_v22 = vor.u32 %v8557_v17, %v6500_v21  ;;  %v6267_v17 = vor.u32 %v8500_v10, %v6266_v9  ;;  %v8593_v21 = vld [vmem:[#allocation8 + $0x7c4] sm:$0xf] }
 0x126   :  { %2136 = vmatpush.bf16.msra.mxu2 %v6503_v22  ;;  %2098 = vmatpush.bf16.msrb.mxu3 %v6611_v28  ;;  %v6644_v22 = vld [vmem:[#allocation8 + $0x7d0] sm:$0xf0] }
 0x127   :  { %2112 = vmatpush.bf16.msra.mxu0 %v6215_v29  ;;  %2125 = vmatpush.bf16.msra.mxu1 %v6343_v60  ;;  %v8505_v29 = vld [vmem:[#allocation8 + $0x504] sm:$0xf]  ;;  %v6647_v27 = vor.u32 %v8593_v21, %v6644_v22  ;;  %v6284_v21 = vld [vmem:[#allocation8 + $0x4f8] sm:$0xf0] }
 0x128   :  { %v6295_v32 = vor.u32 %v8505_v29, %v6292_v30  ;;  %v6234_v29 = vld [vmem:[#allocation8 + $0x488] sm:$0xf] }
 0x12a   :  { %2137 = vmatpush.bf16.msra.mxu2 %v6487_v34 }
 0x12b   :  { %2113 = vmatpush.bf16.msra.mxu0 %v6199_v36  ;;  %2126 = vmatpush.bf16.msra.mxu1 %v6327_v8  ;;  %v6594_v36 = vld [vmem:[#allocation8 + $0x760] sm:$0xf] }
 0x12c   :  { %v6595_v38 = vor.u32 %v8583_v37, %v6594_v36 }
 0x12e   :  { %2099 = vmatpush.bf16.msrb.mxu3 %v6595_v38  ;;  %2138 = vmatpush.bf16.msra.mxu2 %v6471_v62  ;;  %v6235_v38 = vor.u32 %v8492_v31, %v6234_v29  ;;  %v8536_v62 = vld [vmem:[#allocation8 + $0x5f4] sm:$0xf0] }
 0x12f   :  { %2114 = vmatpush.bf16.msra.mxu0 %v6183_v43  ;;  %2127 = vmatpush.bf16.msra.mxu1 %v6311_v20  ;;  %v6578_v43 = vld [vmem:[#allocation8 + $0x740] sm:$0xf]  ;;  %v8496_v20 = vld [vmem:[#allocation8 + $0x4b4] sm:$0xf0] }
 0x130   :  { %v6579_v45 = vor.u32 %v8579_v44, %v6578_v43  ;;  %v6612_v43 = vld [vmem:[#allocation8 + $0x790] sm:$0xf0]  ;;  %v8520_v31 = vld [vmem:[#allocation8 + $0x574] sm:$0xf0] }
 0x132   :  { %v1069_v18 = vpop.f32.mrf.mxu0  ;;  %v1082_v19 = vpop.f32.mrf.mxu1  ;;  %2100 = vmatpush.bf16.msrb.mxu3 %v6579_v45  ;;  %2139 = vmatpush.bf16.msra.mxu2 %v6455_v48  ;;  %v6219_v48 = vor.u32 %v8488_v40, %v6218_v39  ;;  %v6268_v39 = vld [vmem:[#allocation8 + $0x4d8] sm:$0xf0] }
 0x133   :  { %2115 = vmatpush.bf16.msra.mxu0 %v6167_v52  ;;  %v1070_v35 = vadd.f32 %v1069_v18, %v412_v23  ;;  %2128 = vmatpush.bf16.msra.mxu1 %v6295_v32  ;;  %v6562_v52 = vld [vmem:[#allocation8 + $0x720] sm:$0xf]  ;;  %v6250_v18 = vld [vmem:[#allocation8 + $0x4a8] sm:$0xf]  ;;  %v8589_v32 = vld [vmem:[#allocation8 + $0x7a4] sm:$0xf] }
 0x134   :  { %v6563_v25 = vor.u32 %v8575_v24, %v6562_v52  ;;  %v6251_v28 = vor.u32 %v8496_v20, %v6250_v18  ;;  %v6631_v36 = vor.u32 %v8589_v32, %v6628_v33  ;;  %v6394_v52 = vld [vmem:[#allocation8 + $0x5c8] sm:$0xf]  ;;  %v6564_v18 = vld [vmem:[#allocation8 + $0x730] sm:$0xf0]  ;;  %v8502_v20 = vld [vmem:[#allocation8 + $0x4ec] sm:$0xf] }
 0x135   :  { %v1083_v42 = vadd.f32 %v1082_v19, %v1070_v35  ;;  %v6287_v32 = vor.u32 %v8502_v20, %v6284_v21  ;;  %v6538_v33 = vld [vmem:[#allocation8 + $0x6e8] sm:$0xf]  ;;  %v8482_v20 = vld [vmem:[#allocation8 + $0x44c] sm:$0xf]  ;;  %v6204_v21 = vld [vmem:[#allocation8 + $0x458] sm:$0xf0] }
 0x136   :  { %2101 = vmatpush.bf16.msrb.mxu3 %v6563_v25  ;;  %2140 = vmatpush.bf16.msra.mxu2 %v6439_v58  ;;  %v8532_v25 = vld [vmem:[#allocation8 + $0x5d4] sm:$0xf0]  ;;  %v6599_v58 = vor.u32 %v8581_v53, %v6596_v54  ;;  %v6314_v54 = vld [vmem:[#allocation8 + $0x528] sm:$0xf] }
 0x13a   :  { %v1071_v41 = vpop.f32.mrf.mxu0  ;;  %v1084_v61 = vpop.f32.mrf.mxu1  ;;  %2102 = vmatpush.bf16.msrb.mxu3 %v6547_v4  ;;  %2141 = vmatpush.bf16.msra.mxu2 %v6423_v12  ;;  %v6580_v4 = vld [vmem:[#allocation8 + $0x750] sm:$0xf0]  ;;  %v6379_v12 = vor.u32 %v8528_v2, %v6378_v1  ;;  %v6298_v1 = vld [vmem:[#allocation8 + $0x508] sm:$0xf]  ;;  %v8508_v2 = vld [vmem:[#allocation8 + $0x514] sm:$0xf0] }
 0x13b   :  { %v6410_v41 = vld [vmem:[#allocation8 + $0x5e8] sm:$0xf] }
 0x13e   :  { %2147 = vmatpush.bf16.msra.mxu3 %v6663_v16  ;;  %v8524_v16 = vld [vmem:[#allocation8 + $0x594] sm:$0xf0] }
 0x140   :  { %v1095_v49 = vpop.f32.mrf.mxu2  ;;  %v1108_v50 = vpop.f32.mrf.mxu3 }
 0x141   :  { %v1096_v51 = vadd.f32 %v1095_v49, %v1083_v42  ;;  %v8585_v42 = vld [vmem:[#allocation8 + $0x784] sm:$0xf]  ;;  %v6411_v49 = vor.u32 %v8536_v62, %v6410_v41 }
 0x142   :  { %v1121_v59 = vpop.f32.mrf.mxu0  ;;  %v1134_v60 = vpop.f32.mrf.mxu1  ;;  %2148 = vmatpush.bf16.msra.mxu3 %v6647_v27  ;;  %v6615_v46 = vor.u32 %v8585_v42, %v6612_v43  ;;  %v6330_v43 = vld [vmem:[#allocation8 + $0x548] sm:$0xf] }
 0x143   :  { %v1109_v55 = vadd.f32 %v1108_v50, %v1096_v51  ;;  %v1122_v19 = vadd.f32 %v1121_v59, %v413_v0  ;;  %v6202_v50 = vld [vmem:[#allocation8 + $0x448] sm:$0xf]  ;;  %v8484_v51 = vld [vmem:[#allocation8 + $0x454] sm:$0xf0] }
 0x144   :  { %v6203_v59 = vor.u32 %v8484_v51, %v6202_v50  ;;  %v8480_v0 = vld [vmem:[#allocation8 + $0x434] sm:$0xf0] }
 0x145   :  { %v1268_v63 = vmax.f32 %v1109_v55, 0.0  ;;  %v1135_v30 = vadd.f32 %v1134_v60, %v1122_v19  ;;  %v414_v55 = vperm.slane %v9339_v11, 2  ;;  %v6395_v60 = vor.u32 %v8532_v25, %v6394_v52 }
 0x146   :  { %2149 = vmatpush.bf16.msra.mxu3 %v6631_v36 }
 0x147   :  { %v9343_v8 = vpack.c.bf16 %v1268_v63, %v1268_v63  ;;  %v6186_v63 = vld [vmem:[#allocation8 + $0x428] sm:$0xf] }
 0x148   :  { %v1097_v14 = vpop.f32.mrf.mxu2  ;;  %v1110_v15 = vpop.f32.mrf.mxu3  ;;  %v6187_v10 = vor.u32 %v8480_v0, %v6186_v63 }
 0x149   :  { %2064 = vmatmul.bf16.vlgmr.msrb.gmra.mxu0 %v9343_v8  ;;  %v8476_v14 = vld [vmem:[#allocation8 + $0x414] sm:$0xf0]  ;;  %v6362_v15 = vld [vmem:[#allocation8 + $0x588] sm:$0xf] }
 0x14a   :  { %2160 = vmatpush.bf16.msrb.mxu0 %v6283_v3  ;;  %v1123_v23 = vpop.f32.mrf.mxu0  ;;  %v1136_v26 = vpop.f32.mrf.mxu1  ;;  %2150 = vmatpush.bf16.msra.mxu3 %v6615_v46  ;;  %v8577_v3 = vld [vmem:[#allocation8 + $0x744] sm:$0xf]  ;;  %v6363_v29 = vor.u32 %v8524_v16, %v6362_v15 }
 0x14b   :  { %v6583_v9 = vor.u32 %v8577_v3, %v6580_v4  ;;  %v6490_v3 = vld [vmem:[#allocation8 + $0x688] sm:$0xf]  ;;  %v8556_v4 = vld [vmem:[#allocation8 + $0x694] sm:$0xf0] }
 0x14c   :  { %v6491_v15 = vor.u32 %v8556_v4, %v6490_v3  ;;  %v6650_v4 = vld [vmem:[#allocation8 + $0x7c8] sm:$0xf] }
 0x14e   :  { %2161 = vmatpush.bf16.msrb.mxu0 %v6267_v17  ;;  %2151 = vmatpush.bf16.msra.mxu3 %v6599_v58  ;;  %v8573_v17 = vld [vmem:[#allocation8 + $0x724] sm:$0xf]  ;;  %v8490_v58 = vld [vmem:[#allocation8 + $0x48c] sm:$0xf] }
 0x14f   :  { %v6567_v22 = vor.u32 %v8573_v17, %v6564_v18  ;;  %v6474_v17 = vld [vmem:[#allocation8 + $0x668] sm:$0xf] }
 0x150   :  { %v1147_v34 = vpop.f32.mrf.mxu2  ;;  %v1160_v35 = vpop.f32.mrf.mxu3 }
 0x151   :  { %v1148_v37 = vadd.f32 %v1147_v34, %v1135_v30  ;;  %v6346_v30 = vld [vmem:[#allocation8 + $0x568] sm:$0xf]  ;;  %v8569_v34 = vld [vmem:[#allocation8 + $0x704] sm:$0xf] }
 0x152   :  { %2162 = vmatpush.bf16.msrb.mxu0 %v6251_v28  ;;  %2152 = vmatpush.bf16.msra.mxu3 %v6583_v9  ;;  %v6171_v28 = vor.u32 %v8476_v14, %v6170_v13  ;;  %v6299_v13 = vor.u32 %v8508_v2, %v6298_v1  ;;  %v415_v14 = vperm.slane %v9339_v11, 3 }
 0x153   :  { %v1161_v61 = vadd.f32 %v1160_v35, %v1148_v37  ;;  %v6548_v35 = vld [vmem:[#allocation8 + $0x710] sm:$0xf0]  ;;  %v8568_v37 = vld [vmem:[#allocation8 + $0x6f4] sm:$0xf0] }
 0x154   :  { %v6551_v40 = vor.u32 %v8569_v34, %v6548_v35  ;;  %v6539_v62 = vor.u32 %v8568_v37, %v6538_v33  ;;  %v8526_v35 = vld [vmem:[#allocation8 + $0x5ac] sm:$0xf] }
 0x155   :  { %v1173_v44 = vpop.f32.mrf.mxu0  ;;  %v1186_v45 = vpop.f32.mrf.mxu1  ;;  %v1269_v47 = vmax.f32 %v1161_v61, 0.0  ;;  %v6347_v61 = vor.u32 %v8520_v31, %v6346_v30  ;;  %v8548_v30 = vld [vmem:[#allocation8 + $0x654] sm:$0xf0]  ;;  %v8478_v31 = vld [vmem:[#allocation8 + $0x42c] sm:$0xf] }
 0x156   :  { %2163 = vmatpush.bf16.msrb.mxu0 %v6235_v38  ;;  %v1174_v5 = vadd.f32 %v1173_v44, %v414_v55  ;;  %2153 = vmatpush.bf16.msra.mxu3 %v6567_v22  ;;  %v8498_v38 = vld [vmem:[#allocation8 + $0x4cc] sm:$0xf]  ;;  %v8516_v44 = vld [vmem:[#allocation8 + $0x554] sm:$0xf0] }
 0x157   :  { %v9346_v24 = vpack.c.bf16 %v1269_v47, %v1269_v47  ;;  %v6271_v42 = vor.u32 %v8498_v38, %v6268_v39  ;;  %v8564_v47 = vld [vmem:[#allocation8 + $0x6d4] sm:$0xf0]  ;;  %v6331_v52 = vor.u32 %v8516_v44, %v6330_v43  ;;  %v8530_v22 = vld [vmem:[#allocation8 + $0x5cc] sm:$0xf]  ;;  %v6442_v39 = vld [vmem:[#allocation8 + $0x628] sm:$0xf] }
 0x158   :  { %v1149_v56 = vpop.f32.mrf.mxu2  ;;  %v1162_v57 = vpop.f32.mrf.mxu3  ;;  %v1187_v19 = vadd.f32 %v1186_v45, %v1174_v5  ;;  %v6522_v45 = vld [vmem:[#allocation8 + $0x6c8] sm:$0xf]  ;;  %v8512_v55 = vld [vmem:[#allocation8 + $0x534] sm:$0xf0]  ;;  %v8486_v5 = vld [vmem:[#allocation8 + $0x46c] sm:$0xf] }
 0x159   :  { %2077 = vmatmul.bf16.vlgmr.msrb.gmra.mxu1 %v9346_v24  ;;  %2116 = vmatmul.bf16.vlgmr.msra.gmra.mxu0 %v9343_v8  ;;  %v6523_v25 = vor.u32 %v8564_v47, %v6522_v45  ;;  %v6506_v56 = vld [vmem:[#allocation8 + $0x6a8] sm:$0xf]  ;;  %v8560_v57 = vld [vmem:[#allocation8 + $0x6b4] sm:$0xf0]  ;;  %v8522_v45 = vld [vmem:[#allocation8 + $0x58c] sm:$0xf] }
 0x15a   :  { %2164 = vmatpush.bf16.msrb.mxu0 %v6219_v48  ;;  %2173 = vmatpush.bf16.msrb.mxu1 %v6411_v49  ;;  %v8494_v48 = vld [vmem:[#allocation8 + $0x4ac] sm:$0xf]  ;;  %v6252_v49 = vld [vmem:[#allocation8 + $0x4b8] sm:$0xf0]  ;;  %v6507_v63 = vor.u32 %v8560_v57, %v6506_v56 }
 0x15b   :  { %2154 = vmatpush.bf16.msra.mxu3 %v6551_v40  ;;  %v6255_v53 = vor.u32 %v8494_v48, %v6252_v49  ;;  %v6364_v47 = vld [vmem:[#allocation8 + $0x598] sm:$0xf0]  ;;  %v8518_v56 = vld [vmem:[#allocation8 + $0x56c] sm:$0xf] }
 0x15c   :  { %v6348_v57 = vld [vmem:[#allocation8 + $0x578] sm:$0xf0] }
 0x15d   :  { %v1175_v6 = vpop.f32.mrf.mxu0  ;;  %v1188_v7 = vpop.f32.mrf.mxu1  ;;  %v6351_v2 = vor.u32 %v8518_v56, %v6348_v57  ;;  %v6668_v56 = vld [vmem:[#allocation8 + $0x7f8] sm:$0xf0] }
 0x15e   :  { %2165 = vmatpush.bf16.msrb.mxu0 %v6203_v59  ;;  %2174 = vmatpush.bf16.msrb.mxu1 %v6395_v60  ;;  %v6236_v59 = vld [vmem:[#allocation8 + $0x498] sm:$0xf0]  ;;  %v6315_v60 = vor.u32 %v8512_v55, %v6314_v54  ;;  %v6666_v54 = vld [vmem:[#allocation8 + $0x7e8] sm:$0xf]  ;;  %v8600_v55 = vld [vmem:[#allocation8 + $0x7f4] sm:$0xf0] }
 0x15f   :  { %v6239_v0 = vor.u32 %v8490_v58, %v6236_v59  ;;  %v6220_v6 = vld [vmem:[#allocation8 + $0x478] sm:$0xf0]  ;;  %v8566_v58 = vld [vmem:[#allocation8 + $0x6ec] sm:$0xf] }
 0x160   :  { %v1199_v23 = vpop.f32.mrf.mxu2  ;;  %v1212_v26 = vpop.f32.mrf.mxu3  ;;  %v6223_v16 = vor.u32 %v8486_v5, %v6220_v6  ;;  %v6540_v59 = vld [vmem:[#allocation8 + $0x6f8] sm:$0xf0]  ;;  %v8596_v5 = vld [vmem:[#allocation8 + $0x7d4] sm:$0xf0]  ;;  %v8514_v6 = vld [vmem:[#allocation8 + $0x54c] sm:$0xf] }
 0x161   :  { %v1200_v27 = vadd.f32 %v1199_v23, %v1187_v19  ;;  %v8552_v19 = vld [vmem:[#allocation8 + $0x674] sm:$0xf0]  ;;  %v6396_v23 = vld [vmem:[#allocation8 + $0x5d8] sm:$0xf0]  ;;  %v6543_v3 = vor.u32 %v8566_v58, %v6540_v59  ;;  %v8594_v59 = vld [vmem:[#allocation8 + $0x7cc] sm:$0xf] }
 0x162   :  { %2166 = vmatpush.bf16.msrb.mxu0 %v6187_v10  ;;  %2175 = vmatpush.bf16.msrb.mxu1 %v6379_v12  ;;  %v8534_v10 = vld [vmem:[#allocation8 + $0x5ec] sm:$0xf]  ;;  %v6412_v12 = vld [vmem:[#allocation8 + $0x5f8] sm:$0xf0]  ;;  %v6399_v11 = vor.u32 %v8530_v22, %v6396_v23 }
 0x163   :  { %v1213_v36 = vadd.f32 %v1212_v26, %v1200_v27  ;;  %v6415_v18 = vor.u32 %v8534_v10, %v6412_v12  ;;  %v6475_v26 = vor.u32 %v8552_v19, %v6474_v17  ;;  %v6207_v27 = vor.u32 %v8482_v20, %v6204_v21  ;;  %v6332_v10 = vld [vmem:[#allocation8 + $0x558] sm:$0xf0]  ;;  %v8562_v12 = vld [vmem:[#allocation8 + $0x6cc] sm:$0xf]  ;;  %v6634_v17 = vld [vmem:[#allocation8 + $0x7a8] sm:$0xf] }
 0x164   :  { %v8510_v19 = vld [vmem:[#allocation8 + $0x52c] sm:$0xf]  ;;  %v6316_v20 = vld [vmem:[#allocation8 + $0x538] sm:$0xf0] }
 0x165   :  { %v1270_v41 = vmax.f32 %v1213_v36, 0.0  ;;  %v6380_v36 = vld [vmem:[#allocation8 + $0x5b8] sm:$0xf0]  ;;  %v8558_v21 = vld [vmem:[#allocation8 + $0x6ac] sm:$0xf] }
 0x166   :  { %2167 = vmatpush.bf16.msrb.mxu0 %v6171_v28  ;;  %2176 = vmatpush.bf16.msrb.mxu1 %v6363_v29  ;;  %v6458_v28 = vld [vmem:[#allocation8 + $0x648] sm:$0xf]  ;;  %v6508_v22 = vld [vmem:[#allocation8 + $0x6b8] sm:$0xf0] }
 0x167   :  { %v9351_v46 = vpack.c.bf16 %v1270_v41, %v1270_v41  ;;  %v6459_v37 = vor.u32 %v8548_v30, %v6458_v28  ;;  %v6383_v41 = vor.u32 %v8526_v35, %v6380_v36  ;;  %v8588_v28 = vld [vmem:[#allocation8 + $0x794] sm:$0xf0]  ;;  %v8554_v30 = vld [vmem:[#allocation8 + $0x68c] sm:$0xf]  ;;  %v6602_v35 = vld [vmem:[#allocation8 + $0x768] sm:$0xf] }
 0x168   :  { %v1201_v50 = vpop.f32.mrf.mxu2  ;;  %v1214_v51 = vpop.f32.mrf.mxu3  ;;  %v8584_v36 = vld [vmem:[#allocation8 + $0x774] sm:$0xf0] }
 0x169   :  { %2129 = vmatmul.bf16.vlgmr.msra.gmra.mxu1 %v9346_v24  ;;  %2168 = vmatmul.bf16.vlgmr.msrb.gmra.mxu0 %v9343_v8  ;;  %v6426_v51 = vld [vmem:[#allocation8 + $0x608] sm:$0xf] }
 0x16a   :  { %2212 = vmatpush.bf16.msra.mxu0 %v6287_v32  ;;  %2090 = vmatmul.bf16.vlgmr.msrb.gmra.mxu2 %v9351_v46  ;;  %v6188_v32 = vld [vmem:[#allocation8 + $0x438] sm:$0xf0] }
 0x16b   :  { %2177 = vmatpush.bf16.msrb.mxu1 %v6347_v61  ;;  %2186 = vmatpush.bf16.msrb.mxu2 %v6539_v62  ;;  %v6191_v38 = vor.u32 %v8478_v31, %v6188_v32  ;;  %v8544_v61 = vld [vmem:[#allocation8 + $0x634] sm:$0xf0]  ;;  %v8474_v62 = vld [vmem:[#allocation8 + $0x40c] sm:$0xf]  ;;  %v6492_v31 = vld [vmem:[#allocation8 + $0x698] sm:$0xf0] }
 0x16c   :  { %v6443_v49 = vor.u32 %v8544_v61, %v6442_v39  ;;  %v6603_v39 = vor.u32 %v8584_v36, %v6602_v35  ;;  %v8580_v61 = vld [vmem:[#allocation8 + $0x754] sm:$0xf0]  ;;  %v8663_v35 = vld [vmem:[#allocation8 + $0x9ec] sm:$0xf0] }
 0x16e   :  { %2213 = vmatpush.bf16.msra.mxu0 %v6271_v42  ;;  %v6172_v42 = vld [vmem:[#allocation8 + $0x418] sm:$0xf0] }
 0x16f   :  { %2178 = vmatpush.bf16.msrb.mxu1 %v6331_v52  ;;  %2187 = vmatpush.bf16.msrb.mxu2 %v6523_v25  ;;  %v6175_v50 = vor.u32 %v8474_v62, %v6172_v42  ;;  %v8540_v52 = vld [vmem:[#allocation8 + $0x614] sm:$0xf0]  ;;  %v8546_v62 = vld [vmem:[#allocation8 + $0x64c] sm:$0xf]  ;;  %v6460_v42 = vld [vmem:[#allocation8 + $0x658] sm:$0xf0] }
 0x172   :  { %2214 = vmatpush.bf16.msra.mxu0 %v6255_v53  ;;  %v6367_v53 = vor.u32 %v8522_v45, %v6364_v47  ;;  %v6570_v45 = vld [vmem:[#allocation8 + $0x728] sm:$0xf]  ;;  %v8576_v47 = vld [vmem:[#allocation8 + $0x734] sm:$0xf0] }
 0x173   :  { %2179 = vmatpush.bf16.msrb.mxu1 %v6315_v60  ;;  %2188 = vmatpush.bf16.msrb.mxu2 %v6507_v63  ;;  %v6427_v63 = vor.u32 %v8540_v52, %v6426_v51  ;;  %v6554_v52 = vld [vmem:[#allocation8 + $0x708] sm:$0xf] }
 0x175   :  { %v1225_v7 = vpop.f32.mrf.mxu0  ;;  %v1238_v9 = vpop.f32.mrf.mxu1 }
 0x176   :  { %2215 = vmatpush.bf16.msra.mxu0 %v6239_v0  ;;  %v1226_v29 = vadd.f32 %v1225_v7, %v415_v14  ;;  %v6667_v0 = vor.u32 %v8600_v55, %v6666_v54  ;;  %v6651_v14 = vor.u32 %v8596_v5, %v6650_v4  ;;  %v6428_v54 = vld [vmem:[#allocation8 + $0x618] sm:$0xf0]  ;;  %v8598_v55 = vld [vmem:[#allocation8 + $0x7ec] sm:$0xf] }
 0x177   :  { %2180 = vmatpush.bf16.msrb.mxu1 %v6299_v13  ;;  %2189 = vmatpush.bf16.msrb.mxu2 %v6491_v15  ;;  %v6524_v13 = vld [vmem:[#allocation8 + $0x6d8] sm:$0xf0]  ;;  %v6335_v15 = vor.u32 %v8514_v6, %v6332_v10  ;;  %v6671_v58 = vor.u32 %v8598_v55, %v6668_v56  ;;  %v8586_v4 = vld [vmem:[#allocation8 + $0x78c] sm:$0xf]  ;;  %v6786_v10 = vld [vmem:[#allocation8 + $0x8e0] sm:$0xf] }
 0x178   :  { %v1239_v40 = vadd.f32 %v1238_v9, %v1226_v29  ;;  %v8506_v29 = vld [vmem:[#allocation8 + $0x50c] sm:$0xf]  ;;  %v6620_v5 = vld [vmem:[#allocation8 + $0x798] sm:$0xf0]  ;;  %v6788_v55 = vld [vmem:[#allocation8 + $0x8f0] sm:$0xf0] }
 0x179   :  { %v6623_v6 = vor.u32 %v8586_v4, %v6620_v5 }
 0x17a   :  { %2216 = vmatpush.bf16.msra.mxu0 %v6223_v16  ;;  %2181 = vmatmul.bf16.vlgmr.msrb.gmra.mxu1 %v9346_v24  ;;  %v6527_v16 = vor.u32 %v8562_v12, %v6524_v13  ;;  %v8631_v12 = vld [vmem:[#allocation8 + $0x8ec] sm:$0xf0] }
 0x17b   :  { %2225 = vmatpush.bf16.msra.mxu1 %v6415_v18  ;;  %2142 = vmatmul.bf16.vlgmr.msra.gmra.mxu2 %v9351_v46  ;;  %v8592_v18 = vld [vmem:[#allocation8 + $0x7b4] sm:$0xf0]  ;;  %v6787_v13 = vor.u32 %v8631_v12, %v6786_v10  ;;  %v7026_v10 = vld [vmem:[#allocation8 + $0xac0] sm:$0xf] }
 0x17c   :  { %2190 = vmatpush.bf16.msrb.mxu2 %v6475_v26  ;;  %v6635_v23 = vor.u32 %v8592_v18, %v6634_v17  ;;  %v6511_v26 = vor.u32 %v8558_v21, %v6508_v22  ;;  %v8574_v18 = vld [vmem:[#allocation8 + $0x72c] sm:$0xf] }
 0x17d   :  { %v1227_v33 = vpop.f32.mrf.mxu0  ;;  %v1240_v34 = vpop.f32.mrf.mxu1 }
 0x17e   :  { %2217 = vmatpush.bf16.msra.mxu0 %v6207_v27  ;;  %v6618_v27 = vld [vmem:[#allocation8 + $0x788] sm:$0xf]  ;;  %v6495_v34 = vor.u32 %v8554_v30, %v6492_v31  ;;  %v8619_v30 = vld [vmem:[#allocation8 + $0x88c] sm:$0xf0]  ;;  %v6722_v31 = vld [vmem:[#allocation8 + $0x860] sm:$0xf] }
 0x17f   :  { %2226 = vmatpush.bf16.msra.mxu1 %v6399_v11  ;;  %v6300_v11 = vld [vmem:[#allocation8 + $0x518] sm:$0xf0]  ;;  %v6619_v32 = vor.u32 %v8588_v28, %v6618_v27 }
 0x180   :  { %v1251_v43 = vpop.f32.mrf.mxu2  ;;  %v1264_v44 = vpop.f32.mrf.mxu3  ;;  %2191 = vmatpush.bf16.msrb.mxu2 %v6459_v37  ;;  %v6303_v33 = vor.u32 %v8506_v29, %v6300_v11  ;;  %v8550_v37 = vld [vmem:[#allocation8 + $0x66c] sm:$0xf]  ;;  %v6556_v27 = vld [vmem:[#allocation8 + $0x718] sm:$0xf0]  ;;  %v6738_v11 = vld [vmem:[#allocation8 + $0x880] sm:$0xf] }
 0x181   :  { %v1252_v48 = vadd.f32 %v1251_v43, %v1239_v40 }
 0x182   :  { %2218 = vmatpush.bf16.msra.mxu0 %v6191_v38  ;;  %v6476_v38 = vld [vmem:[#allocation8 + $0x678] sm:$0xf0] }
 0x183   :  { %v1265_v25 = vadd.f32 %v1264_v44, %v1252_v48  ;;  %2227 = vmatpush.bf16.msra.mxu1 %v6383_v41  ;;  %v6479_v40 = vor.u32 %v8550_v37, %v6476_v38  ;;  %v6586_v41 = vld [vmem:[#allocation8 + $0x748] sm:$0xf]  ;;  %v6463_v44 = vor.u32 %v8546_v62, %v6460_v42  ;;  %v8542_v48 = vld [vmem:[#allocation8 + $0x62c] sm:$0xf]  ;;  %v8659_v62 = vld [vmem:[#allocation8 + $0x9cc] sm:$0xf0] }
 0x184   :  { %2192 = vmatpush.bf16.msrb.mxu2 %v6443_v49  ;;  %v6587_v43 = vor.u32 %v8580_v61, %v6586_v41  ;;  %v6444_v49 = vld [vmem:[#allocation8 + $0x638] sm:$0xf0]  ;;  %v6898_v61 = vld [vmem:[#allocation8 + $0x9c0] sm:$0xf] }
 0x185   :  { %v1271_v60 = vmax.f32 %v1265_v25, 0.0  ;;  %v6447_v51 = vor.u32 %v8542_v48, %v6444_v49  ;;  %v8572_v25 = vld [vmem:[#allocation8 + $0x714] sm:$0xf0]  ;;  %v6899_v42 = vor.u32 %v8659_v62, %v6898_v61  ;;  %v8655_v48 = vld [vmem:[#allocation8 + $0x9ac] sm:$0xf0] }
 0x186   :  { %2219 = vmatpush.bf16.msra.mxu0 %v6175_v50  ;;  %v6571_v50 = vor.u32 %v8576_v47, %v6570_v45  ;;  %v6555_v57 = vor.u32 %v8572_v25, %v6554_v52  ;;  %v6882_v45 = vld [vmem:[#allocation8 + $0x9a0] sm:$0xf]  ;;  %v8679_v61 = vld [vmem:[#allocation8 + $0xa6c] sm:$0xf0] }
 0x187   :  { %v9359_v1 = vpack.c.bf16 %v1271_v60, %v1271_v60  ;;  %2228 = vmatpush.bf16.msra.mxu1 %v6367_v53  ;;  %v8538_v53 = vld [vmem:[#allocation8 + $0x60c] sm:$0xf]  ;;  %v6652_v60 = vld [vmem:[#allocation8 + $0x7d8] sm:$0xf0]  ;;  %v6866_v52 = vld [vmem:[#allocation8 + $0x980] sm:$0xf] }
 0x188   :  { %v1253_v7 = vpop.f32.mrf.mxu2  ;;  %v1266_v9 = vpop.f32.mrf.mxu3  ;;  %2193 = vmatpush.bf16.msrb.mxu2 %v6427_v63  ;;  %v6655_v63 = vor.u32 %v8594_v59, %v6652_v60  ;;  %v7042_v59 = vld [vmem:[#allocation8 + $0xae0] sm:$0xf] }
 0x189   :  { %2103 = vmatmul.bf16.vlgmr.msrb.gmra.mxu3 %v9359_v1  ;;  %2220 = vmatmul.bf16.vlgmr.msra.gmra.mxu0 %v9343_v8  ;;  %v6319_v8 = vor.u32 %v8510_v19, %v6316_v20  ;;  %v8582_v7 = vld [vmem:[#allocation8 + $0x76c] sm:$0xf]  ;;  %v6604_v9 = vld [vmem:[#allocation8 + $0x778] sm:$0xf0]  ;;  %v6770_v19 = vld [vmem:[#allocation8 + $0x8c0] sm:$0xf] }
 0x18a   :  { %2199 = vmatpush.bf16.msrb.mxu3 %v6667_v0  ;;  %v8590_v0 = vld [vmem:[#allocation8 + $0x7ac] sm:$0xf]  ;;  %3052 = vmatpush.bf16.msrb.mxu0 %v6787_v13  ;;  %v8627_v20 = vld [vmem:[#allocation8 + $0x8cc] sm:$0xf0] }
 0x18b   :  { %2229 = vmatpush.bf16.msra.mxu1 %v6351_v2  ;;  %2194 = vmatmul.bf16.vlgmr.msrb.gmra.mxu2 %v9351_v46  ;;  %v6636_v2 = vld [vmem:[#allocation8 + $0x7b8] sm:$0xf0]  ;;  %v6771_v22 = vor.u32 %v8627_v20, %v6770_v19  ;;  %v8691_v13 = vld [vmem:[#allocation8 + $0xacc] sm:$0xf0]  ;;  %v7010_v19 = vld [vmem:[#allocation8 + $0xaa0] sm:$0xf] }
 0x18c   :  { %2238 = vmatpush.bf16.msra.mxu2 %v6543_v3  ;;  %v6639_v3 = vor.u32 %v8590_v0, %v6636_v2  ;;  %v8625_v0 = vld [vmem:[#allocation8 + $0x8c4] sm:$0xf]  ;;  %v6772_v2 = vld [vmem:[#allocation8 + $0x8d0] sm:$0xf0] }
 0x18e   :  { %2200 = vmatpush.bf16.msrb.mxu3 %v6651_v14  ;;  %v6607_v14 = vor.u32 %v8582_v7, %v6604_v9  ;;  %3053 = vmatpush.bf16.msrb.mxu0 %v6771_v22  ;;  %v6834_v7 = vld [vmem:[#allocation8 + $0x940] sm:$0xf]  ;;  %v8643_v9 = vld [vmem:[#allocation8 + $0x94c] sm:$0xf0]  ;;  %v8617_v22 = vld [vmem:[#allocation8 + $0x884] sm:$0xf] }
 0x18f   :  { %2230 = vmatpush.bf16.msra.mxu1 %v6335_v15  ;;  %v8578_v15 = vld [vmem:[#allocation8 + $0x74c] sm:$0xf]  ;;  %v6835_v12 = vor.u32 %v8643_v9, %v6834_v7  ;;  %v6868_v9 = vld [vmem:[#allocation8 + $0x990] sm:$0xf0] }
 0x190   :  { %2239 = vmatpush.bf16.msra.mxu2 %v6527_v16  ;;  %v6588_v16 = vld [vmem:[#allocation8 + $0x758] sm:$0xf0] }
 0x191   :  { %v6591_v17 = vor.u32 %v8578_v15, %v6588_v16  ;;  %v6756_v15 = vld [vmem:[#allocation8 + $0x8b0] sm:$0xf0]  ;;  %v7027_v16 = vor.u32 %v8691_v13, %v7026_v10  ;;  %v8667_v13 = vld [vmem:[#allocation8 + $0xa0c] sm:$0xf0] }
 0x192   :  { %2201 = vmatpush.bf16.msrb.mxu3 %v6635_v23  ;;  %v6754_v23 = vld [vmem:[#allocation8 + $0x8a0] sm:$0xf] }
 0x193   :  { %2231 = vmatpush.bf16.msra.mxu1 %v6319_v8  ;;  %v8623_v8 = vld [vmem:[#allocation8 + $0x8ac] sm:$0xf0] }
 0x194   :  { %2240 = vmatpush.bf16.msra.mxu2 %v6511_v26  ;;  %v8570_v26 = vld [vmem:[#allocation8 + $0x70c] sm:$0xf]  ;;  %v6755_v28 = vor.u32 %v8623_v8, %v6754_v23  ;;  %v6740_v23 = vld [vmem:[#allocation8 + $0x890] sm:$0xf0] }
 0x195   :  { %v6559_v29 = vor.u32 %v8570_v26, %v6556_v27 }
 0x196   :  { %2202 = vmatpush.bf16.msrb.mxu3 %v6619_v32  ;;  %3054 = vmatpush.bf16.msrb.mxu0 %v6755_v28  ;;  %v6739_v32 = vor.u32 %v8619_v30, %v6738_v11  ;;  %v6743_v28 = vor.u32 %v8617_v22, %v6740_v23  ;;  %v8635_v11 = vld [vmem:[#allocation8 + $0x90c] sm:$0xf0]  ;;  %v6994_v30 = vld [vmem:[#allocation8 + $0xa80] sm:$0xf] }
 0x197   :  { %2232 = vmatpush.bf16.msra.mxu1 %v6303_v33  ;;  %v8615_v33 = vld [vmem:[#allocation8 + $0x86c] sm:$0xf0]  ;;  %v7154_v23 = vld [vmem:[#allocation8 + $0xbc0] sm:$0xf] }
 0x198   :  { %2241 = vmatpush.bf16.msra.mxu2 %v6495_v34  ;;  %v6914_v34 = vld [vmem:[#allocation8 + $0x9e0] sm:$0xf]  ;;  %v6723_v37 = vor.u32 %v8615_v33, %v6722_v31  ;;  %v8683_v31 = vld [vmem:[#allocation8 + $0xa8c] sm:$0xf0] }
 0x199   :  { %2155 = vmatmul.bf16.vlgmr.msra.gmra.mxu3 %v9359_v1  ;;  %v6915_v36 = vor.u32 %v8663_v35, %v6914_v34  ;;  %v6995_v33 = vor.u32 %v8683_v31, %v6994_v30  ;;  %v8613_v34 = vld [vmem:[#allocation8 + $0x864] sm:$0xf]  ;;  %v6724_v35 = vld [vmem:[#allocation8 + $0x870] sm:$0xf0] }
 0x19a   :  { %2203 = vmatpush.bf16.msrb.mxu3 %v6603_v39  ;;  %2233 = vmatmul.bf16.vlgmr.msra.gmra.mxu1 %v9346_v24  ;;  %v6431_v24 = vor.u32 %v8538_v53, %v6428_v54  ;;  %v6706_v39 = vld [vmem:[#allocation8 + $0x840] sm:$0xf]  ;;  %v8651_v53 = vld [vmem:[#allocation8 + $0x98c] sm:$0xf0]  ;;  %v8629_v54 = vld [vmem:[#allocation8 + $0x8e4] sm:$0xf] }
 0x19b   :  { %3055 = vmatpush.bf16.msrb.mxu0 %v6739_v32  ;;  %3065 = vmatpush.bf16.msrb.mxu1 %v6915_v36  ;;  %v6867_v56 = vor.u32 %v8651_v53, %v6866_v52  ;;  %v8661_v36 = vld [vmem:[#allocation8 + $0x9e4] sm:$0xf]  ;;  %v6692_v53 = vld [vmem:[#allocation8 + $0x830] sm:$0xf0] }
 0x19c   :  { %2242 = vmatpush.bf16.msra.mxu2 %v6479_v40  ;;  %v8611_v40 = vld [vmem:[#allocation8 + $0x84c] sm:$0xf0] }
 0x19d   :  { %v6707_v41 = vor.u32 %v8611_v40, %v6706_v39  ;;  %v6916_v39 = vld [vmem:[#allocation8 + $0x9f0] sm:$0xf0] }
 0x19e   :  { %2204 = vmatpush.bf16.msrb.mxu3 %v6587_v43  ;;  %v6690_v43 = vld [vmem:[#allocation8 + $0x820] sm:$0xf]  ;;  %v6919_v40 = vor.u32 %v8661_v36, %v6916_v39  ;;  %v6820_v39 = vld [vmem:[#allocation8 + $0x930] sm:$0xf0] }
 0x19f   :  { %3056 = vmatpush.bf16.msrb.mxu0 %v6723_v37  ;;  %3066 = vmatpush.bf16.msrb.mxu1 %v6899_v42  ;;  %v6727_v37 = vor.u32 %v8613_v34, %v6724_v35  ;;  %v8609_v42 = vld [vmem:[#allocation8 + $0x844] sm:$0xf]  ;;  %v7138_v34 = vld [vmem:[#allocation8 + $0xba0] sm:$0xf]  ;;  %v8719_v35 = vld [vmem:[#allocation8 + $0xbac] sm:$0xf0] }
 0x1a0   :  { %2243 = vmatpush.bf16.msra.mxu2 %v6463_v44  ;;  %v8607_v44 = vld [vmem:[#allocation8 + $0x82c] sm:$0xf0]  ;;  %v7139_v36 = vor.u32 %v8719_v35, %v7138_v34  ;;  %v6778_v34 = vld [vmem:[#allocation8 + $0x8c8] sm:$0xf]  ;;  %v8628_v35 = vld [vmem:[#allocation8 + $0x8d4] sm:$0xf0] }
 0x1a1   :  { %v6691_v47 = vor.u32 %v8607_v44, %v6690_v43  ;;  %v6708_v43 = vld [vmem:[#allocation8 + $0x850] sm:$0xf0]  ;;  %v8657_v44 = vld [vmem:[#allocation8 + $0x9c4] sm:$0xf] }
 0x1a2   :  { %2205 = vmatpush.bf16.msrb.mxu3 %v6571_v50  ;;  %v6883_v50 = vor.u32 %v8655_v48, %v6882_v45  ;;  %v6711_v48 = vor.u32 %v8609_v42, %v6708_v43  ;;  %v9383_v42 = vld [vmem:[#allocation10 + $0x4] sm:$0xf]  ;;  %v7122_v43 = vld [vmem:[#allocation8 + $0xb80] sm:$0xf] }
 0x1a3   :  { %3057 = vmatpush.bf16.msrb.mxu0 %v6707_v41  ;;  %v6978_v41 = vld [vmem:[#allocation8 + $0xa60] sm:$0xf] }
 0x1a4   :  { %2244 = vmatpush.bf16.msra.mxu2 %v6447_v51  ;;  %v6674_v51 = vld [vmem:[#allocation8 + $0x800] sm:$0xf]  ;;  %3067 = vmatpush.bf16.msrb.mxu1 %v6883_v50  ;;  %v6979_v62 = vor.u32 %v8679_v61, %v6978_v41  ;;  %v7012_v61 = vld [vmem:[#allocation8 + $0xab0] sm:$0xf0] }
 0x1a6   :  { %2206 = vmatpush.bf16.msrb.mxu3 %v6555_v57  ;;  %v6791_v57 = vor.u32 %v8629_v54, %v6788_v55  ;;  %v8653_v54 = vld [vmem:[#allocation8 + $0x9a4] sm:$0xf] }
 0x1a7   :  { %3058 = vmatpush.bf16.msrb.mxu0 %v6691_v47 }
 0x1a8   :  { %2245 = vmatpush.bf16.msra.mxu2 %v6431_v24  ;;  %3068 = vmatpush.bf16.msrb.mxu1 %v6867_v56  ;;  %v6850_v24 = vld [vmem:[#allocation8 + $0x960] sm:$0xf]  ;;  %v6884_v56 = vld [vmem:[#allocation8 + $0x9b0] sm:$0xf0] }
 0x1a9   :  { %2207 = vmatmul.bf16.vlgmr.msrb.gmra.mxu3 %v9359_v1 }
 0x1aa   :  { %2251 = vmatpush.bf16.msra.mxu3 %v6671_v58  ;;  %v8647_v58 = vld [vmem:[#allocation8 + $0x96c] sm:$0xf0] }
 0x1ab   :  { %2246 = vmatmul.bf16.vlgmr.msra.gmra.mxu2 %v9351_v46  ;;  %v6572_v46 = vld [vmem:[#allocation8 + $0x738] sm:$0xf0]  ;;  %v6851_v60 = vor.u32 %v8647_v58, %v6850_v24  ;;  %v6946_v24 = vld [vmem:[#allocation8 + $0xa20] sm:$0xf]  ;;  %v8671_v58 = vld [vmem:[#allocation8 + $0xa2c] sm:$0xf0] }
 0x1ac   :  { %v6575_v21 = vor.u32 %v8574_v18, %v6572_v46  ;;  %v6818_v18 = vld [vmem:[#allocation8 + $0x920] sm:$0xf]  ;;  %v8639_v46 = vld [vmem:[#allocation8 + $0x92c] sm:$0xf0] }
 0x1ad   :  { %3069 = vmatpush.bf16.msrb.mxu1 %v6851_v60  ;;  %v6819_v20 = vor.u32 %v8639_v46, %v6818_v18  ;;  %v6947_v60 = vor.u32 %v8671_v58, %v6946_v24  ;;  %v6852_v18 = vld [vmem:[#allocation8 + $0x970] sm:$0xf0]  ;;  %v8677_v58 = vld [vmem:[#allocation8 + $0xa64] sm:$0xf] }
 0x1ae   :  { %2252 = vmatpush.bf16.msra.mxu3 %v6655_v63  ;;  %v8695_v63 = vld [vmem:[#allocation8 + $0xaec] sm:$0xf0] }
 0x1af   :  { %v7043_v5 = vor.u32 %v8695_v63, %v7042_v59  ;;  %v8601_v63 = vld [vmem:[#allocation8 + $0x804] sm:$0xf] }
 0x1b1   :  { %3078 = vmatpush.bf16.msrb.mxu2 %v7043_v5  ;;  %3070 = vmatpush.bf16.msrb.mxu1 %v6835_v12  ;;  %v6930_v12 = vld [vmem:[#allocation8 + $0xa00] sm:$0xf] }
 0x1b2   :  { %2253 = vmatpush.bf16.msra.mxu3 %v6639_v3 }
 0x1b5   :  { %3079 = vmatpush.bf16.msrb.mxu2 %v7027_v16  ;;  %3071 = vmatpush.bf16.msrb.mxu1 %v6819_v20  ;;  %v8727_v16 = vld [vmem:[#allocation8 + $0xbec] sm:$0xf0]  ;;  %v8693_v20 = vld [vmem:[#allocation8 + $0xae4] sm:$0xf] }
 0x1b6   :  { %2254 = vmatpush.bf16.msra.mxu3 %v6623_v6  ;;  %v6775_v6 = vor.u32 %v8625_v0, %v6772_v2  ;;  %v6676_v0 = vld [vmem:[#allocation8 + $0x810] sm:$0xf0]  ;;  %v8649_v2 = vld [vmem:[#allocation8 + $0x984] sm:$0xf] }
 0x1b7   :  { %v6679_v7 = vor.u32 %v8601_v63, %v6676_v0  ;;  %v6871_v10 = vor.u32 %v8649_v2, %v6868_v9 }
 0x1ba   :  { %2255 = vmatpush.bf16.msra.mxu3 %v6607_v14  ;;  %v8621_v14 = vld [vmem:[#allocation8 + $0x8a4] sm:$0xf] }
 0x1be   :  { %2256 = vmatpush.bf16.msra.mxu3 %v6591_v17  ;;  %v6759_v17 = vor.u32 %v8621_v14, %v6756_v15  ;;  %v7170_v14 = vld [vmem:[#allocation8 + $0xbe0] sm:$0xf]  ;;  %v6931_v15 = vor.u32 %v8667_v13, %v6930_v12  ;;  %v6964_v12 = vld [vmem:[#allocation8 + $0xa50] sm:$0xf0] }
 0x1bf   :  { %v7171_v46 = vor.u32 %v8727_v16, %v7170_v14  ;;  %v7074_v16 = vld [vmem:[#allocation8 + $0xb20] sm:$0xf] }
 0x1c2   :  { %2257 = vmatpush.bf16.msra.mxu3 %v6575_v21  ;;  %v8687_v21 = vld [vmem:[#allocation8 + $0xaac] sm:$0xf0] }
 0x1c3   :  { %v7011_v27 = vor.u32 %v8687_v21, %v7010_v19  ;;  %v7044_v21 = vld [vmem:[#allocation8 + $0xaf0] sm:$0xf0] }
 0x1c4   :  { %v7047_v22 = vor.u32 %v8693_v20, %v7044_v21  ;;  %v6794_v21 = vld [vmem:[#allocation8 + $0x8e8] sm:$0xf] }
 0x1c5   :  { %3080 = vmatpush.bf16.msrb.mxu2 %v7011_v27 }
 0x1c6   :  { %2258 = vmatpush.bf16.msra.mxu3 %v6559_v29  ;;  %v9369_v38 = vpop.f32.mrf.mxu0  ;;  %v6802_v29 = vld [vmem:[#allocation8 + $0x900] sm:$0xf] }
 0x1c7   :  { %v6803_v32 = vor.u32 %v8635_v11, %v6802_v29  ;;  %v6836_v29 = vld [vmem:[#allocation8 + $0x950] sm:$0xf0]  ;;  %v8689_v11 = vld [vmem:[#allocation8 + $0xac4] sm:$0xf] }
 0x1c9   :  { %2259 = vmatmul.bf16.vlgmr.msra.gmra.mxu3 %v9359_v1  ;;  %v8603_v1 = vld [vmem:[#allocation8 + $0x80c] sm:$0xf0]  ;;  %3072 = vmatpush.bf16.msrb.mxu1 %v6803_v32  ;;  %v7028_v32 = vld [vmem:[#allocation8 + $0xad0] sm:$0xf0] }
 0x1ca   :  { %v6675_v25 = vor.u32 %v8603_v1, %v6674_v51  ;;  %3081 = vmatpush.bf16.msrb.mxu2 %v6995_v33  ;;  %v6962_v51 = vld [vmem:[#allocation8 + $0xa40] sm:$0xf]  ;;  %v8675_v1 = vld [vmem:[#allocation8 + $0xa4c] sm:$0xf0]  ;;  %3091 = vmatpush.bf16.msrb.mxu3 %v7171_v46  ;;  %v7031_v33 = vor.u32 %v8689_v11, %v7028_v32  ;;  %v8665_v11 = vld [vmem:[#allocation8 + $0xa04] sm:$0xf] }
 0x1cb   :  { %v6963_v52 = vor.u32 %v8675_v1, %v6962_v51  ;;  %v6804_v51 = vld [vmem:[#allocation8 + $0x910] sm:$0xf0]  ;;  %v8681_v1 = vld [vmem:[#allocation8 + $0xa84] sm:$0xf] }
 0x1cc   :  { %3059 = vmatpush.bf16.msrb.mxu0 %v6675_v25  ;;  %v8605_v25 = vld [vmem:[#allocation8 + $0x824] sm:$0xf] }
 0x1cd   :  { %3117 = vmatpush.bf16.msra.mxu1 %v6919_v40  ;;  %v6695_v55 = vor.u32 %v8605_v25, %v6692_v53  ;;  %v8685_v40 = vld [vmem:[#allocation8 + $0xaa4] sm:$0xf]  ;;  %v6996_v53 = vld [vmem:[#allocation8 + $0xa90] sm:$0xf0] }
 0x1ce   :  { %v2067_v49 = vpop.f32.mrf.mxu0  ;;  %3082 = vmatpush.bf16.msrb.mxu2 %v6979_v62  ;;  %v7015_v62 = vor.u32 %v8685_v40, %v7012_v61  ;;  %v8725_v32 = vld [vmem:[#allocation8 + $0xbe4] sm:$0xf]  ;;  %v1409_v40 = vperm.slane %v9383_v42, 1  ;;  %v6779_v61 = vor.u32 %v8628_v35, %v6778_v34 }
 0x1cf   :  { %v6900_v49 = vld [vmem:[#allocation8 + $0x9d0] sm:$0xf0] }
 0x1d0   :  { %3104 = vmatpush.bf16.msra.mxu0 %v6791_v57  ;;  %v6903_v50 = vor.u32 %v8657_v44, %v6900_v49  ;;  %v6887_v57 = vor.u32 %v8653_v54, %v6884_v56  ;;  %v8715_v44 = vld [vmem:[#allocation8 + $0xb8c] sm:$0xf0]  ;;  %v6999_v54 = vor.u32 %v8681_v1, %v6996_v53  ;;  %v7106_v56 = vld [vmem:[#allocation8 + $0xb60] sm:$0xf]  ;;  %v6746_v53 = vld [vmem:[#allocation8 + $0x888] sm:$0xf] }
 0x1d1   :  { %v7123_v49 = vor.u32 %v8715_v44, %v7122_v43  ;;  %v8624_v43 = vld [vmem:[#allocation8 + $0x8b4] sm:$0xf0]  ;;  %v8721_v44 = vld [vmem:[#allocation8 + $0xbc4] sm:$0xf] }
 0x1d2   :  { %3118 = vmatpush.bf16.msra.mxu1 %v6903_v50  ;;  %3083 = vmatpush.bf16.msrb.mxu2 %v6963_v52  ;;  %v8633_v50 = vld [vmem:[#allocation8 + $0x904] sm:$0xf] }
 0x1d3   :  { %v6807_v25 = vor.u32 %v8633_v50, %v6804_v51 }
 0x1d4   :  { %3105 = vmatpush.bf16.msra.mxu0 %v6775_v6 }
 0x1d6   :  { %v9371_v3 = vpop.f32.mrf.mxu1  ;;  %v9373_v4 = vpop.f32.mrf.mxu0  ;;  %3119 = vmatpush.bf16.msra.mxu1 %v6887_v57  ;;  %3084 = vmatpush.bf16.msrb.mxu2 %v6947_v60  ;;  %v8711_v57 = vld [vmem:[#allocation8 + $0xb6c] sm:$0xf0]  ;;  %v6980_v60 = vld [vmem:[#allocation8 + $0xa70] sm:$0xf0] }
 0x1d7   :  { %v7107_v24 = vor.u32 %v8711_v57, %v7106_v56  ;;  %v6983_v63 = vor.u32 %v8677_v58, %v6980_v60  ;;  %v2118_v51 = vadd.f32 %v9373_v4, %v1409_v40  ;;  %v8717_v56 = vld [vmem:[#allocation8 + $0xba4] sm:$0xf]  ;;  %v7140_v57 = vld [vmem:[#allocation8 + $0xbb0] sm:$0xf0]  ;;  %v8616_v4 = vld [vmem:[#allocation8 + $0x874] sm:$0xf0] }
 0x1d8   :  { %3106 = vmatpush.bf16.msra.mxu0 %v6759_v17  ;;  %v8645_v17 = vld [vmem:[#allocation8 + $0x964] sm:$0xf] }
 0x1d9   :  { %v6855_v19 = vor.u32 %v8645_v17, %v6852_v18  ;;  %v8703_v17 = vld [vmem:[#allocation8 + $0xb2c] sm:$0xf0] }
 0x1da   :  { %3120 = vmatpush.bf16.msra.mxu1 %v6871_v10  ;;  %3085 = vmatpush.bf16.msrb.mxu2 %v6931_v15  ;;  %v8673_v10 = vld [vmem:[#allocation8 + $0xa44] sm:$0xf]  ;;  %v7075_v46 = vor.u32 %v8703_v17, %v7074_v16  ;;  %v6714_v16 = vld [vmem:[#allocation8 + $0x848] sm:$0xf]  ;;  %v8612_v17 = vld [vmem:[#allocation8 + $0x854] sm:$0xf0] }
 0x1db   :  { %v6967_v14 = vor.u32 %v8673_v10, %v6964_v12  ;;  %v7124_v10 = vld [vmem:[#allocation8 + $0xb90] sm:$0xf0] }
 0x1dc   :  { %3107 = vmatpush.bf16.msra.mxu0 %v6743_v28  ;;  %v8641_v28 = vld [vmem:[#allocation8 + $0x944] sm:$0xf] }
 0x1dd   :  { %v6839_v31 = vor.u32 %v8641_v28, %v6836_v29 }
 0x1de   :  { %v2080_v8 = vpop.f32.mrf.mxu1  ;;  %v2119_v26 = vpop.f32.mrf.mxu0  ;;  %3121 = vmatpush.bf16.msra.mxu1 %v6855_v19  ;;  %3130 = vmatpush.bf16.msra.mxu2 %v7047_v22  ;;  %v6948_v19 = vld [vmem:[#allocation8 + $0xa30] sm:$0xf0]  ;;  %v8632_v22 = vld [vmem:[#allocation8 + $0x8f4] sm:$0xf0] }
 0x1df   :  { %v8723_v8 = vld [vmem:[#allocation8 + $0xbcc] sm:$0xf0] }
 0x1e0   :  { %3108 = vmatpush.bf16.msra.mxu0 %v6727_v37  ;;  %v7155_v27 = vor.u32 %v8723_v8, %v7154_v23  ;;  %v8637_v37 = vld [vmem:[#allocation8 + $0x924] sm:$0xf] }
 0x1e1   :  { %v6823_v41 = vor.u32 %v8637_v37, %v6820_v39  ;;  %v7172_v37 = vld [vmem:[#allocation8 + $0xbf0] sm:$0xf0] }
 0x1e2   :  { %3092 = vmatpush.bf16.msrb.mxu3 %v7155_v27  ;;  %3122 = vmatpush.bf16.msra.mxu1 %v6839_v31  ;;  %v7058_v27 = vld [vmem:[#allocation8 + $0xb00] sm:$0xf]  ;;  %v6932_v31 = vld [vmem:[#allocation8 + $0xa10] sm:$0xf0]  ;;  %v7175_v39 = vor.u32 %v8725_v32, %v7172_v37  ;;  %v8604_v37 = vld [vmem:[#allocation8 + $0x814] sm:$0xf0] }
 0x1e3   :  { %3131 = vmatpush.bf16.msra.mxu2 %v7031_v33 }
 0x1e4   :  { %3109 = vmatpush.bf16.msra.mxu0 %v6711_v48 }
 0x1e6   :  { %v9375_v45 = vpop.f32.mrf.mxu1  ;;  %v9377_v47 = vpop.f32.mrf.mxu0  ;;  %3093 = vmatpush.bf16.msrb.mxu3 %v7139_v36  ;;  %3123 = vmatpush.bf16.msra.mxu1 %v6823_v41  ;;  %v6935_v36 = vor.u32 %v8665_v11, %v6932_v31  ;;  %v7092_v11 = vld [vmem:[#allocation8 + $0xb50] sm:$0xf0] }
 0x1e7   :  { %3132 = vmatpush.bf16.msra.mxu2 %v7015_v62  ;;  %v6762_v62 = vld [vmem:[#allocation8 + $0x8a8] sm:$0xf] }
 0x1e8   :  { %3110 = vmatpush.bf16.msra.mxu0 %v6695_v55  ;;  %v1408_v55 = vperm.slane %v9383_v42, 0 }
 0x1ea   :  { %3094 = vmatpush.bf16.msrb.mxu3 %v7123_v49  ;;  %3124 = vmatpush.bf16.msra.mxu1 %v6807_v25  ;;  %v2066_v2 = vadd.f32 %v9369_v38, %v1408_v55  ;;  %v8669_v38 = vld [vmem:[#allocation8 + $0xa24] sm:$0xf]  ;;  %v7156_v49 = vld [vmem:[#allocation8 + $0xbd0] sm:$0xf0]  ;;  %v6763_v25 = vor.u32 %v8624_v43, %v6762_v62  ;;  %v8620_v55 = vld [vmem:[#allocation8 + $0x894] sm:$0xf0] }
 0x1eb   :  { %3133 = vmatpush.bf16.msra.mxu2 %v6999_v54  ;;  %v6951_v23 = vor.u32 %v8669_v38, %v6948_v19  ;;  %v7159_v50 = vor.u32 %v8721_v44, %v7156_v49  ;;  %v2131_v54 = vadd.f32 %v9375_v45, %v2118_v51  ;;  %v8709_v38 = vld [vmem:[#allocation8 + $0xb64] sm:$0xf]  ;;  %v7108_v19 = vld [vmem:[#allocation8 + $0xb70] sm:$0xf0]  ;;  %v8630_v43 = vld [vmem:[#allocation8 + $0x8ec] sm:$0xf] }
 0x1ec   :  { %3111 = vmatpush.bf16.msra.mxu0 %v6679_v7  ;;  %v2079_v13 = vadd.f32 %v9371_v3, %v2066_v2  ;;  %v8699_v3 = vld [vmem:[#allocation8 + $0xb0c] sm:$0xf0]  ;;  %v6730_v2 = vld [vmem:[#allocation8 + $0x868] sm:$0xf]  ;;  %v7076_v62 = vld [vmem:[#allocation8 + $0xb30] sm:$0xf0] }
 0x1ed   :  { %v9379_v59 = vpop.f32.mrf.mxu2  ;;  %v7059_v29 = vor.u32 %v8699_v3, %v7058_v27  ;;  %v8608_v27 = vld [vmem:[#allocation8 + $0x834] sm:$0xf0]  ;;  %v6890_v3 = vld [vmem:[#allocation8 + $0x9a8] sm:$0xf]  ;;  %v6796_v44 = vld [vmem:[#allocation8 + $0x8f8] sm:$0xf0] }
 0x1ee   :  { %v2132_v5 = vpop.f32.mrf.mxu1  ;;  %v2171_v6 = vpop.f32.mrf.mxu0  ;;  %3095 = vmatpush.bf16.msrb.mxu3 %v7107_v24  ;;  %v2092_v15 = vadd.f32 %v9379_v59, %v2079_v13  ;;  %v6795_v59 = vor.u32 %v8632_v22, %v6794_v21  ;;  %v7143_v24 = vor.u32 %v8717_v56, %v7140_v57  ;;  %v1410_v21 = vperm.slane %v9383_v42, 2  ;;  %v7050_v56 = vld [vmem:[#allocation8 + $0xae8] sm:$0xf]  ;;  %v8697_v57 = vld [vmem:[#allocation8 + $0xb04] sm:$0xf] }
 0x1ef   :  { %v7090_v5 = vld [vmem:[#allocation8 + $0xb40] sm:$0xf]  ;;  %v8707_v6 = vld [vmem:[#allocation8 + $0xb4c] sm:$0xf0]  ;;  %3134 = vmatpush.bf16.msra.mxu2 %v6983_v63  ;;  %v6747_v63 = vor.u32 %v8620_v55, %v6746_v53  ;;  %v8648_v53 = vld [vmem:[#allocation8 + $0x974] sm:$0xf0] }
 0x1f0   :  { %v7091_v9 = vor.u32 %v8707_v6, %v7090_v5  ;;  %v6922_v5 = vld [vmem:[#allocation8 + $0x9e8] sm:$0xf]  ;;  %v2170_v32 = vadd.f32 %v9377_v47, %v1410_v21  ;;  %v8688_v21 = vld [vmem:[#allocation8 + $0xab4] sm:$0xf0] }
 0x1f2   :  { %3096 = vmatpush.bf16.msrb.mxu3 %v7091_v9  ;;  %v8713_v9 = vld [vmem:[#allocation8 + $0xb84] sm:$0xf] }
 0x1f3   :  { %3135 = vmatpush.bf16.msra.mxu2 %v6967_v14  ;;  %v7127_v12 = vor.u32 %v8713_v9, %v7124_v10  ;;  %v6731_v14 = vor.u32 %v8616_v4, %v6730_v2  ;;  %v6842_v9 = vld [vmem:[#allocation8 + $0x948] sm:$0xf]  ;;  %v8644_v10 = vld [vmem:[#allocation8 + $0x954] sm:$0xf0] }
 0x1f5   :  { %v2093_v26 = vpop.f32.mrf.mxu2 }
 0x1f6   :  { %3097 = vmatpush.bf16.msrb.mxu3 %v7075_v46  ;;  %v8660_v46 = vld [vmem:[#allocation8 + $0x9d4] sm:$0xf0] }
 0x1f7   :  { %v9381_v30 = vpop.f32.mrf.mxu1  ;;  %3136 = vmatpush.bf16.msra.mxu2 %v6951_v23  ;;  %v6715_v23 = vor.u32 %v8612_v17, %v6714_v16  ;;  %v6843_v16 = vor.u32 %v8644_v10, %v6842_v9  ;;  %v6876_v9 = vld [vmem:[#allocation8 + $0x998] sm:$0xf0] }
 0x1f8   :  { %v2183_v40 = vadd.f32 %v9381_v30, %v2170_v32  ;;  %v6799_v30 = vor.u32 %v8630_v43, %v6796_v44  ;;  %v6732_v32 = vld [vmem:[#allocation8 + $0x878] sm:$0xf0]  ;;  %v8658_v44 = vld [vmem:[#allocation8 + $0x9cc] sm:$0xf] }
 0x1f9   :  { %v6716_v43 = vld [vmem:[#allocation8 + $0x858] sm:$0xf0] }
 0x1fa   :  { %3098 = vmatpush.bf16.msrb.mxu3 %v7059_v29  ;;  %v8705_v29 = vld [vmem:[#allocation8 + $0xb44] sm:$0xf] }
 0x1fb   :  { %3137 = vmatpush.bf16.msra.mxu2 %v6935_v36  ;;  %v7095_v31 = vor.u32 %v8705_v29, %v7092_v11  ;;  %v6682_v36 = vld [vmem:[#allocation8 + $0x808] sm:$0xf]  ;;  %v8684_v11 = vld [vmem:[#allocation8 + $0xa94] sm:$0xf0] }
 0x1fc   :  { %v6683_v51 = vor.u32 %v8604_v37, %v6682_v36  ;;  %v7002_v29 = vld [vmem:[#allocation8 + $0xa88] sm:$0xf] }
 0x1fd   :  { %v7003_v37 = vor.u32 %v8684_v11, %v7002_v29  ;;  %v8690_v29 = vld [vmem:[#allocation8 + $0xacc] sm:$0xf]  ;;  %v7036_v11 = vld [vmem:[#allocation8 + $0xad8] sm:$0xf0] }
 0x1fe   :  { %v9385_v48 = vpop.f32.mrf.mxu2  ;;  %3143 = vmatpush.bf16.msra.mxu3 %v7175_v39  ;;  %v6874_v39 = vld [vmem:[#allocation8 + $0x988] sm:$0xf] }
 0x1ff   :  { %v2184_v52 = vpop.f32.mrf.mxu1  ;;  %v2144_v58 = vadd.f32 %v9385_v48, %v2131_v54  ;;  %v6906_v48 = vld [vmem:[#allocation8 + $0x9c8] sm:$0xf] }
 0x202   :  { %3144 = vmatpush.bf16.msra.mxu3 %v7159_v50 }
 0x206   :  { %v9388_v0 = vpop.f32.mrf.mxu0  ;;  %v2145_v7 = vpop.f32.mrf.mxu2  ;;  %3145 = vmatpush.bf16.msra.mxu3 %v7143_v24  ;;  %v7060_v24 = vld [vmem:[#allocation8 + $0xb10] sm:$0xf0] }
 0x207   :  { %v8664_v7 = vld [vmem:[#allocation8 + $0x9f4] sm:$0xf0]  ;;  %v7063_v2 = vor.u32 %v8697_v57, %v7060_v24  ;;  %v6892_v57 = vld [vmem:[#allocation8 + $0x9b8] sm:$0xf0] }
 0x20a   :  { %3146 = vmatpush.bf16.msra.mxu3 %v7127_v12  ;;  %v7034_v12 = vld [vmem:[#allocation8 + $0xac8] sm:$0xf] }
 0x20c   :  { %v2104_v18 = vpop.f32.mrf.mxu3 }
 0x20d   :  { %v2105_v20 = vadd.f32 %v2104_v18, %v2092_v15  ;;  %v6923_v15 = vor.u32 %v8664_v7, %v6922_v5 }
 0x20e   :  { %v2223_v8 = vpop.f32.mrf.mxu0  ;;  %v9393_v28 = vpop.f32.mrf.mxu2 }
 0x20f   :  { %v2264_v26 = vmax.f32 %v2105_v20, 0.0  ;;  %v7111_v20 = vor.u32 %v8709_v38, %v7108_v19  ;;  %v6907_v8 = vor.u32 %v8660_v46, %v6906_v48  ;;  %v2196_v50 = vadd.f32 %v9393_v28, %v2183_v40  ;;  %v6826_v38 = vld [vmem:[#allocation8 + $0x928] sm:$0xf]  ;;  %v8640_v19 = vld [vmem:[#allocation8 + $0x934] sm:$0xf0] }
 0x210   :  { %v6986_v40 = vld [vmem:[#allocation8 + $0xa68] sm:$0xf] }
 0x211   :  { %v9395_v33 = vpack.c.bf16 %v2264_v26, %v2264_v26  ;;  %v6698_v26 = vld [vmem:[#allocation8 + $0x828] sm:$0xf]  ;;  %3147 = vmatpush.bf16.msra.mxu3 %v7111_v20 }
 0x212   :  { %v6699_v34 = vor.u32 %v8608_v27, %v6698_v26  ;;  %v7018_v20 = vld [vmem:[#allocation8 + $0xaa8] sm:$0xf] }
 0x213   :  { %3060 = vmatmul.bf16.vlgmr.msrb.gmra.mxu0 %v9395_v33  ;;  %v7019_v26 = vor.u32 %v8688_v21, %v7018_v20 }
 0x214   :  { %3156 = vmatpush.bf16.msrb.mxu0 %v6795_v59  ;;  %v2106_v41 = vpop.f32.mrf.mxu3  ;;  %v8656_v59 = vld [vmem:[#allocation8 + $0x9b4] sm:$0xf0] }
 0x215   :  { %v6891_v35 = vor.u32 %v8656_v59, %v6890_v3  ;;  %v8652_v41 = vld [vmem:[#allocation8 + $0x994] sm:$0xf0]  ;;  %3148 = vmatpush.bf16.msra.mxu3 %v7095_v31  ;;  %v6810_v3 = vld [vmem:[#allocation8 + $0x908] sm:$0xf]  ;;  %v8614_v31 = vld [vmem:[#allocation8 + $0x86c] sm:$0xf] }
 0x216   :  { %v2197_v52 = vpop.f32.mrf.mxu2  ;;  %v8636_v59 = vld [vmem:[#allocation8 + $0x914] sm:$0xf0] }
 0x217   :  { %v9400_v1 = vpop.f32.mrf.mxu1  ;;  %v6875_v52 = vor.u32 %v8652_v41, %v6874_v39  ;;  %v6811_v36 = vor.u32 %v8636_v59, %v6810_v3  ;;  %v6735_v39 = vor.u32 %v8614_v31, %v6732_v32  ;;  %v8642_v3 = vld [vmem:[#allocation8 + $0x94c] sm:$0xf]  ;;  %v6844_v59 = vld [vmem:[#allocation8 + $0x958] sm:$0xf0] }
 0x218   :  { %3157 = vmatpush.bf16.msrb.mxu0 %v6779_v61  ;;  %v8701_v61 = vld [vmem:[#allocation8 + $0xb24] sm:$0xf] }
 0x219   :  { %v7079_v49 = vor.u32 %v8701_v61, %v7076_v62  ;;  %v8680_v61 = vld [vmem:[#allocation8 + $0xa74] sm:$0xf0]  ;;  %v8610_v62 = vld [vmem:[#allocation8 + $0x84c] sm:$0xf] }
 0x21b   :  { %3149 = vmatpush.bf16.msra.mxu3 %v7079_v49  ;;  %v6908_v49 = vld [vmem:[#allocation8 + $0x9d8] sm:$0xf0] }
 0x21c   :  { %3158 = vmatpush.bf16.msrb.mxu0 %v6763_v25  ;;  %v2156_v60 = vpop.f32.mrf.mxu3  ;;  %v6858_v25 = vld [vmem:[#allocation8 + $0x968] sm:$0xf] }
 0x21d   :  { %v2157_v6 = vadd.f32 %v2156_v60, %v2144_v58  ;;  %v8696_v58 = vld [vmem:[#allocation8 + $0xaf4] sm:$0xf0]  ;;  %v8626_v60 = vld [vmem:[#allocation8 + $0x8cc] sm:$0xf]  ;;  %v6859_v4 = vor.u32 %v8648_v53, %v6858_v25  ;;  %v6911_v25 = vor.u32 %v8658_v44, %v6908_v49  ;;  %v7130_v44 = vld [vmem:[#allocation8 + $0xb88] sm:$0xf] }
 0x21e   :  { %v8676_v53 = vld [vmem:[#allocation8 + $0xa54] sm:$0xf0] }
 0x21f   :  { %v2265_v45 = vmax.f32 %v2157_v6, 0.0  ;;  %v2236_v13 = vpop.f32.mrf.mxu1  ;;  %v7051_v6 = vor.u32 %v8696_v58, %v7050_v56  ;;  %3150 = vmatpush.bf16.msra.mxu3 %v7063_v2  ;;  %v8654_v56 = vld [vmem:[#allocation8 + $0x9ac] sm:$0xf]  ;;  %v8716_v49 = vld [vmem:[#allocation8 + $0xb94] sm:$0xf0] }
 0x220   :  { %3159 = vmatpush.bf16.msrb.mxu0 %v6747_v63  ;;  %v6780_v63 = vld [vmem:[#allocation8 + $0x8d8] sm:$0xf0]  ;;  %v8622_v13 = vld [vmem:[#allocation8 + $0x8ac] sm:$0xf]  ;;  %v6895_v2 = vor.u32 %v8654_v56, %v6892_v57  ;;  %v8712_v56 = vld [vmem:[#allocation8 + $0xb74] sm:$0xf0] }
 0x221   :  { %v9404_v18 = vpack.c.bf16 %v2265_v45, %v2265_v45  ;;  %v6783_v7 = vor.u32 %v8626_v60, %v6780_v63  ;;  %v8692_v45 = vld [vmem:[#allocation8 + $0xad4] sm:$0xf0]  ;;  %v6954_v60 = vld [vmem:[#allocation8 + $0xa28] sm:$0xf]  ;;  %v8678_v57 = vld [vmem:[#allocation8 + $0xa6c] sm:$0xf] }
 0x222   :  { %v7035_v48 = vor.u32 %v8692_v45, %v7034_v12 }
 0x223   :  { %3073 = vmatmul.bf16.vlgmr.msrb.gmra.mxu1 %v9404_v18  ;;  %3112 = vmatmul.bf16.vlgmr.msra.gmra.mxu0 %v9395_v33 }
 0x224   :  { %3160 = vmatpush.bf16.msrb.mxu0 %v6731_v14  ;;  %3169 = vmatpush.bf16.msrb.mxu1 %v6923_v15  ;;  %v2158_v22 = vpop.f32.mrf.mxu3  ;;  %v6764_v14 = vld [vmem:[#allocation8 + $0x8b8] sm:$0xf0] }
 0x225   :  { %v6767_v46 = vor.u32 %v8622_v13, %v6764_v14  ;;  %v8618_v22 = vld [vmem:[#allocation8 + $0x88c] sm:$0xf]  ;;  %v6938_v13 = vld [vmem:[#allocation8 + $0xa08] sm:$0xf]  ;;  %v8668_v14 = vld [vmem:[#allocation8 + $0xa14] sm:$0xf0] }
 0x228   :  { %3161 = vmatpush.bf16.msrb.mxu0 %v6715_v23  ;;  %3170 = vmatpush.bf16.msrb.mxu1 %v6907_v8  ;;  %v6748_v23 = vld [vmem:[#allocation8 + $0x898] sm:$0xf0]  ;;  %v6827_v8 = vor.u32 %v8640_v19, %v6826_v38  ;;  %v8694_v38 = vld [vmem:[#allocation8 + $0xaec] sm:$0xf] }
 0x229   :  { %v6751_v27 = vor.u32 %v8618_v22, %v6748_v23  ;;  %v7052_v19 = vld [vmem:[#allocation8 + $0xaf8] sm:$0xf0] }
 0x22c   :  { %3162 = vmatpush.bf16.msrb.mxu0 %v6699_v34  ;;  %3171 = vmatpush.bf16.msrb.mxu1 %v6891_v35  ;;  %v2208_v47 = vpop.f32.mrf.mxu3  ;;  %v8662_v34 = vld [vmem:[#allocation8 + $0x9ec] sm:$0xf]  ;;  %v6924_v35 = vld [vmem:[#allocation8 + $0x9f8] sm:$0xf0] }
 0x22d   :  { %v2209_v54 = vadd.f32 %v2208_v47, %v2196_v50  ;;  %v6927_v41 = vor.u32 %v8662_v34, %v6924_v35  ;;  %v1411_v50 = vperm.slane %v9383_v42, 3  ;;  %v6987_v47 = vor.u32 %v8680_v61, %v6986_v40  ;;  %v6828_v40 = vld [vmem:[#allocation8 + $0x938] sm:$0xf0] }
 0x22e   :  { %v9412_v55 = vpop.f32.mrf.mxu2  ;;  %v6847_v34 = vor.u32 %v8642_v3, %v6844_v59  ;;  %v7039_v35 = vor.u32 %v8690_v29, %v7036_v11  ;;  %v7020_v61 = vld [vmem:[#allocation8 + $0xab8] sm:$0xf0]  ;;  %v8710_v3 = vld [vmem:[#allocation8 + $0xb6c] sm:$0xf]  ;;  %v7298_v29 = vld [vmem:[#allocation8 + $0xce0] sm:$0xf] }
 0x22f   :  { %v2266_v28 = vmax.f32 %v2209_v54, 0.0  ;;  %v8606_v54 = vld [vmem:[#allocation8 + $0x82c] sm:$0xf]  ;;  %v2222_v24 = vadd.f32 %v9388_v0, %v1411_v50  ;;  %v7116_v59 = vld [vmem:[#allocation8 + $0xb78] sm:$0xf0] }
 0x230   :  { %3163 = vmatpush.bf16.msrb.mxu0 %v6683_v51  ;;  %3172 = vmatpush.bf16.msrb.mxu1 %v6875_v52  ;;  %v6719_v51 = vor.u32 %v8610_v62, %v6716_v43  ;;  %v6970_v52 = vld [vmem:[#allocation8 + $0xa48] sm:$0xf]  ;;  %v8634_v50 = vld [vmem:[#allocation8 + $0x90c] sm:$0xf]  ;;  %v8759_v11 = vld [vmem:[#allocation8 + $0xcec] sm:$0xf0] }
 0x231   :  { %v9414_v5 = vpack.c.bf16 %v2266_v28, %v2266_v28  ;;  %v6971_v42 = vor.u32 %v8676_v53, %v6970_v52  ;;  %v2235_v63 = vadd.f32 %v9400_v1, %v2222_v24  ;;  %v8672_v28 = vld [vmem:[#allocation8 + $0xa34] sm:$0xf0]  ;;  %v7178_v1 = vld [vmem:[#allocation8 + $0xbe8] sm:$0xf]  ;;  %v7004_v52 = vld [vmem:[#allocation8 + $0xa98] sm:$0xf0] }
 0x232   :  { %v6955_v0 = vor.u32 %v8672_v28, %v6954_v60  ;;  %v6988_v24 = vld [vmem:[#allocation8 + $0xa78] sm:$0xf0]  ;;  %v7098_v60 = vld [vmem:[#allocation8 + $0xb48] sm:$0xf] }
 0x233   :  { %3086 = vmatmul.bf16.vlgmr.msrb.gmra.mxu2 %v9414_v5  ;;  %3125 = vmatmul.bf16.vlgmr.msra.gmra.mxu1 %v9404_v18  ;;  %v2248_v10 = vadd.f32 %v9412_v55, %v2235_v63  ;;  %v6939_v55 = vor.u32 %v8668_v14, %v6938_v13  ;;  %v8708_v63 = vld [vmem:[#allocation8 + $0xb54] sm:$0xf0]  ;;  %v6972_v28 = vld [vmem:[#allocation8 + $0xa58] sm:$0xf0]  ;;  %v7066_v13 = vld [vmem:[#allocation8 + $0xb08] sm:$0xf] }
 0x234   :  { %3208 = vmatpush.bf16.msra.mxu0 %v6799_v30  ;;  %3173 = vmatpush.bf16.msrb.mxu1 %v6859_v4  ;;  %v2210_v15 = vpop.f32.mrf.mxu3  ;;  %v6700_v30 = vld [vmem:[#allocation8 + $0x838] sm:$0xf0]  ;;  %v8602_v4 = vld [vmem:[#allocation8 + $0x80c] sm:$0xf]  ;;  %v8700_v14 = vld [vmem:[#allocation8 + $0xb14] sm:$0xf0] }
 0x235   :  { %3164 = vmatmul.bf16.vlgmr.msrb.gmra.mxu0 %v9395_v33  ;;  %3182 = vmatpush.bf16.msrb.mxu2 %v7051_v6  ;;  %v6703_v58 = vor.u32 %v8606_v54, %v6700_v30  ;;  %v6684_v6 = vld [vmem:[#allocation8 + $0x818] sm:$0xf0]  ;;  %v7114_v30 = vld [vmem:[#allocation8 + $0xb68] sm:$0xf] }
 0x236   :  { %v2249_v17 = vpop.f32.mrf.mxu2  ;;  %v6687_v45 = vor.u32 %v8602_v4, %v6684_v6  ;;  %v7099_v4 = vor.u32 %v8708_v63, %v7098_v60  ;;  %v7410_v60 = vld [vmem:[#allocation8 + $0xdc0] sm:$0xf] }
 0x237   :  { %v8728_v17 = vld [vmem:[#allocation8 + $0xbf4] sm:$0xf0] }
 0x238   :  { %3209 = vmatpush.bf16.msra.mxu0 %v6783_v7  ;;  %3174 = vmatpush.bf16.msrb.mxu1 %v6843_v16  ;;  %v8650_v7 = vld [vmem:[#allocation8 + $0x98c] sm:$0xf]  ;;  %v7179_v21 = vor.u32 %v8728_v17, %v7178_v1  ;;  %v7180_v17 = vld [vmem:[#allocation8 + $0xbf8] sm:$0xf0] }
 0x239   :  { %3183 = vmatpush.bf16.msrb.mxu2 %v7035_v48  ;;  %v6879_v16 = vor.u32 %v8650_v7, %v6876_v9  ;;  %v8646_v48 = vld [vmem:[#allocation8 + $0x96c] sm:$0xf]  ;;  %v7082_v7 = vld [vmem:[#allocation8 + $0xb28] sm:$0xf]  ;;  %v8704_v9 = vld [vmem:[#allocation8 + $0xb34] sm:$0xf0] }
 0x23a   :  { %v8726_v1 = vld [vmem:[#allocation8 + $0xbec] sm:$0xf] }
 0x23c   :  { %3210 = vmatpush.bf16.msra.mxu0 %v6767_v46  ;;  %3175 = vmatpush.bf16.msrb.mxu1 %v6827_v8  ;;  %v6860_v46 = vld [vmem:[#allocation8 + $0x978] sm:$0xf0]  ;;  %v7055_v8 = vor.u32 %v8694_v38, %v7052_v19  ;;  %v8722_v38 = vld [vmem:[#allocation8 + $0xbcc] sm:$0xf] }
 0x23d   :  { %3184 = vmatpush.bf16.msrb.mxu2 %v7019_v26  ;;  %v6863_v23 = vor.u32 %v8646_v48, %v6860_v46  ;;  %v7162_v26 = vld [vmem:[#allocation8 + $0xbc8] sm:$0xf]  ;;  %v7067_v48 = vor.u32 %v8700_v14, %v7066_v13  ;;  %v7183_v46 = vor.u32 %v8726_v1, %v7180_v17  ;;  %v7164_v19 = vld [vmem:[#allocation8 + $0xbd8] sm:$0xf0]  ;;  %v7378_v13 = vld [vmem:[#allocation8 + $0xd80] sm:$0xf] }
 0x23e   :  { %v7300_v1 = vld [vmem:[#allocation8 + $0xcf0] sm:$0xf0] }
 0x240   :  { %3211 = vmatpush.bf16.msra.mxu0 %v6751_v27  ;;  %3176 = vmatpush.bf16.msrb.mxu1 %v6811_v36  ;;  %v8724_v27 = vld [vmem:[#allocation8 + $0xbd4] sm:$0xf0]  ;;  %v7146_v36 = vld [vmem:[#allocation8 + $0xba8] sm:$0xf] }
 0x241   :  { %3185 = vmatpush.bf16.msrb.mxu2 %v7003_v37  ;;  %v7163_v32 = vor.u32 %v8724_v27, %v7162_v26  ;;  %v8720_v37 = vld [vmem:[#allocation8 + $0xbb4] sm:$0xf0]  ;;  %v7132_v26 = vld [vmem:[#allocation8 + $0xb98] sm:$0xf0] }
 0x242   :  { %v7147_v62 = vor.u32 %v8720_v37, %v7146_v36  ;;  %v8702_v37 = vld [vmem:[#allocation8 + $0xb2c] sm:$0xf] }
 0x243   :  { %3138 = vmatmul.bf16.vlgmr.msra.gmra.mxu2 %v9414_v5  ;;  %3177 = vmatmul.bf16.vlgmr.msrb.gmra.mxu1 %v9404_v18 }
 0x244   :  { %3212 = vmatpush.bf16.msra.mxu0 %v6735_v39  ;;  %3221 = vmatpush.bf16.msra.mxu1 %v6927_v41  ;;  %v8638_v39 = vld [vmem:[#allocation8 + $0x92c] sm:$0xf] }
 0x245   :  { %3186 = vmatpush.bf16.msrb.mxu2 %v6987_v47  ;;  %v8686_v41 = vld [vmem:[#allocation8 + $0xaac] sm:$0xf]  ;;  %v6812_v47 = vld [vmem:[#allocation8 + $0x918] sm:$0xf0] }
 0x246   :  { %v7023_v43 = vor.u32 %v8686_v41, %v7020_v61  ;;  %v6815_v53 = vor.u32 %v8634_v50, %v6812_v47  ;;  %v7250_v47 = vld [vmem:[#allocation8 + $0xc80] sm:$0xf] }
 0x248   :  { %3213 = vmatpush.bf16.msra.mxu0 %v6719_v51  ;;  %3222 = vmatpush.bf16.msra.mxu1 %v6911_v25  ;;  %v8682_v51 = vld [vmem:[#allocation8 + $0xa8c] sm:$0xf]  ;;  %v7131_v25 = vor.u32 %v8716_v49, %v7130_v44  ;;  %v7068_v44 = vld [vmem:[#allocation8 + $0xb18] sm:$0xf0] }
 0x249   :  { %3187 = vmatpush.bf16.msrb.mxu2 %v6971_v42  ;;  %v7007_v54 = vor.u32 %v8682_v51, %v7004_v52  ;;  %v7115_v42 = vor.u32 %v8712_v56, %v7114_v30  ;;  %v8747_v51 = vld [vmem:[#allocation8 + $0xc8c] sm:$0xf0]  ;;  %v7234_v52 = vld [vmem:[#allocation8 + $0xc60] sm:$0xf] }
 0x24a   :  { %v8791_v30 = vld [vmem:[#allocation8 + $0xdec] sm:$0xf0] }
 0x24c   :  { %v2260_v12 = vpop.f32.mrf.mxu3  ;;  %3214 = vmatpush.bf16.msra.mxu0 %v6703_v58  ;;  %3223 = vmatpush.bf16.msra.mxu1 %v6895_v2  ;;  %v6991_v58 = vor.u32 %v8678_v57, %v6988_v24  ;;  %v8674_v2 = vld [vmem:[#allocation8 + $0xa4c] sm:$0xf] }
 0x24d   :  { %v2261_v15 = vadd.f32 %v2260_v12, %v2248_v10  ;;  %3188 = vmatpush.bf16.msrb.mxu2 %v6955_v0  ;;  %v6975_v6 = vor.u32 %v8674_v2, %v6972_v28  ;;  %v8670_v10 = vld [vmem:[#allocation8 + $0xa2c] sm:$0xf]  ;;  %v6956_v12 = vld [vmem:[#allocation8 + $0xa38] sm:$0xf0]  ;;  %v7083_v0 = vor.u32 %v8704_v9, %v7082_v7  ;;  %v8787_v2 = vld [vmem:[#allocation8 + $0xdcc] sm:$0xf0] }
 0x24e   :  { %v7411_v28 = vor.u32 %v8787_v2, %v7410_v60  ;;  %v7394_v7 = vld [vmem:[#allocation8 + $0xda0] sm:$0xf]  ;;  %v8737_v2 = vld [vmem:[#allocation8 + $0xc44] sm:$0xf] }
 0x24f   :  { %v2267_v20 = vmax.f32 %v2261_v15, 0.0  ;;  %v8666_v15 = vld [vmem:[#allocation8 + $0xa0c] sm:$0xf]  ;;  %v7490_v60 = vld [vmem:[#allocation8 + $0xe60] sm:$0xf] }
 0x250   :  { %3215 = vmatpush.bf16.msra.mxu0 %v6687_v45  ;;  %3224 = vmatpush.bf16.msra.mxu1 %v6879_v16  ;;  %v6959_v45 = vor.u32 %v8670_v10, %v6956_v12  ;;  %v6940_v16 = vld [vmem:[#allocation8 + $0xa18] sm:$0xf0]  ;;  %v8783_v10 = vld [vmem:[#allocation8 + $0xdac] sm:$0xf0] }
 0x251   :  { %v9425_v22 = vpack.c.bf16 %v2267_v20, %v2267_v20  ;;  %3189 = vmatpush.bf16.msrb.mxu2 %v6939_v55  ;;  %v7167_v20 = vor.u32 %v8722_v38, %v7164_v19  ;;  %v8718_v55 = vld [vmem:[#allocation8 + $0xbac] sm:$0xf]  ;;  %v7554_v38 = vld [vmem:[#allocation8 + $0xee0] sm:$0xf] }
 0x253   :  { %3099 = vmatmul.bf16.vlgmr.msrb.gmra.mxu3 %v9425_v22  ;;  %3216 = vmatmul.bf16.vlgmr.msra.gmra.mxu0 %v9395_v33  ;;  %v6831_v33 = vor.u32 %v8638_v39, %v6828_v40  ;;  %v7282_v39 = vld [vmem:[#allocation8 + $0xcc0] sm:$0xf]  ;;  %v8755_v40 = vld [vmem:[#allocation8 + $0xccc] sm:$0xf0] }
 0x254   :  { %3195 = vmatpush.bf16.msrb.mxu3 %v7179_v21  ;;  %v2262_v31 = vpop.f32.mrf.mxu3  ;;  %3225 = vmatpush.bf16.msra.mxu1 %v6863_v23  ;;  %v7148_v21 = vld [vmem:[#allocation8 + $0xbb8] sm:$0xf0]  ;;  %v7283_v61 = vor.u32 %v8755_v40, %v7282_v39  ;;  %v7522_v39 = vld [vmem:[#allocation8 + $0xea0] sm:$0xf] }
 0x255   :  { %3234 = vmatpush.bf16.msra.mxu2 %v7055_v8  ;;  %v7151_v23 = vor.u32 %v8718_v55, %v7148_v21  ;;  %v8714_v8 = vld [vmem:[#allocation8 + $0xb8c] sm:$0xf]  ;;  %v7299_v31 = vor.u32 %v8759_v11, %v7298_v29  ;;  %v8753_v55 = vld [vmem:[#allocation8 + $0xcc4] sm:$0xf]  ;;  %v7284_v21 = vld [vmem:[#allocation8 + $0xcd0] sm:$0xf0] }
 0x256   :  { %3190 = vmatmul.bf16.vlgmr.msrb.gmra.mxu2 %v9414_v5  ;;  %v7135_v27 = vor.u32 %v8714_v8, %v7132_v26  ;;  %v7538_v29 = vld [vmem:[#allocation8 + $0xec0] sm:$0xf] }
 0x257   :  { %4048 = vmatpush.bf16.msrb.mxu0 %v7299_v31  ;;  %v8819_v31 = vld [vmem:[#allocation8 + $0xecc] sm:$0xf0] }
 0x258   :  { %3196 = vmatpush.bf16.msrb.mxu3 %v7163_v32  ;;  %3226 = vmatpush.bf16.msra.mxu1 %v6847_v34  ;;  %v7119_v32 = vor.u32 %v8710_v3, %v7116_v59  ;;  %v8706_v34 = vld [vmem:[#allocation8 + $0xb4c] sm:$0xf]  ;;  %v7346_v3 = vld [vmem:[#allocation8 + $0xd40] sm:$0xf]  ;;  %v8771_v59 = vld [vmem:[#allocation8 + $0xd4c] sm:$0xf0] }
 0x259   :  { %3235 = vmatpush.bf16.msra.mxu2 %v7039_v35  ;;  %v7100_v35 = vld [vmem:[#allocation8 + $0xb58] sm:$0xf0]  ;;  %v7347_v11 = vor.u32 %v8771_v59, %v7346_v3  ;;  %v7380_v3 = vld [vmem:[#allocation8 + $0xd90] sm:$0xf0] }
 0x25a   :  { %v7103_v36 = vor.u32 %v8706_v34, %v7100_v35  ;;  %v7268_v34 = vld [vmem:[#allocation8 + $0xcb0] sm:$0xf0]  ;;  %v7539_v35 = vor.u32 %v8819_v31, %v7538_v29  ;;  %v8795_v31 = vld [vmem:[#allocation8 + $0xe0c] sm:$0xf0] }
 0x25b   :  { %4049 = vmatpush.bf16.msrb.mxu0 %v7283_v61  ;;  %v8745_v61 = vld [vmem:[#allocation8 + $0xc84] sm:$0xf] }
 0x25c   :  { %3197 = vmatpush.bf16.msrb.mxu3 %v7147_v62  ;;  %3227 = vmatpush.bf16.msra.mxu1 %v6831_v33  ;;  %v7266_v62 = vld [vmem:[#allocation8 + $0xca0] sm:$0xf]  ;;  %v8751_v33 = vld [vmem:[#allocation8 + $0xcac] sm:$0xf0] }
 0x25d   :  { %3236 = vmatpush.bf16.msra.mxu2 %v7023_v43  ;;  %v8698_v43 = vld [vmem:[#allocation8 + $0xb0c] sm:$0xf]  ;;  %v7267_v49 = vor.u32 %v8751_v33, %v7266_v62  ;;  %v7252_v62 = vld [vmem:[#allocation8 + $0xc90] sm:$0xf0] }
 0x25e   :  { %v7071_v50 = vor.u32 %v8698_v43, %v7068_v44 }
 0x25f   :  { %4050 = vmatpush.bf16.msrb.mxu0 %v7267_v49  ;;  %v7255_v49 = vor.u32 %v8745_v61, %v7252_v62 }
 0x260   :  { %3198 = vmatpush.bf16.msrb.mxu3 %v7131_v25  ;;  %3228 = vmatpush.bf16.msra.mxu1 %v6815_v53  ;;  %v7251_v25 = vor.u32 %v8747_v51, %v7250_v47  ;;  %v8743_v53 = vld [vmem:[#allocation8 + $0xc6c] sm:$0xf0]  ;;  %v7506_v51 = vld [vmem:[#allocation8 + $0xe80] sm:$0xf] }
 0x261   :  { %3237 = vmatpush.bf16.msra.mxu2 %v7007_v54  ;;  %v7426_v54 = vld [vmem:[#allocation8 + $0xde0] sm:$0xf]  ;;  %v7235_v57 = vor.u32 %v8743_v53, %v7234_v52  ;;  %v8763_v47 = vld [vmem:[#allocation8 + $0xd0c] sm:$0xf0] }
 0x262   :  { %v7427_v56 = vor.u32 %v8791_v30, %v7426_v54  ;;  %v8811_v52 = vld [vmem:[#allocation8 + $0xe8c] sm:$0xf0]  ;;  %v8741_v54 = vld [vmem:[#allocation8 + $0xc64] sm:$0xf]  ;;  %v7236_v30 = vld [vmem:[#allocation8 + $0xc70] sm:$0xf0] }
 0x263   :  { %3151 = vmatmul.bf16.vlgmr.msra.gmra.mxu3 %v9425_v22  ;;  %3229 = vmatmul.bf16.vlgmr.msra.gmra.mxu1 %v9404_v18  ;;  %v6943_v18 = vor.u32 %v8666_v15, %v6940_v16  ;;  %v8779_v15 = vld [vmem:[#allocation8 + $0xd8c] sm:$0xf0]  ;;  %v8757_v16 = vld [vmem:[#allocation8 + $0xce4] sm:$0xf]  ;;  %v7507_v53 = vor.u32 %v8811_v52, %v7506_v51 }
 0x264   :  { %3199 = vmatpush.bf16.msrb.mxu3 %v7115_v42  ;;  %4051 = vmatpush.bf16.msrb.mxu0 %v7251_v25  ;;  %v7218_v42 = vld [vmem:[#allocation8 + $0xc40] sm:$0xf]  ;;  %v7379_v17 = vor.u32 %v8779_v15, %v7378_v13  ;;  %v7204_v15 = vld [vmem:[#allocation8 + $0xc30] sm:$0xf0] }
 0x265   :  { %3238 = vmatpush.bf16.msra.mxu2 %v6991_v58  ;;  %4061 = vmatpush.bf16.msrb.mxu1 %v7427_v56  ;;  %v8739_v58 = vld [vmem:[#allocation8 + $0xc4c] sm:$0xf0]  ;;  %v8789_v56 = vld [vmem:[#allocation8 + $0xde4] sm:$0xf] }
 0x266   :  { %v7219_v63 = vor.u32 %v8739_v58, %v7218_v42  ;;  %v7428_v42 = vld [vmem:[#allocation8 + $0xdf0] sm:$0xf0] }
 0x267   :  { %v7431_v58 = vor.u32 %v8789_v56, %v7428_v42  ;;  %v7332_v42 = vld [vmem:[#allocation8 + $0xd30] sm:$0xf0] }
 0x268   :  { %3200 = vmatpush.bf16.msrb.mxu3 %v7099_v4  ;;  %4052 = vmatpush.bf16.msrb.mxu0 %v7235_v57  ;;  %v7202_v4 = vld [vmem:[#allocation8 + $0xc20] sm:$0xf]  ;;  %v7239_v57 = vor.u32 %v8741_v54, %v7236_v30  ;;  %v8847_v30 = vld [vmem:[#allocation8 + $0xfac] sm:$0xf0] }
 0x269   :  { %3239 = vmatpush.bf16.msra.mxu2 %v6975_v6  ;;  %4062 = vmatpush.bf16.msrb.mxu1 %v7411_v28  ;;  %v8735_v6 = vld [vmem:[#allocation8 + $0xc2c] sm:$0xf0]  ;;  %v7650_v54 = vld [vmem:[#allocation8 + $0xfa0] sm:$0xf] }
 0x26a   :  { %v7203_v9 = vor.u32 %v8735_v6, %v7202_v4  ;;  %v7220_v4 = vld [vmem:[#allocation8 + $0xc50] sm:$0xf0]  ;;  %v8785_v6 = vld [vmem:[#allocation8 + $0xdc4] sm:$0xf]  ;;  %v7651_v56 = vor.u32 %v8847_v30, %v7650_v54  ;;  %v7290_v54 = vld [vmem:[#allocation8 + $0xcc8] sm:$0xf] }
 0x26b   :  { %v8756_v30 = vld [vmem:[#allocation8 + $0xcd4] sm:$0xf0] }
 0x26c   :  { %3201 = vmatpush.bf16.msrb.mxu3 %v7083_v0  ;;  %4053 = vmatpush.bf16.msrb.mxu0 %v7219_v63  ;;  %v7395_v0 = vor.u32 %v8783_v10, %v7394_v7  ;;  %v8807_v63 = vld [vmem:[#allocation8 + $0xe6c] sm:$0xf0]  ;;  %v7412_v7 = vld [vmem:[#allocation8 + $0xdd0] sm:$0xf0]  ;;  %v7223_v10 = vor.u32 %v8737_v2, %v7220_v4 }
 0x26d   :  { %3240 = vmatpush.bf16.msra.mxu2 %v6959_v45  ;;  %v8731_v45 = vld [vmem:[#allocation8 + $0xc0c] sm:$0xf0]  ;;  %v7491_v28 = vor.u32 %v8807_v63, %v7490_v60  ;;  %v7524_v63 = vld [vmem:[#allocation8 + $0xeb0] sm:$0xf0] }
 0x26e   :  { %4063 = vmatpush.bf16.msrb.mxu1 %v7395_v0 }
 0x270   :  { %3202 = vmatpush.bf16.msrb.mxu3 %v7067_v48  ;;  %4054 = vmatpush.bf16.msrb.mxu0 %v7203_v9  ;;  %v7303_v48 = vor.u32 %v8757_v16, %v7300_v1  ;;  %v8781_v16 = vld [vmem:[#allocation8 + $0xda4] sm:$0xf] }
 0x271   :  { %3241 = vmatpush.bf16.msra.mxu2 %v6943_v18  ;;  %v7362_v18 = vld [vmem:[#allocation8 + $0xd60] sm:$0xf] }
 0x272   :  { %4064 = vmatpush.bf16.msrb.mxu1 %v7379_v17  ;;  %v7396_v17 = vld [vmem:[#allocation8 + $0xdb0] sm:$0xf0] }
 0x273   :  { %3203 = vmatmul.bf16.vlgmr.msrb.gmra.mxu3 %v9425_v22 }
 0x274   :  { %3247 = vmatpush.bf16.msra.mxu3 %v7183_v46  ;;  %3242 = vmatmul.bf16.vlgmr.msra.gmra.mxu2 %v9414_v5  ;;  %v7084_v5 = vld [vmem:[#allocation8 + $0xb38] sm:$0xf0]  ;;  %v8775_v46 = vld [vmem:[#allocation8 + $0xd6c] sm:$0xf0] }
 0x275   :  { %v7087_v41 = vor.u32 %v8702_v37, %v7084_v5  ;;  %v7363_v19 = vor.u32 %v8775_v46, %v7362_v18  ;;  %v7330_v37 = vld [vmem:[#allocation8 + $0xd20] sm:$0xf]  ;;  %v8767_v5 = vld [vmem:[#allocation8 + $0xd2c] sm:$0xf0] }
 0x276   :  { %v7331_v40 = vor.u32 %v8767_v5, %v7330_v37  ;;  %v7458_v46 = vld [vmem:[#allocation8 + $0xe20] sm:$0xf]  ;;  %v7364_v37 = vld [vmem:[#allocation8 + $0xd70] sm:$0xf0] }
 0x277   :  { %4065 = vmatpush.bf16.msrb.mxu1 %v7363_v19 }
 0x278   :  { %3248 = vmatpush.bf16.msra.mxu3 %v7167_v20  ;;  %v8823_v20 = vld [vmem:[#allocation8 + $0xeec] sm:$0xf0] }
 0x279   :  { %v7555_v26 = vor.u32 %v8823_v20, %v7554_v38  ;;  %v8799_v38 = vld [vmem:[#allocation8 + $0xe2c] sm:$0xf0]  ;;  %v8729_v20 = vld [vmem:[#allocation8 + $0xc04] sm:$0xf] }
 0x27a   :  { %v7459_v19 = vor.u32 %v8799_v38, %v7458_v46  ;;  %v8805_v38 = vld [vmem:[#allocation8 + $0xe64] sm:$0xf] }
 0x27b   :  { %4074 = vmatpush.bf16.msrb.mxu2 %v7555_v26  ;;  %4066 = vmatpush.bf16.msrb.mxu1 %v7347_v11  ;;  %v7442_v11 = vld [vmem:[#allocation8 + $0xe00] sm:$0xf] }
 0x27c   :  { %3249 = vmatpush.bf16.msra.mxu3 %v7151_v23 }
 0x27f   :  { %4075 = vmatpush.bf16.msrb.mxu2 %v7539_v35  ;;  %4067 = vmatpush.bf16.msrb.mxu1 %v7331_v40  ;;  %v8855_v35 = vld [vmem:[#allocation8 + $0xfec] sm:$0xf0]  ;;  %v8821_v40 = vld [vmem:[#allocation8 + $0xee4] sm:$0xf] }
 0x280   :  { %3250 = vmatpush.bf16.msra.mxu3 %v7135_v27  ;;  %v7287_v27 = vor.u32 %v8753_v55, %v7284_v21  ;;  %v7188_v55 = vld [vmem:[#allocation8 + $0xc10] sm:$0xf0]  ;;  %v8777_v21 = vld [vmem:[#allocation8 + $0xd84] sm:$0xf] }
 0x281   :  { %v7383_v29 = vor.u32 %v8777_v21, %v7380_v3  ;;  %v8835_v3 = vld [vmem:[#allocation8 + $0xf4c] sm:$0xf0] }
 0x284   :  { %3251 = vmatpush.bf16.msra.mxu3 %v7119_v32  ;;  %v8749_v32 = vld [vmem:[#allocation8 + $0xca4] sm:$0xf] }
 0x288   :  { %3252 = vmatpush.bf16.msra.mxu3 %v7103_v36  ;;  %v7271_v36 = vor.u32 %v8749_v32, %v7268_v34  ;;  %v7682_v32 = vld [vmem:[#allocation8 + $0xfe0] sm:$0xf]  ;;  %v7443_v34 = vor.u32 %v8795_v31, %v7442_v11  ;;  %v7476_v11 = vld [vmem:[#allocation8 + $0xe50] sm:$0xf0] }
 0x289   :  { %v7683_v5 = vor.u32 %v8855_v35, %v7682_v32  ;;  %v7586_v35 = vld [vmem:[#allocation8 + $0xf20] sm:$0xf] }
 0x28c   :  { %3253 = vmatpush.bf16.msra.mxu3 %v7087_v41  ;;  %v8815_v41 = vld [vmem:[#allocation8 + $0xeac] sm:$0xf0] }
 0x28d   :  { %v7523_v44 = vor.u32 %v8815_v41, %v7522_v39  ;;  %v7556_v41 = vld [vmem:[#allocation8 + $0xef0] sm:$0xf0] }
 0x28e   :  { %v7559_v61 = vor.u32 %v8821_v40, %v7556_v41  ;;  %v7306_v41 = vld [vmem:[#allocation8 + $0xce8] sm:$0xf] }
 0x28f   :  { %4076 = vmatpush.bf16.msrb.mxu2 %v7523_v44 }
 0x290   :  { %3254 = vmatpush.bf16.msra.mxu3 %v7071_v50  ;;  %v9435_v24 = vpop.f32.mrf.mxu0  ;;  %v7314_v50 = vld [vmem:[#allocation8 + $0xd00] sm:$0xf] }
 0x291   :  { %v7315_v25 = vor.u32 %v8763_v47, %v7314_v50  ;;  %v7348_v50 = vld [vmem:[#allocation8 + $0xd50] sm:$0xf0]  ;;  %v8817_v47 = vld [vmem:[#allocation8 + $0xec4] sm:$0xf] }
 0x293   :  { %3255 = vmatmul.bf16.vlgmr.msra.gmra.mxu3 %v9425_v22  ;;  %v7186_v22 = vld [vmem:[#allocation8 + $0xc00] sm:$0xf]  ;;  %4068 = vmatpush.bf16.msrb.mxu1 %v7315_v25  ;;  %v7540_v25 = vld [vmem:[#allocation8 + $0xed0] sm:$0xf0] }
 0x294   :  { %v7187_v14 = vor.u32 %v8731_v45, %v7186_v22  ;;  %4077 = vmatpush.bf16.msrb.mxu2 %v7507_v53  ;;  %v7474_v22 = vld [vmem:[#allocation8 + $0xe40] sm:$0xf]  ;;  %v8803_v45 = vld [vmem:[#allocation8 + $0xe4c] sm:$0xf0]  ;;  %4087 = vmatpush.bf16.msrb.mxu3 %v7683_v5  ;;  %v7543_v53 = vor.u32 %v8817_v47, %v7540_v25  ;;  %v8793_v47 = vld [vmem:[#allocation8 + $0xe04] sm:$0xf] }
 0x295   :  { %v7475_v13 = vor.u32 %v8803_v45, %v7474_v22  ;;  %v7316_v22 = vld [vmem:[#allocation8 + $0xd10] sm:$0xf0]  ;;  %v8809_v45 = vld [vmem:[#allocation8 + $0xe84] sm:$0xf] }
 0x296   :  { %4055 = vmatpush.bf16.msrb.mxu0 %v7187_v14  ;;  %v8733_v14 = vld [vmem:[#allocation8 + $0xc24] sm:$0xf] }
 0x297   :  { %4113 = vmatpush.bf16.msra.mxu1 %v7431_v58  ;;  %v7207_v1 = vor.u32 %v8733_v14, %v7204_v15  ;;  %v8813_v58 = vld [vmem:[#allocation8 + $0xea4] sm:$0xf]  ;;  %v7508_v15 = vld [vmem:[#allocation8 + $0xe90] sm:$0xf0] }
 0x298   :  { %v3063_v12 = vpop.f32.mrf.mxu0  ;;  %4078 = vmatpush.bf16.msrb.mxu2 %v7491_v28  ;;  %v7527_v2 = vor.u32 %v8813_v58, %v7524_v63  ;;  %v9449_v28 = vld [vmem:[#allocation10 + $0x8] sm:$0xf]  ;;  %v8853_v25 = vld [vmem:[#allocation8 + $0xfe4] sm:$0xf]  ;;  %v7291_v63 = vor.u32 %v8756_v30, %v7290_v54 }
 0x299   :  { %v7415_v12 = vor.u32 %v8785_v6, %v7412_v7  ;;  %v7634_v6 = vld [vmem:[#allocation8 + $0xf80] sm:$0xf]  ;;  %v8843_v7 = vld [vmem:[#allocation8 + $0xf8c] sm:$0xf0]  ;;  %v2405_v58 = vperm.slane %v9449_v28, 1 }
 0x29a   :  { %4100 = vmatpush.bf16.msra.mxu0 %v7303_v48  ;;  %v7399_v48 = vor.u32 %v8781_v16, %v7396_v17  ;;  %v7511_v16 = vor.u32 %v8809_v45, %v7508_v15  ;;  %v7618_v17 = vld [vmem:[#allocation8 + $0xf60] sm:$0xf]  ;;  %v7258_v15 = vld [vmem:[#allocation8 + $0xc88] sm:$0xf] }
 0x29b   :  { %4114 = vmatpush.bf16.msra.mxu1 %v7415_v12  ;;  %v8761_v12 = vld [vmem:[#allocation8 + $0xd04] sm:$0xf] }
 0x29c   :  { %4079 = vmatpush.bf16.msrb.mxu2 %v7475_v13  ;;  %v7319_v14 = vor.u32 %v8761_v12, %v7316_v22 }
 0x29e   :  { %4101 = vmatpush.bf16.msra.mxu0 %v7287_v27  ;;  %v7191_v27 = vor.u32 %v8729_v20, %v7188_v55 }
 0x29f   :  { %4115 = vmatpush.bf16.msra.mxu1 %v7399_v48  ;;  %v8839_v48 = vld [vmem:[#allocation8 + $0xf6c] sm:$0xf0] }
 0x2a0   :  { %v9437_v23 = vpop.f32.mrf.mxu1  ;;  %v9439_v8 = vpop.f32.mrf.mxu0  ;;  %4080 = vmatpush.bf16.msrb.mxu2 %v7459_v19  ;;  %v7619_v46 = vor.u32 %v8839_v48, %v7618_v17  ;;  %v7492_v19 = vld [vmem:[#allocation8 + $0xe70] sm:$0xf0]  ;;  %v8845_v17 = vld [vmem:[#allocation8 + $0xfa4] sm:$0xf] }
 0x2a1   :  { %v7495_v20 = vor.u32 %v8805_v38, %v7492_v19  ;;  %v3114_v22 = vadd.f32 %v9439_v8, %v2405_v58  ;;  %v7652_v48 = vld [vmem:[#allocation8 + $0xfb0] sm:$0xf0]  ;;  %v8744_v8 = vld [vmem:[#allocation8 + $0xc74] sm:$0xf0] }
 0x2a2   :  { %4102 = vmatpush.bf16.msra.mxu0 %v7271_v36  ;;  %v8773_v36 = vld [vmem:[#allocation8 + $0xd64] sm:$0xf] }
 0x2a3   :  { %4116 = vmatpush.bf16.msra.mxu1 %v7383_v29  ;;  %v7367_v39 = vor.u32 %v8773_v36, %v7364_v37  ;;  %v8801_v29 = vld [vmem:[#allocation8 + $0xe44] sm:$0xf]  ;;  %v8831_v36 = vld [vmem:[#allocation8 + $0xf2c] sm:$0xf0] }
 0x2a4   :  { %4081 = vmatpush.bf16.msrb.mxu2 %v7443_v34  ;;  %v7479_v32 = vor.u32 %v8801_v29, %v7476_v11  ;;  %v7587_v5 = vor.u32 %v8831_v36, %v7586_v35  ;;  %v7636_v29 = vld [vmem:[#allocation8 + $0xf90] sm:$0xf0]  ;;  %v7226_v35 = vld [vmem:[#allocation8 + $0xc48] sm:$0xf]  ;;  %v8740_v36 = vld [vmem:[#allocation8 + $0xc54] sm:$0xf0] }
 0x2a6   :  { %4103 = vmatpush.bf16.msra.mxu0 %v7255_v49  ;;  %v8769_v49 = vld [vmem:[#allocation8 + $0xd44] sm:$0xf] }
 0x2a7   :  { %4117 = vmatpush.bf16.msra.mxu1 %v7367_v39  ;;  %v7351_v52 = vor.u32 %v8769_v49, %v7348_v50  ;;  %v7460_v39 = vld [vmem:[#allocation8 + $0xe30] sm:$0xf0] }
 0x2a8   :  { %v3076_v33 = vpop.f32.mrf.mxu1  ;;  %v3115_v43 = vpop.f32.mrf.mxu0  ;;  %4126 = vmatpush.bf16.msra.mxu2 %v7559_v61  ;;  %v8760_v61 = vld [vmem:[#allocation8 + $0xcf4] sm:$0xf0] }
 0x2a9   :  { %v7666_v33 = vld [vmem:[#allocation8 + $0xfc0] sm:$0xf]  ;;  %v8851_v43 = vld [vmem:[#allocation8 + $0xfcc] sm:$0xf0] }
 0x2aa   :  { %4104 = vmatpush.bf16.msra.mxu0 %v7239_v57  ;;  %v7667_v44 = vor.u32 %v8851_v43, %v7666_v33  ;;  %v8765_v57 = vld [vmem:[#allocation8 + $0xd24] sm:$0xf] }
 0x2ab   :  { %4118 = vmatpush.bf16.msra.mxu1 %v7351_v52  ;;  %v7335_v60 = vor.u32 %v8765_v57, %v7332_v42  ;;  %v7444_v52 = vld [vmem:[#allocation8 + $0xe10] sm:$0xf0] }
 0x2ac   :  { %4088 = vmatpush.bf16.msrb.mxu3 %v7667_v44  ;;  %4127 = vmatpush.bf16.msra.mxu2 %v7543_v53  ;;  %v7570_v44 = vld [vmem:[#allocation8 + $0xf00] sm:$0xf]  ;;  %v7684_v57 = vld [vmem:[#allocation8 + $0xff0] sm:$0xf0] }
 0x2ad   :  { %v7687_v42 = vor.u32 %v8853_v25, %v7684_v57  ;;  %v8732_v57 = vld [vmem:[#allocation8 + $0xc14] sm:$0xf0] }
 0x2ae   :  { %4105 = vmatpush.bf16.msra.mxu0 %v7223_v10  ;;  %v7635_v10 = vor.u32 %v8843_v7, %v7634_v6  ;;  %v8752_v6 = vld [vmem:[#allocation8 + $0xcb4] sm:$0xf0]  ;;  %v8849_v7 = vld [vmem:[#allocation8 + $0xfc4] sm:$0xf] }
 0x2af   :  { %4119 = vmatpush.bf16.msra.mxu1 %v7335_v60 }
 0x2b0   :  { %v9441_v9 = vpop.f32.mrf.mxu1  ;;  %4089 = vmatpush.bf16.msrb.mxu3 %v7651_v56  ;;  %4128 = vmatpush.bf16.msra.mxu2 %v7527_v2  ;;  %v7447_v56 = vor.u32 %v8793_v47, %v7444_v52  ;;  %v7274_v2 = vld [vmem:[#allocation8 + $0xca8] sm:$0xf]  ;;  %v7604_v47 = vld [vmem:[#allocation8 + $0xf50] sm:$0xf0] }
 0x2b2   :  { %v9443_v0 = vpop.f32.mrf.mxu0  ;;  %4106 = vmatpush.bf16.msra.mxu0 %v7207_v1  ;;  %v2404_v1 = vperm.slane %v9449_v28, 0 }
 0x2b3   :  { %4120 = vmatpush.bf16.msra.mxu1 %v7319_v14  ;;  %v7275_v14 = vor.u32 %v8752_v6, %v7274_v2  ;;  %v7588_v2 = vld [vmem:[#allocation8 + $0xf30] sm:$0xf0]  ;;  %v8758_v6 = vld [vmem:[#allocation8 + $0xcec] sm:$0xf] }
 0x2b4   :  { %4090 = vmatpush.bf16.msrb.mxu3 %v7635_v10  ;;  %4129 = vmatpush.bf16.msra.mxu2 %v7511_v16  ;;  %v3062_v21 = vadd.f32 %v9435_v24, %v2404_v1  ;;  %v8797_v24 = vld [vmem:[#allocation8 + $0xe24] sm:$0xf]  ;;  %v7668_v10 = vld [vmem:[#allocation8 + $0xfd0] sm:$0xf0]  ;;  %v3127_v16 = vadd.f32 %v9441_v9, %v3114_v22  ;;  %v8748_v1 = vld [vmem:[#allocation8 + $0xc94] sm:$0xf0] }
 0x2b5   :  { %v7671_v12 = vor.u32 %v8849_v7, %v7668_v10  ;;  %v7308_v7 = vld [vmem:[#allocation8 + $0xcf8] sm:$0xf0] }
 0x2b6   :  { %v9445_v18 = vpop.f32.mrf.mxu2  ;;  %4107 = vmatpush.bf16.msra.mxu0 %v7191_v27  ;;  %v7602_v27 = vld [vmem:[#allocation8 + $0xf40] sm:$0xf]  ;;  %v3075_v31 = vadd.f32 %v9437_v23, %v3062_v21  ;;  %v8827_v23 = vld [vmem:[#allocation8 + $0xf0c] sm:$0xf0]  ;;  %v7242_v21 = vld [vmem:[#allocation8 + $0xc68] sm:$0xf] }
 0x2b7   :  { %v7571_v50 = vor.u32 %v8827_v23, %v7570_v44  ;;  %v8736_v44 = vld [vmem:[#allocation8 + $0xc34] sm:$0xf0]  ;;  %v7402_v23 = vld [vmem:[#allocation8 + $0xda8] sm:$0xf] }
 0x2b8   :  { %v3128_v26 = vpop.f32.mrf.mxu1  ;;  %4091 = vmatpush.bf16.msrb.mxu3 %v7619_v46  ;;  %4130 = vmatpush.bf16.msra.mxu2 %v7495_v20  ;;  %v3088_v34 = vadd.f32 %v9445_v18, %v3075_v31  ;;  %v7307_v18 = vor.u32 %v8760_v61, %v7306_v41  ;;  %v7655_v46 = vor.u32 %v8845_v17, %v7652_v48  ;;  %v2406_v41 = vperm.slane %v9449_v28, 2  ;;  %v7562_v17 = vld [vmem:[#allocation8 + $0xee8] sm:$0xf]  ;;  %v8825_v48 = vld [vmem:[#allocation8 + $0xf04] sm:$0xf] }
 0x2b9   :  { %v7259_v20 = vor.u32 %v8748_v1, %v7258_v15  ;;  %v8776_v15 = vld [vmem:[#allocation8 + $0xd74] sm:$0xf0] }
 0x2ba   :  { %v3167_v59 = vpop.f32.mrf.mxu0  ;;  %v3166_v25 = vadd.f32 %v9443_v0, %v2406_v41  ;;  %v8816_v41 = vld [vmem:[#allocation8 + $0xeb4] sm:$0xf0] }
 0x2bb   :  { %v7603_v59 = vor.u32 %v8835_v3, %v7602_v27  ;;  %v8792_v3 = vld [vmem:[#allocation8 + $0xdf4] sm:$0xf0] }
 0x2bc   :  { %4131 = vmatpush.bf16.msra.mxu2 %v7479_v32  ;;  %v7243_v32 = vor.u32 %v8744_v8, %v7242_v21 }
 0x2bd   :  { %4092 = vmatpush.bf16.msrb.mxu3 %v7603_v59  ;;  %v8841_v59 = vld [vmem:[#allocation8 + $0xf84] sm:$0xf] }
 0x2be   :  { %v3089_v62 = vpop.f32.mrf.mxu2  ;;  %v7639_v11 = vor.u32 %v8841_v59, %v7636_v29  ;;  %v7354_v59 = vld [vmem:[#allocation8 + $0xd48] sm:$0xf]  ;;  %v8772_v29 = vld [vmem:[#allocation8 + $0xd54] sm:$0xf0] }
 0x2bf   :  { %v7463_v62 = vor.u32 %v8797_v24, %v7460_v39  ;;  %v8837_v24 = vld [vmem:[#allocation8 + $0xf64] sm:$0xf]  ;;  %v7620_v39 = vld [vmem:[#allocation8 + $0xf70] sm:$0xf0] }
 0x2c0   :  { %v9447_v51 = vpop.f32.mrf.mxu1 }
 0x2c1   :  { %4093 = vmatpush.bf16.msrb.mxu3 %v7587_v5  ;;  %4132 = vmatpush.bf16.msra.mxu2 %v7463_v62  ;;  %v8788_v5 = vld [vmem:[#allocation8 + $0xdd4] sm:$0xf0]  ;;  %v7227_v62 = vor.u32 %v8740_v36, %v7226_v35  ;;  %v3179_v58 = vadd.f32 %v9447_v51, %v3166_v25  ;;  %v7311_v51 = vor.u32 %v8758_v6, %v7308_v7  ;;  %v7244_v25 = vld [vmem:[#allocation8 + $0xc78] sm:$0xf0]  ;;  %v8786_v7 = vld [vmem:[#allocation8 + $0xdcc] sm:$0xf] }
 0x2c2   :  { %v7355_v35 = vor.u32 %v8772_v29, %v7354_v59  ;;  %v7228_v6 = vld [vmem:[#allocation8 + $0xc58] sm:$0xf0] }
 0x2c3   :  { %v7388_v59 = vld [vmem:[#allocation8 + $0xd98] sm:$0xf0] }
 0x2c5   :  { %4094 = vmatpush.bf16.msrb.mxu3 %v7571_v50  ;;  %4133 = vmatpush.bf16.msra.mxu2 %v7447_v56  ;;  %v8833_v50 = vld [vmem:[#allocation8 + $0xf44] sm:$0xf]  ;;  %v7194_v56 = vld [vmem:[#allocation8 + $0xc08] sm:$0xf] }
 0x2c6   :  { %v9451_v4 = vpop.f32.mrf.mxu2  ;;  %v7607_v52 = vor.u32 %v8833_v50, %v7604_v47  ;;  %v7195_v22 = vor.u32 %v8732_v57, %v7194_v56  ;;  %v7514_v50 = vld [vmem:[#allocation8 + $0xe88] sm:$0xf]  ;;  %v8812_v47 = vld [vmem:[#allocation8 + $0xe94] sm:$0xf0] }
 0x2c7   :  { %v3140_v38 = vadd.f32 %v9451_v4, %v3127_v16  ;;  %v7418_v4 = vld [vmem:[#allocation8 + $0xdc8] sm:$0xf]  ;;  %v7515_v57 = vor.u32 %v8812_v47, %v7514_v50  ;;  %v8818_v50 = vld [vmem:[#allocation8 + $0xecc] sm:$0xf]  ;;  %v7548_v47 = vld [vmem:[#allocation8 + $0xed8] sm:$0xf0] }
 0x2c8   :  { %v3180_v13 = vpop.f32.mrf.mxu1 }
 0x2c9   :  { %4139 = vmatpush.bf16.msra.mxu3 %v7687_v42  ;;  %v7386_v42 = vld [vmem:[#allocation8 + $0xd88] sm:$0xf] }
 0x2cd   :  { %4140 = vmatpush.bf16.msra.mxu3 %v7671_v12 }
 0x2ce   :  { %v3141_v26 = vpop.f32.mrf.mxu2 }
 0x2cf   :  { %v7434_v26 = vld [vmem:[#allocation8 + $0xde8] sm:$0xf] }
 0x2d0   :  { %v9454_v55 = vpop.f32.mrf.mxu0 }
 0x2d1   :  { %4141 = vmatpush.bf16.msra.mxu3 %v7655_v46  ;;  %v7572_v46 = vld [vmem:[#allocation8 + $0xf10] sm:$0xf0] }
 0x2d2   :  { %v7575_v21 = vor.u32 %v8825_v48, %v7572_v46  ;;  %v7404_v48 = vld [vmem:[#allocation8 + $0xdb8] sm:$0xf0] }
 0x2d5   :  { %4142 = vmatpush.bf16.msra.mxu3 %v7639_v11  ;;  %v7546_v11 = vld [vmem:[#allocation8 + $0xec8] sm:$0xf] }
 0x2d6   :  { %v3100_v37 = vpop.f32.mrf.mxu3 }
 0x2d7   :  { %v3101_v40 = vadd.f32 %v3100_v37, %v3088_v34  ;;  %v7435_v34 = vor.u32 %v8792_v3, %v7434_v26 }
 0x2d8   :  { %v3219_v33 = vpop.f32.mrf.mxu0 }
 0x2d9   :  { %v3260_v43 = vmax.f32 %v3101_v40, 0.0  ;;  %v9459_v49 = vpop.f32.mrf.mxu2  ;;  %v7623_v40 = vor.u32 %v8837_v24, %v7620_v39  ;;  %v7419_v33 = vor.u32 %v8788_v5, %v7418_v4  ;;  %v7338_v24 = vld [vmem:[#allocation8 + $0xd28] sm:$0xf]  ;;  %v8768_v39 = vld [vmem:[#allocation8 + $0xd34] sm:$0xf0] }
 0x2da   :  { %v3192_v12 = vadd.f32 %v9459_v49, %v3179_v58  ;;  %v7498_v58 = vld [vmem:[#allocation8 + $0xe68] sm:$0xf] }
 0x2db   :  { %v9461_v53 = vpack.c.bf16 %v3260_v43, %v3260_v43  ;;  %v7210_v43 = vld [vmem:[#allocation8 + $0xc28] sm:$0xf]  ;;  %4143 = vmatpush.bf16.msra.mxu3 %v7623_v40 }
 0x2dc   :  { %v7211_v54 = vor.u32 %v8736_v44, %v7210_v43  ;;  %v7530_v40 = vld [vmem:[#allocation8 + $0xea8] sm:$0xf] }
 0x2dd   :  { %4056 = vmatmul.bf16.vlgmr.msrb.gmra.mxu0 %v9461_v53  ;;  %v7531_v43 = vor.u32 %v8816_v41, %v7530_v40 }
 0x2de   :  { %4152 = vmatpush.bf16.msrb.mxu0 %v7307_v18  ;;  %v3102_v60 = vpop.f32.mrf.mxu3  ;;  %v8784_v18 = vld [vmem:[#allocation8 + $0xdb4] sm:$0xf0] }
 0x2df   :  { %v7403_v30 = vor.u32 %v8784_v18, %v7402_v23  ;;  %v8780_v60 = vld [vmem:[#allocation8 + $0xd94] sm:$0xf0]  ;;  %4144 = vmatpush.bf16.msra.mxu3 %v7607_v52  ;;  %v7322_v23 = vld [vmem:[#allocation8 + $0xd08] sm:$0xf]  ;;  %v8742_v52 = vld [vmem:[#allocation8 + $0xc6c] sm:$0xf] }
 0x2e0   :  { %v9466_v45 = vpop.f32.mrf.mxu1  ;;  %v8764_v18 = vld [vmem:[#allocation8 + $0xd14] sm:$0xf0] }
 0x2e1   :  { %v3193_v13 = vpop.f32.mrf.mxu2  ;;  %v7323_v56 = vor.u32 %v8764_v18, %v7322_v23  ;;  %v8770_v23 = vld [vmem:[#allocation8 + $0xd4c] sm:$0xf]  ;;  %v7356_v18 = vld [vmem:[#allocation8 + $0xd58] sm:$0xf0] }
 0x2e2   :  { %4153 = vmatpush.bf16.msrb.mxu0 %v7291_v63  ;;  %v8829_v63 = vld [vmem:[#allocation8 + $0xf24] sm:$0xf]  ;;  %v7387_v13 = vor.u32 %v8780_v60, %v7386_v42  ;;  %v7247_v42 = vor.u32 %v8742_v52, %v7244_v25 }
 0x2e3   :  { %v7591_v10 = vor.u32 %v8829_v63, %v7588_v2  ;;  %v8808_v63 = vld [vmem:[#allocation8 + $0xe74] sm:$0xf0]  ;;  %v8738_v2 = vld [vmem:[#allocation8 + $0xc4c] sm:$0xf] }
 0x2e5   :  { %4145 = vmatpush.bf16.msra.mxu3 %v7591_v10  ;;  %v7420_v10 = vld [vmem:[#allocation8 + $0xdd8] sm:$0xf0] }
 0x2e6   :  { %4154 = vmatpush.bf16.msrb.mxu0 %v7275_v14  ;;  %v3152_v19 = vpop.f32.mrf.mxu3  ;;  %v7370_v14 = vld [vmem:[#allocation8 + $0xd68] sm:$0xf] }
 0x2e7   :  { %v3153_v27 = vadd.f32 %v3152_v19, %v3140_v38  ;;  %v8824_v38 = vld [vmem:[#allocation8 + $0xef4] sm:$0xf0]  ;;  %v8754_v19 = vld [vmem:[#allocation8 + $0xccc] sm:$0xf]  ;;  %v7371_v8 = vor.u32 %v8776_v15, %v7370_v14  ;;  %v7423_v14 = vor.u32 %v8786_v7, %v7420_v10  ;;  %v7642_v7 = vld [vmem:[#allocation8 + $0xf88] sm:$0xf] }
 0x2e8   :  { %v3232_v31 = vpop.f32.mrf.mxu1  ;;  %v8804_v15 = vld [vmem:[#allocation8 + $0xe54] sm:$0xf0] }
 0x2e9   :  { %v3261_v9 = vmax.f32 %v3153_v27, 0.0  ;;  %v7563_v27 = vor.u32 %v8824_v38, %v7562_v17  ;;  %4146 = vmatpush.bf16.msra.mxu3 %v7575_v21  ;;  %v8750_v31 = vld [vmem:[#allocation8 + $0xcac] sm:$0xf]  ;;  %v8844_v10 = vld [vmem:[#allocation8 + $0xf94] sm:$0xf0] }
 0x2ea   :  { %4155 = vmatpush.bf16.msrb.mxu0 %v7259_v20  ;;  %v7292_v20 = vld [vmem:[#allocation8 + $0xcd8] sm:$0xf0]  ;;  %v8782_v17 = vld [vmem:[#allocation8 + $0xdac] sm:$0xf] }
 0x2eb   :  { %v9470_v37 = vpack.c.bf16 %v3261_v9, %v3261_v9  ;;  %v7295_v3 = vor.u32 %v8754_v19, %v7292_v20  ;;  %v8820_v9 = vld [vmem:[#allocation8 + $0xed4] sm:$0xf0]  ;;  %v7466_v19 = vld [vmem:[#allocation8 + $0xe28] sm:$0xf]  ;;  %v7407_v21 = vor.u32 %v8782_v17, %v7404_v48  ;;  %v8806_v48 = vld [vmem:[#allocation8 + $0xe6c] sm:$0xf] }
 0x2ec   :  { %v7547_v4 = vor.u32 %v8820_v9, %v7546_v11  ;;  %v8840_v17 = vld [vmem:[#allocation8 + $0xf74] sm:$0xf0] }
 0x2ed   :  { %4069 = vmatmul.bf16.vlgmr.msrb.gmra.mxu1 %v9470_v37  ;;  %4108 = vmatmul.bf16.vlgmr.msra.gmra.mxu0 %v9461_v53 }
 0x2ee   :  { %4156 = vmatpush.bf16.msrb.mxu0 %v7243_v32  ;;  %4165 = vmatpush.bf16.msrb.mxu1 %v7435_v34  ;;  %v3154_v61 = vpop.f32.mrf.mxu3  ;;  %v7276_v32 = vld [vmem:[#allocation8 + $0xcb8] sm:$0xf0] }
 0x2ef   :  { %v7279_v5 = vor.u32 %v8750_v31, %v7276_v32  ;;  %v8746_v61 = vld [vmem:[#allocation8 + $0xc8c] sm:$0xf]  ;;  %v7450_v31 = vld [vmem:[#allocation8 + $0xe08] sm:$0xf]  ;;  %v8796_v32 = vld [vmem:[#allocation8 + $0xe14] sm:$0xf0] }
 0x2f2   :  { %4157 = vmatpush.bf16.msrb.mxu0 %v7227_v62  ;;  %4166 = vmatpush.bf16.msrb.mxu1 %v7419_v33  ;;  %v7260_v62 = vld [vmem:[#allocation8 + $0xc98] sm:$0xf0]  ;;  %v7339_v33 = vor.u32 %v8768_v39, %v7338_v24  ;;  %v8822_v24 = vld [vmem:[#allocation8 + $0xeec] sm:$0xf] }
 0x2f3   :  { %v7263_v44 = vor.u32 %v8746_v61, %v7260_v62  ;;  %v7564_v39 = vld [vmem:[#allocation8 + $0xef8] sm:$0xf0] }
 0x2f6   :  { %4158 = vmatpush.bf16.msrb.mxu0 %v7211_v54  ;;  %4167 = vmatpush.bf16.msrb.mxu1 %v7403_v30  ;;  %v3204_v0 = vpop.f32.mrf.mxu3  ;;  %v8790_v54 = vld [vmem:[#allocation8 + $0xdec] sm:$0xf]  ;;  %v7436_v30 = vld [vmem:[#allocation8 + $0xdf8] sm:$0xf0] }
 0x2f7   :  { %v3205_v16 = vadd.f32 %v3204_v0, %v3192_v12  ;;  %v9478_v1 = vpop.f32.mrf.mxu2  ;;  %v7439_v60 = vor.u32 %v8790_v54, %v7436_v30  ;;  %v2407_v12 = vperm.slane %v9449_v28, 3  ;;  %v7499_v0 = vor.u32 %v8808_v63, %v7498_v58  ;;  %v7340_v58 = vld [vmem:[#allocation8 + $0xd38] sm:$0xf0] }
 0x2f8   :  { %v7359_v54 = vor.u32 %v8770_v23, %v7356_v18  ;;  %v7551_v30 = vor.u32 %v8818_v50, %v7548_v47  ;;  %v7532_v63 = vld [vmem:[#allocation8 + $0xeb8] sm:$0xf0]  ;;  %v8838_v23 = vld [vmem:[#allocation8 + $0xf6c] sm:$0xf]  ;;  %v7810_v50 = vld [vmem:[#allocation8 + $0x10e0] sm:$0xf] }
 0x2f9   :  { %v3262_v49 = vmax.f32 %v3205_v16, 0.0  ;;  %v8734_v16 = vld [vmem:[#allocation8 + $0xc2c] sm:$0xf]  ;;  %v3218_v46 = vadd.f32 %v9454_v55, %v2407_v12  ;;  %v7628_v18 = vld [vmem:[#allocation8 + $0xf78] sm:$0xf0] }
 0x2fa   :  { %4159 = vmatpush.bf16.msrb.mxu0 %v7195_v22  ;;  %4168 = vmatpush.bf16.msrb.mxu1 %v7387_v13  ;;  %v7231_v22 = vor.u32 %v8738_v2, %v7228_v6  ;;  %v7482_v13 = vld [vmem:[#allocation8 + $0xe48] sm:$0xf]  ;;  %v8762_v12 = vld [vmem:[#allocation8 + $0xd0c] sm:$0xf]  ;;  %v8887_v47 = vld [vmem:[#allocation8 + $0x10ec] sm:$0xf0] }
 0x2fb   :  { %v9480_v26 = vpack.c.bf16 %v3262_v49, %v3262_v49  ;;  %v7483_v28 = vor.u32 %v8804_v15, %v7482_v13  ;;  %v3231_v20 = vadd.f32 %v9466_v45, %v3218_v46  ;;  %v8800_v49 = vld [vmem:[#allocation8 + $0xe34] sm:$0xf0]  ;;  %v7690_v45 = vld [vmem:[#allocation8 + $0xfe8] sm:$0xf]  ;;  %v7516_v13 = vld [vmem:[#allocation8 + $0xe98] sm:$0xf0] }
 0x2fc   :  { %v7467_v55 = vor.u32 %v8800_v49, %v7466_v19  ;;  %v7500_v46 = vld [vmem:[#allocation8 + $0xe78] sm:$0xf0]  ;;  %v7610_v19 = vld [vmem:[#allocation8 + $0xf48] sm:$0xf] }
 0x2fd   :  { %4082 = vmatmul.bf16.vlgmr.msrb.gmra.mxu2 %v9480_v26  ;;  %4121 = vmatmul.bf16.vlgmr.msra.gmra.mxu1 %v9470_v37  ;;  %v3244_v29 = vadd.f32 %v9478_v1, %v3231_v20  ;;  %v7451_v1 = vor.u32 %v8796_v32, %v7450_v31  ;;  %v8836_v20 = vld [vmem:[#allocation8 + $0xf54] sm:$0xf0]  ;;  %v7484_v49 = vld [vmem:[#allocation8 + $0xe58] sm:$0xf0]  ;;  %v7578_v31 = vld [vmem:[#allocation8 + $0xf08] sm:$0xf] }
 0x2fe   :  { %4204 = vmatpush.bf16.msra.mxu0 %v7311_v51  ;;  %4169 = vmatpush.bf16.msrb.mxu1 %v7371_v8  ;;  %v3206_v34 = vpop.f32.mrf.mxu3  ;;  %v7212_v51 = vld [vmem:[#allocation8 + $0xc38] sm:$0xf0]  ;;  %v8730_v8 = vld [vmem:[#allocation8 + $0xc0c] sm:$0xf]  ;;  %v8828_v32 = vld [vmem:[#allocation8 + $0xf14] sm:$0xf0] }
 0x2ff   :  { %4160 = vmatmul.bf16.vlgmr.msrb.gmra.mxu0 %v9461_v53  ;;  %4178 = vmatpush.bf16.msrb.mxu2 %v7563_v27  ;;  %v3245_v36 = vpop.f32.mrf.mxu2  ;;  %v7215_v38 = vor.u32 %v8734_v16, %v7212_v51  ;;  %v7196_v27 = vld [vmem:[#allocation8 + $0xc18] sm:$0xf0]  ;;  %v7626_v51 = vld [vmem:[#allocation8 + $0xf68] sm:$0xf] }
 0x300   :  { %v7199_v9 = vor.u32 %v8730_v8, %v7196_v27  ;;  %v8856_v36 = vld [vmem:[#allocation8 + $0xff4] sm:$0xf0]  ;;  %v7611_v8 = vor.u32 %v8836_v20, %v7610_v19  ;;  %v7922_v19 = vld [vmem:[#allocation8 + $0x11c0] sm:$0xf] }
 0x301   :  { %v7691_v41 = vor.u32 %v8856_v36, %v7690_v45  ;;  %v8854_v45 = vld [vmem:[#allocation8 + $0xfec] sm:$0xf]  ;;  %v7692_v36 = vld [vmem:[#allocation8 + $0xff8] sm:$0xf0] }
 0x302   :  { %4205 = vmatpush.bf16.msra.mxu0 %v7295_v3  ;;  %4170 = vmatpush.bf16.msrb.mxu1 %v7355_v35  ;;  %v8778_v3 = vld [vmem:[#allocation8 + $0xd8c] sm:$0xf] }
 0x303   :  { %4179 = vmatpush.bf16.msrb.mxu2 %v7547_v4  ;;  %v7391_v35 = vor.u32 %v8778_v3, %v7388_v59  ;;  %v8774_v4 = vld [vmem:[#allocation8 + $0xd6c] sm:$0xf]  ;;  %v7594_v3 = vld [vmem:[#allocation8 + $0xf28] sm:$0xf]  ;;  %v8832_v59 = vld [vmem:[#allocation8 + $0xf34] sm:$0xf0] }
 0x306   :  { %4206 = vmatpush.bf16.msra.mxu0 %v7279_v5  ;;  %4171 = vmatpush.bf16.msrb.mxu1 %v7339_v33  ;;  %v7372_v5 = vld [vmem:[#allocation8 + $0xd78] sm:$0xf0]  ;;  %v7567_v33 = vor.u32 %v8822_v24, %v7564_v39  ;;  %v8850_v24 = vld [vmem:[#allocation8 + $0xfcc] sm:$0xf] }
 0x307   :  { %4180 = vmatpush.bf16.msrb.mxu2 %v7531_v43  ;;  %v7375_v62 = vor.u32 %v8774_v4, %v7372_v5  ;;  %v7674_v43 = vld [vmem:[#allocation8 + $0xfc8] sm:$0xf]  ;;  %v7579_v4 = vor.u32 %v8828_v32, %v7578_v31  ;;  %v7695_v5 = vor.u32 %v8854_v45, %v7692_v36  ;;  %v7676_v39 = vld [vmem:[#allocation8 + $0xfd8] sm:$0xf0]  ;;  %v7890_v31 = vld [vmem:[#allocation8 + $0x1180] sm:$0xf] }
 0x308   :  { %v7812_v45 = vld [vmem:[#allocation8 + $0x10f0] sm:$0xf0] }
 0x30a   :  { %4207 = vmatpush.bf16.msra.mxu0 %v7263_v44  ;;  %4172 = vmatpush.bf16.msrb.mxu1 %v7323_v56  ;;  %v8852_v44 = vld [vmem:[#allocation8 + $0xfd4] sm:$0xf0]  ;;  %v7658_v56 = vld [vmem:[#allocation8 + $0xfa8] sm:$0xf] }
 0x30b   :  { %4181 = vmatpush.bf16.msrb.mxu2 %v7515_v57  ;;  %v7675_v25 = vor.u32 %v8852_v44, %v7674_v43  ;;  %v8848_v57 = vld [vmem:[#allocation8 + $0xfb4] sm:$0xf0]  ;;  %v7644_v43 = vld [vmem:[#allocation8 + $0xf98] sm:$0xf0] }
 0x30c   :  { %v7659_v2 = vor.u32 %v8848_v57, %v7658_v56  ;;  %v8830_v57 = vld [vmem:[#allocation8 + $0xf2c] sm:$0xf] }
 0x30d   :  { %4134 = vmatmul.bf16.vlgmr.msra.gmra.mxu2 %v9480_v26  ;;  %4173 = vmatmul.bf16.vlgmr.msrb.gmra.mxu1 %v9470_v37 }
 0x30e   :  { %4208 = vmatpush.bf16.msra.mxu0 %v7247_v42  ;;  %4217 = vmatpush.bf16.msra.mxu1 %v7439_v60  ;;  %v8766_v42 = vld [vmem:[#allocation8 + $0xd2c] sm:$0xf] }
 0x30f   :  { %4182 = vmatpush.bf16.msrb.mxu2 %v7499_v0  ;;  %v8814_v60 = vld [vmem:[#allocation8 + $0xeac] sm:$0xf]  ;;  %v7324_v0 = vld [vmem:[#allocation8 + $0xd18] sm:$0xf0] }
 0x310   :  { %v7535_v6 = vor.u32 %v8814_v60, %v7532_v63  ;;  %v7327_v15 = vor.u32 %v8762_v12, %v7324_v0  ;;  %v7762_v0 = vld [vmem:[#allocation8 + $0x1080] sm:$0xf] }
 0x312   :  { %4209 = vmatpush.bf16.msra.mxu0 %v7231_v22  ;;  %4218 = vmatpush.bf16.msra.mxu1 %v7423_v14  ;;  %v8810_v22 = vld [vmem:[#allocation8 + $0xe8c] sm:$0xf]  ;;  %v7643_v14 = vor.u32 %v8844_v10, %v7642_v7  ;;  %v7580_v7 = vld [vmem:[#allocation8 + $0xf18] sm:$0xf0] }
 0x313   :  { %4183 = vmatpush.bf16.msrb.mxu2 %v7483_v28  ;;  %v7519_v16 = vor.u32 %v8810_v22, %v7516_v13  ;;  %v7627_v28 = vor.u32 %v8840_v17, %v7626_v51  ;;  %v8875_v22 = vld [vmem:[#allocation8 + $0x108c] sm:$0xf0]  ;;  %v7746_v13 = vld [vmem:[#allocation8 + $0x1060] sm:$0xf] }
 0x314   :  { %v8919_v51 = vld [vmem:[#allocation8 + $0x11ec] sm:$0xf0] }
 0x316   :  { %v3256_v11 = vpop.f32.mrf.mxu3  ;;  %4210 = vmatpush.bf16.msra.mxu0 %v7215_v38  ;;  %4219 = vmatpush.bf16.msra.mxu1 %v7407_v21  ;;  %v7503_v38 = vor.u32 %v8806_v48, %v7500_v46  ;;  %v8802_v21 = vld [vmem:[#allocation8 + $0xe4c] sm:$0xf] }
 0x317   :  { %v3257_v34 = vadd.f32 %v3256_v11, %v3244_v29  ;;  %4184 = vmatpush.bf16.msrb.mxu2 %v7467_v55  ;;  %v7487_v27 = vor.u32 %v8802_v21, %v7484_v49  ;;  %v8798_v29 = vld [vmem:[#allocation8 + $0xe2c] sm:$0xf]  ;;  %v7468_v11 = vld [vmem:[#allocation8 + $0xe38] sm:$0xf0]  ;;  %v7595_v55 = vor.u32 %v8832_v59, %v7594_v3  ;;  %v8915_v21 = vld [vmem:[#allocation8 + $0x11cc] sm:$0xf0] }
 0x318   :  { %v7923_v49 = vor.u32 %v8915_v21, %v7922_v19  ;;  %v7906_v3 = vld [vmem:[#allocation8 + $0x11a0] sm:$0xf]  ;;  %v8865_v21 = vld [vmem:[#allocation8 + $0x1044] sm:$0xf] }
 0x319   :  { %v3263_v40 = vmax.f32 %v3257_v34, 0.0  ;;  %v8794_v34 = vld [vmem:[#allocation8 + $0xe0c] sm:$0xf]  ;;  %v8002_v19 = vld [vmem:[#allocation8 + $0x1260] sm:$0xf] }
 0x31a   :  { %4211 = vmatpush.bf16.msra.mxu0 %v7199_v9  ;;  %4220 = vmatpush.bf16.msra.mxu1 %v7391_v35  ;;  %v7471_v9 = vor.u32 %v8798_v29, %v7468_v11  ;;  %v7452_v35 = vld [vmem:[#allocation8 + $0xe18] sm:$0xf0]  ;;  %v8911_v29 = vld [vmem:[#allocation8 + $0x11ac] sm:$0xf0] }
 0x31b   :  { %v9491_v61 = vpack.c.bf16 %v3263_v40, %v3263_v40  ;;  %4185 = vmatpush.bf16.msrb.mxu2 %v7451_v1  ;;  %v7679_v40 = vor.u32 %v8850_v24, %v7676_v39  ;;  %v8846_v1 = vld [vmem:[#allocation8 + $0xfac] sm:$0xf]  ;;  %v8066_v24 = vld [vmem:[#allocation8 + $0x12e0] sm:$0xf] }
 0x31d   :  { %4095 = vmatmul.bf16.vlgmr.msrb.gmra.mxu3 %v9491_v61  ;;  %4212 = vmatmul.bf16.vlgmr.msra.gmra.mxu0 %v9461_v53  ;;  %v7343_v53 = vor.u32 %v8766_v42, %v7340_v58  ;;  %v7794_v42 = vld [vmem:[#allocation8 + $0x10c0] sm:$0xf]  ;;  %v8883_v58 = vld [vmem:[#allocation8 + $0x10cc] sm:$0xf0] }
 0x31e   :  { %4191 = vmatpush.bf16.msrb.mxu3 %v7691_v41  ;;  %v3258_v52 = vpop.f32.mrf.mxu3  ;;  %4221 = vmatpush.bf16.msra.mxu1 %v7375_v62  ;;  %v7660_v41 = vld [vmem:[#allocation8 + $0xfb8] sm:$0xf0]  ;;  %v7795_v63 = vor.u32 %v8883_v58, %v7794_v42  ;;  %v8034_v42 = vld [vmem:[#allocation8 + $0x12a0] sm:$0xf] }
 0x31f   :  { %4230 = vmatpush.bf16.msra.mxu2 %v7567_v33  ;;  %v7663_v62 = vor.u32 %v8846_v1, %v7660_v41  ;;  %v8842_v33 = vld [vmem:[#allocation8 + $0xf8c] sm:$0xf]  ;;  %v7811_v52 = vor.u32 %v8887_v47, %v7810_v50  ;;  %v8881_v1 = vld [vmem:[#allocation8 + $0x10c4] sm:$0xf]  ;;  %v7796_v41 = vld [vmem:[#allocation8 + $0x10d0] sm:$0xf0] }
 0x320   :  { %4186 = vmatmul.bf16.vlgmr.msrb.gmra.mxu2 %v9480_v26  ;;  %v7647_v44 = vor.u32 %v8842_v33, %v7644_v43  ;;  %v8050_v50 = vld [vmem:[#allocation8 + $0x12c0] sm:$0xf] }
 0x321   :  { %5044 = vmatpush.bf16.msrb.mxu0 %v7811_v52  ;;  %v8947_v52 = vld [vmem:[#allocation8 + $0x12cc] sm:$0xf0] }
 0x322   :  { %4192 = vmatpush.bf16.msrb.mxu3 %v7675_v25  ;;  %4222 = vmatpush.bf16.msra.mxu1 %v7359_v54  ;;  %v7631_v25 = vor.u32 %v8838_v23, %v7628_v18  ;;  %v8834_v54 = vld [vmem:[#allocation8 + $0xf4c] sm:$0xf]  ;;  %v7858_v23 = vld [vmem:[#allocation8 + $0x1140] sm:$0xf]  ;;  %v8899_v18 = vld [vmem:[#allocation8 + $0x114c] sm:$0xf0] }
 0x323   :  { %4231 = vmatpush.bf16.msra.mxu2 %v7551_v30  ;;  %v7612_v30 = vld [vmem:[#allocation8 + $0xf58] sm:$0xf0]  ;;  %v7859_v47 = vor.u32 %v8899_v18, %v7858_v23  ;;  %v7892_v23 = vld [vmem:[#allocation8 + $0x1190] sm:$0xf0] }
 0x324   :  { %v7615_v56 = vor.u32 %v8834_v54, %v7612_v30  ;;  %v7780_v54 = vld [vmem:[#allocation8 + $0x10b0] sm:$0xf0]  ;;  %v8051_v30 = vor.u32 %v8947_v52, %v8050_v50  ;;  %v8923_v52 = vld [vmem:[#allocation8 + $0x120c] sm:$0xf0] }
 0x325   :  { %5045 = vmatpush.bf16.msrb.mxu0 %v7795_v63  ;;  %v8873_v63 = vld [vmem:[#allocation8 + $0x1084] sm:$0xf] }
 0x326   :  { %4193 = vmatpush.bf16.msrb.mxu3 %v7659_v2  ;;  %4223 = vmatpush.bf16.msra.mxu1 %v7343_v53  ;;  %v7778_v2 = vld [vmem:[#allocation8 + $0x10a0] sm:$0xf]  ;;  %v8879_v53 = vld [vmem:[#allocation8 + $0x10ac] sm:$0xf0] }
 0x327   :  { %4232 = vmatpush.bf16.msra.mxu2 %v7535_v6  ;;  %v8826_v6 = vld [vmem:[#allocation8 + $0xf0c] sm:$0xf]  ;;  %v7779_v10 = vor.u32 %v8879_v53, %v7778_v2  ;;  %v7764_v2 = vld [vmem:[#allocation8 + $0x1090] sm:$0xf0] }
 0x328   :  { %v7583_v12 = vor.u32 %v8826_v6, %v7580_v7 }
 0x329   :  { %5046 = vmatpush.bf16.msrb.mxu0 %v7779_v10  ;;  %v7767_v10 = vor.u32 %v8873_v63, %v7764_v2 }
 0x32a   :  { %4194 = vmatpush.bf16.msrb.mxu3 %v7643_v14  ;;  %4224 = vmatpush.bf16.msra.mxu1 %v7327_v15  ;;  %v7763_v14 = vor.u32 %v8875_v22, %v7762_v0  ;;  %v8871_v15 = vld [vmem:[#allocation8 + $0x106c] sm:$0xf0]  ;;  %v8018_v22 = vld [vmem:[#allocation8 + $0x1280] sm:$0xf] }
 0x32b   :  { %4233 = vmatpush.bf16.msra.mxu2 %v7519_v16  ;;  %v7938_v16 = vld [vmem:[#allocation8 + $0x11e0] sm:$0xf]  ;;  %v7747_v48 = vor.u32 %v8871_v15, %v7746_v13  ;;  %v8891_v0 = vld [vmem:[#allocation8 + $0x110c] sm:$0xf0] }
 0x32c   :  { %v7939_v17 = vor.u32 %v8919_v51, %v7938_v16  ;;  %v8939_v13 = vld [vmem:[#allocation8 + $0x128c] sm:$0xf0]  ;;  %v8869_v16 = vld [vmem:[#allocation8 + $0x1064] sm:$0xf]  ;;  %v7748_v51 = vld [vmem:[#allocation8 + $0x1070] sm:$0xf0] }
 0x32d   :  { %4147 = vmatmul.bf16.vlgmr.msra.gmra.mxu3 %v9491_v61  ;;  %4225 = vmatmul.bf16.vlgmr.msra.gmra.mxu1 %v9470_v37  ;;  %v7455_v37 = vor.u32 %v8794_v34, %v7452_v35  ;;  %v8907_v34 = vld [vmem:[#allocation8 + $0x118c] sm:$0xf0]  ;;  %v8885_v35 = vld [vmem:[#allocation8 + $0x10e4] sm:$0xf]  ;;  %v8019_v15 = vor.u32 %v8939_v13, %v8018_v22 }
 0x32e   :  { %4195 = vmatpush.bf16.msrb.mxu3 %v7627_v28  ;;  %5047 = vmatpush.bf16.msrb.mxu0 %v7763_v14  ;;  %v7730_v28 = vld [vmem:[#allocation8 + $0x1040] sm:$0xf]  ;;  %v7891_v36 = vor.u32 %v8907_v34, %v7890_v31  ;;  %v7716_v34 = vld [vmem:[#allocation8 + $0x1030] sm:$0xf0] }
 0x32f   :  { %4234 = vmatpush.bf16.msra.mxu2 %v7503_v38  ;;  %5057 = vmatpush.bf16.msrb.mxu1 %v7939_v17  ;;  %v8867_v38 = vld [vmem:[#allocation8 + $0x104c] sm:$0xf0]  ;;  %v8917_v17 = vld [vmem:[#allocation8 + $0x11e4] sm:$0xf] }
 0x330   :  { %v7731_v20 = vor.u32 %v8867_v38, %v7730_v28  ;;  %v7940_v28 = vld [vmem:[#allocation8 + $0x11f0] sm:$0xf0] }
 0x331   :  { %v7943_v38 = vor.u32 %v8917_v17, %v7940_v28  ;;  %v7844_v28 = vld [vmem:[#allocation8 + $0x1130] sm:$0xf0] }
 0x332   :  { %4196 = vmatpush.bf16.msrb.mxu3 %v7611_v8  ;;  %5048 = vmatpush.bf16.msrb.mxu0 %v7747_v48  ;;  %v7714_v8 = vld [vmem:[#allocation8 + $0x1020] sm:$0xf]  ;;  %v7751_v48 = vor.u32 %v8869_v16, %v7748_v51  ;;  %v8975_v51 = vld [vmem:[#allocation8 + $0x13ac] sm:$0xf0] }
 0x333   :  { %4235 = vmatpush.bf16.msra.mxu2 %v7487_v27  ;;  %5058 = vmatpush.bf16.msrb.mxu1 %v7923_v49  ;;  %v8863_v27 = vld [vmem:[#allocation8 + $0x102c] sm:$0xf0]  ;;  %v8162_v16 = vld [vmem:[#allocation8 + $0x13a0] sm:$0xf] }
 0x334   :  { %v7715_v59 = vor.u32 %v8863_v27, %v7714_v8  ;;  %v7732_v8 = vld [vmem:[#allocation8 + $0x1050] sm:$0xf0]  ;;  %v8913_v27 = vld [vmem:[#allocation8 + $0x11c4] sm:$0xf]  ;;  %v8163_v17 = vor.u32 %v8975_v51, %v8162_v16  ;;  %v7802_v16 = vld [vmem:[#allocation8 + $0x10c8] sm:$0xf] }
 0x335   :  { %v8884_v51 = vld [vmem:[#allocation8 + $0x10d4] sm:$0xf0] }
 0x336   :  { %4197 = vmatpush.bf16.msrb.mxu3 %v7595_v55  ;;  %5049 = vmatpush.bf16.msrb.mxu0 %v7731_v20  ;;  %v7907_v55 = vor.u32 %v8911_v29, %v7906_v3  ;;  %v8935_v20 = vld [vmem:[#allocation8 + $0x126c] sm:$0xf0]  ;;  %v7924_v3 = vld [vmem:[#allocation8 + $0x11d0] sm:$0xf0]  ;;  %v7735_v29 = vor.u32 %v8865_v21, %v7732_v8 }
 0x337   :  { %4236 = vmatpush.bf16.msra.mxu2 %v7471_v9  ;;  %v8859_v9 = vld [vmem:[#allocation8 + $0x100c] sm:$0xf0]  ;;  %v8003_v49 = vor.u32 %v8935_v20, %v8002_v19  ;;  %v8036_v20 = vld [vmem:[#allocation8 + $0x12b0] sm:$0xf0] }
 0x338   :  { %5059 = vmatpush.bf16.msrb.mxu1 %v7907_v55 }
 0x33a   :  { %4198 = vmatpush.bf16.msrb.mxu3 %v7579_v4  ;;  %5050 = vmatpush.bf16.msrb.mxu0 %v7715_v59  ;;  %v7815_v4 = vor.u32 %v8885_v35, %v7812_v45  ;;  %v8909_v35 = vld [vmem:[#allocation8 + $0x11a4] sm:$0xf] }
 0x33b   :  { %4237 = vmatpush.bf16.msra.mxu2 %v7455_v37  ;;  %v7874_v37 = vld [vmem:[#allocation8 + $0x1160] sm:$0xf] }
 0x33c   :  { %5060 = vmatpush.bf16.msrb.mxu1 %v7891_v36  ;;  %v7908_v36 = vld [vmem:[#allocation8 + $0x11b0] sm:$0xf0] }
 0x33d   :  { %4199 = vmatmul.bf16.vlgmr.msrb.gmra.mxu3 %v9491_v61 }
 0x33e   :  { %4243 = vmatpush.bf16.msra.mxu3 %v7695_v5  ;;  %4238 = vmatmul.bf16.vlgmr.msra.gmra.mxu2 %v9480_v26  ;;  %v7596_v26 = vld [vmem:[#allocation8 + $0xf38] sm:$0xf0]  ;;  %v8903_v5 = vld [vmem:[#allocation8 + $0x116c] sm:$0xf0] }
 0x33f   :  { %v7599_v60 = vor.u32 %v8830_v57, %v7596_v26  ;;  %v7875_v39 = vor.u32 %v8903_v5, %v7874_v37  ;;  %v7842_v57 = vld [vmem:[#allocation8 + $0x1120] sm:$0xf]  ;;  %v8895_v26 = vld [vmem:[#allocation8 + $0x112c] sm:$0xf0] }
 0x340   :  { %v7843_v58 = vor.u32 %v8895_v26, %v7842_v57  ;;  %v7970_v5 = vld [vmem:[#allocation8 + $0x1220] sm:$0xf]  ;;  %v7876_v57 = vld [vmem:[#allocation8 + $0x1170] sm:$0xf0] }
 0x341   :  { %5061 = vmatpush.bf16.msrb.mxu1 %v7875_v39 }
 0x342   :  { %4244 = vmatpush.bf16.msra.mxu3 %v7679_v40  ;;  %v8951_v40 = vld [vmem:[#allocation8 + $0x12ec] sm:$0xf0] }
 0x343   :  { %v8067_v43 = vor.u32 %v8951_v40, %v8066_v24  ;;  %v8927_v24 = vld [vmem:[#allocation8 + $0x122c] sm:$0xf0]  ;;  %v8857_v40 = vld [vmem:[#allocation8 + $0x1004] sm:$0xf] }
 0x344   :  { %v7971_v39 = vor.u32 %v8927_v24, %v7970_v5  ;;  %v8933_v24 = vld [vmem:[#allocation8 + $0x1264] sm:$0xf] }
 0x345   :  { %5070 = vmatpush.bf16.msrb.mxu2 %v8067_v43  ;;  %5062 = vmatpush.bf16.msrb.mxu1 %v7859_v47  ;;  %v7954_v47 = vld [vmem:[#allocation8 + $0x1200] sm:$0xf] }
 0x346   :  { %4245 = vmatpush.bf16.msra.mxu3 %v7663_v62 }
 0x349   :  { %5071 = vmatpush.bf16.msrb.mxu2 %v8051_v30  ;;  %5063 = vmatpush.bf16.msrb.mxu1 %v7843_v58  ;;  %v8983_v30 = vld [vmem:[#allocation8 + $0x13ec] sm:$0xf0]  ;;  %v8949_v58 = vld [vmem:[#allocation8 + $0x12e4] sm:$0xf] }
 0x34a   :  { %4246 = vmatpush.bf16.msra.mxu3 %v7647_v44  ;;  %v7799_v44 = vor.u32 %v8881_v1, %v7796_v41  ;;  %v7700_v1 = vld [vmem:[#allocation8 + $0x1010] sm:$0xf0]  ;;  %v8905_v41 = vld [vmem:[#allocation8 + $0x1184] sm:$0xf] }
 0x34b   :  { %v7895_v50 = vor.u32 %v8905_v41, %v7892_v23  ;;  %v8963_v23 = vld [vmem:[#allocation8 + $0x134c] sm:$0xf0] }
 0x34e   :  { %4247 = vmatpush.bf16.msra.mxu3 %v7631_v25  ;;  %v8877_v25 = vld [vmem:[#allocation8 + $0x10a4] sm:$0xf] }
 0x352   :  { %4248 = vmatpush.bf16.msra.mxu3 %v7615_v56  ;;  %v7783_v56 = vor.u32 %v8877_v25, %v7780_v54  ;;  %v8194_v25 = vld [vmem:[#allocation8 + $0x13e0] sm:$0xf]  ;;  %v7955_v54 = vor.u32 %v8923_v52, %v7954_v47  ;;  %v7988_v47 = vld [vmem:[#allocation8 + $0x1250] sm:$0xf0] }
 0x353   :  { %v8195_v26 = vor.u32 %v8983_v30, %v8194_v25  ;;  %v8098_v30 = vld [vmem:[#allocation8 + $0x1320] sm:$0xf] }
 0x356   :  { %4249 = vmatpush.bf16.msra.mxu3 %v7599_v60  ;;  %v8943_v60 = vld [vmem:[#allocation8 + $0x12ac] sm:$0xf0] }
 0x357   :  { %v8035_v7 = vor.u32 %v8943_v60, %v8034_v42  ;;  %v8068_v60 = vld [vmem:[#allocation8 + $0x12f0] sm:$0xf0] }
 0x358   :  { %v8071_v63 = vor.u32 %v8949_v58, %v8068_v60  ;;  %v7818_v60 = vld [vmem:[#allocation8 + $0x10e8] sm:$0xf] }
 0x359   :  { %5072 = vmatpush.bf16.msrb.mxu2 %v8035_v7 }
 0x35a   :  { %4250 = vmatpush.bf16.msra.mxu3 %v7583_v12  ;;  %v9501_v46 = vpop.f32.mrf.mxu0  ;;  %v7826_v12 = vld [vmem:[#allocation8 + $0x1100] sm:$0xf] }
 0x35b   :  { %v7827_v14 = vor.u32 %v8891_v0, %v7826_v12  ;;  %v7860_v12 = vld [vmem:[#allocation8 + $0x1150] sm:$0xf0]  ;;  %v8945_v0 = vld [vmem:[#allocation8 + $0x12c4] sm:$0xf] }
 0x35d   :  { %4251 = vmatmul.bf16.vlgmr.msra.gmra.mxu3 %v9491_v61  ;;  %v7698_v61 = vld [vmem:[#allocation8 + $0x1000] sm:$0xf]  ;;  %5064 = vmatpush.bf16.msrb.mxu1 %v7827_v14  ;;  %v8052_v14 = vld [vmem:[#allocation8 + $0x12d0] sm:$0xf0] }
 0x35e   :  { %v7699_v32 = vor.u32 %v8859_v9, %v7698_v61  ;;  %5073 = vmatpush.bf16.msrb.mxu2 %v8019_v15  ;;  %v7986_v61 = vld [vmem:[#allocation8 + $0x1240] sm:$0xf]  ;;  %v8931_v9 = vld [vmem:[#allocation8 + $0x124c] sm:$0xf0]  ;;  %5083 = vmatpush.bf16.msrb.mxu3 %v8195_v26  ;;  %v8055_v15 = vor.u32 %v8945_v0, %v8052_v14  ;;  %v8921_v0 = vld [vmem:[#allocation8 + $0x1204] sm:$0xf] }
 0x35f   :  { %v7987_v31 = vor.u32 %v8931_v9, %v7986_v61  ;;  %v7828_v61 = vld [vmem:[#allocation8 + $0x1110] sm:$0xf0]  ;;  %v8937_v9 = vld [vmem:[#allocation8 + $0x1284] sm:$0xf] }
 0x360   :  { %5051 = vmatpush.bf16.msrb.mxu0 %v7699_v32  ;;  %v8861_v32 = vld [vmem:[#allocation8 + $0x1024] sm:$0xf] }
 0x361   :  { %5109 = vmatpush.bf16.msra.mxu1 %v7943_v38  ;;  %v7719_v45 = vor.u32 %v8861_v32, %v7716_v34  ;;  %v8941_v38 = vld [vmem:[#allocation8 + $0x12a4] sm:$0xf]  ;;  %v8020_v34 = vld [vmem:[#allocation8 + $0x1290] sm:$0xf0] }
 0x362   :  { %v4059_v11 = vpop.f32.mrf.mxu0  ;;  %5074 = vmatpush.bf16.msrb.mxu2 %v8003_v49  ;;  %v8039_v21 = vor.u32 %v8941_v38, %v8036_v20  ;;  %v9515_v49 = vld [vmem:[#allocation10 + $0xc] sm:$0xf]  ;;  %v8981_v14 = vld [vmem:[#allocation8 + $0x13e4] sm:$0xf]  ;;  %v7803_v20 = vor.u32 %v8884_v51, %v7802_v16 }
 0x363   :  { %v7927_v11 = vor.u32 %v8913_v27, %v7924_v3  ;;  %v8146_v27 = vld [vmem:[#allocation8 + $0x1380] sm:$0xf]  ;;  %v8971_v3 = vld [vmem:[#allocation8 + $0x138c] sm:$0xf0]  ;;  %v3401_v38 = vperm.slane %v9515_v49, 1 }
 0x364   :  { %5096 = vmatpush.bf16.msra.mxu0 %v7815_v4  ;;  %v7911_v4 = vor.u32 %v8909_v35, %v7908_v36  ;;  %v8023_v35 = vor.u32 %v8937_v9, %v8020_v34  ;;  %v8130_v36 = vld [vmem:[#allocation8 + $0x1360] sm:$0xf]  ;;  %v7770_v34 = vld [vmem:[#allocation8 + $0x1088] sm:$0xf] }
 0x365   :  { %5110 = vmatpush.bf16.msra.mxu1 %v7927_v11  ;;  %v8889_v11 = vld [vmem:[#allocation8 + $0x1104] sm:$0xf] }
 0x366   :  { %5075 = vmatpush.bf16.msrb.mxu2 %v7987_v31  ;;  %v7831_v32 = vor.u32 %v8889_v11, %v7828_v61 }
 0x368   :  { %5097 = vmatpush.bf16.msra.mxu0 %v7799_v44  ;;  %v7703_v44 = vor.u32 %v8857_v40, %v7700_v1 }
 0x369   :  { %5111 = vmatpush.bf16.msra.mxu1 %v7911_v4  ;;  %v8967_v4 = vld [vmem:[#allocation8 + $0x136c] sm:$0xf0] }
 0x36a   :  { %v9503_v62 = vpop.f32.mrf.mxu1  ;;  %v9505_v33 = vpop.f32.mrf.mxu0  ;;  %5076 = vmatpush.bf16.msrb.mxu2 %v7971_v39  ;;  %v8131_v5 = vor.u32 %v8967_v4, %v8130_v36  ;;  %v8004_v39 = vld [vmem:[#allocation8 + $0x1270] sm:$0xf0]  ;;  %v8973_v36 = vld [vmem:[#allocation8 + $0x13a4] sm:$0xf] }
 0x36b   :  { %v8007_v40 = vor.u32 %v8933_v24, %v8004_v39  ;;  %v4110_v61 = vadd.f32 %v9505_v33, %v3401_v38  ;;  %v8164_v4 = vld [vmem:[#allocation8 + $0x13b0] sm:$0xf0]  ;;  %v8872_v33 = vld [vmem:[#allocation8 + $0x1074] sm:$0xf0] }
 0x36c   :  { %5098 = vmatpush.bf16.msra.mxu0 %v7783_v56  ;;  %v8901_v56 = vld [vmem:[#allocation8 + $0x1164] sm:$0xf] }
 0x36d   :  { %5112 = vmatpush.bf16.msra.mxu1 %v7895_v50  ;;  %v7879_v42 = vor.u32 %v8901_v56, %v7876_v57  ;;  %v8929_v50 = vld [vmem:[#allocation8 + $0x1244] sm:$0xf]  ;;  %v8959_v56 = vld [vmem:[#allocation8 + $0x132c] sm:$0xf0] }
 0x36e   :  { %5077 = vmatpush.bf16.msrb.mxu2 %v7955_v54  ;;  %v7991_v25 = vor.u32 %v8929_v50, %v7988_v47  ;;  %v8099_v26 = vor.u32 %v8959_v56, %v8098_v30  ;;  %v8148_v50 = vld [vmem:[#allocation8 + $0x1390] sm:$0xf0]  ;;  %v7738_v30 = vld [vmem:[#allocation8 + $0x1048] sm:$0xf]  ;;  %v8868_v56 = vld [vmem:[#allocation8 + $0x1054] sm:$0xf0] }
 0x370   :  { %5099 = vmatpush.bf16.msra.mxu0 %v7767_v10  ;;  %v8897_v10 = vld [vmem:[#allocation8 + $0x1144] sm:$0xf] }
 0x371   :  { %5113 = vmatpush.bf16.msra.mxu1 %v7879_v42  ;;  %v7863_v13 = vor.u32 %v8897_v10, %v7860_v12  ;;  %v7972_v42 = vld [vmem:[#allocation8 + $0x1230] sm:$0xf0] }
 0x372   :  { %v4072_v53 = vpop.f32.mrf.mxu1  ;;  %v4111_v6 = vpop.f32.mrf.mxu0  ;;  %5122 = vmatpush.bf16.msra.mxu2 %v8071_v63  ;;  %v8888_v63 = vld [vmem:[#allocation8 + $0x10f4] sm:$0xf0] }
 0x373   :  { %v8178_v53 = vld [vmem:[#allocation8 + $0x13c0] sm:$0xf]  ;;  %v8979_v6 = vld [vmem:[#allocation8 + $0x13cc] sm:$0xf0] }
 0x374   :  { %5100 = vmatpush.bf16.msra.mxu0 %v7751_v48  ;;  %v8179_v7 = vor.u32 %v8979_v6, %v8178_v53  ;;  %v8893_v48 = vld [vmem:[#allocation8 + $0x1124] sm:$0xf] }
 0x375   :  { %5114 = vmatpush.bf16.msra.mxu1 %v7863_v13  ;;  %v7847_v19 = vor.u32 %v8893_v48, %v7844_v28  ;;  %v7956_v13 = vld [vmem:[#allocation8 + $0x1210] sm:$0xf0] }
 0x376   :  { %5084 = vmatpush.bf16.msrb.mxu3 %v8179_v7  ;;  %5123 = vmatpush.bf16.msra.mxu2 %v8055_v15  ;;  %v8082_v7 = vld [vmem:[#allocation8 + $0x1300] sm:$0xf]  ;;  %v8196_v48 = vld [vmem:[#allocation8 + $0x13f0] sm:$0xf0] }
 0x377   :  { %v8199_v28 = vor.u32 %v8981_v14, %v8196_v48  ;;  %v8860_v48 = vld [vmem:[#allocation8 + $0x1014] sm:$0xf0] }
 0x378   :  { %5101 = vmatpush.bf16.msra.mxu0 %v7735_v29  ;;  %v8147_v29 = vor.u32 %v8971_v3, %v8146_v27  ;;  %v8880_v27 = vld [vmem:[#allocation8 + $0x10b4] sm:$0xf0]  ;;  %v8977_v3 = vld [vmem:[#allocation8 + $0x13c4] sm:$0xf] }
 0x379   :  { %5115 = vmatpush.bf16.msra.mxu1 %v7847_v19 }
 0x37a   :  { %v9507_v59 = vpop.f32.mrf.mxu1  ;;  %5085 = vmatpush.bf16.msrb.mxu3 %v8163_v17  ;;  %5124 = vmatpush.bf16.msra.mxu2 %v8039_v21  ;;  %v7959_v17 = vor.u32 %v8921_v0, %v7956_v13  ;;  %v7786_v21 = vld [vmem:[#allocation8 + $0x10a8] sm:$0xf]  ;;  %v8116_v0 = vld [vmem:[#allocation8 + $0x1350] sm:$0xf0] }
 0x37c   :  { %v9509_v55 = vpop.f32.mrf.mxu0  ;;  %5102 = vmatpush.bf16.msra.mxu0 %v7719_v45  ;;  %v3400_v45 = vperm.slane %v9515_v49, 0 }
 0x37d   :  { %5116 = vmatpush.bf16.msra.mxu1 %v7831_v32  ;;  %v7787_v32 = vor.u32 %v8880_v27, %v7786_v21  ;;  %v8100_v21 = vld [vmem:[#allocation8 + $0x1330] sm:$0xf0]  ;;  %v8886_v27 = vld [vmem:[#allocation8 + $0x10ec] sm:$0xf] }
 0x37e   :  { %5086 = vmatpush.bf16.msrb.mxu3 %v8147_v29  ;;  %5125 = vmatpush.bf16.msra.mxu2 %v8023_v35  ;;  %v4058_v41 = vadd.f32 %v9501_v46, %v3400_v45  ;;  %v8925_v46 = vld [vmem:[#allocation8 + $0x1224] sm:$0xf]  ;;  %v8180_v29 = vld [vmem:[#allocation8 + $0x13d0] sm:$0xf0]  ;;  %v4123_v35 = vadd.f32 %v9507_v59, %v4110_v61  ;;  %v8876_v45 = vld [vmem:[#allocation8 + $0x1094] sm:$0xf0] }
 0x37f   :  { %v8183_v11 = vor.u32 %v8977_v3, %v8180_v29  ;;  %v7820_v3 = vld [vmem:[#allocation8 + $0x10f8] sm:$0xf0] }
 0x380   :  { %v9511_v37 = vpop.f32.mrf.mxu2  ;;  %5103 = vmatpush.bf16.msra.mxu0 %v7703_v44  ;;  %v8114_v44 = vld [vmem:[#allocation8 + $0x1340] sm:$0xf]  ;;  %v4071_v52 = vadd.f32 %v9503_v62, %v4058_v41  ;;  %v8955_v62 = vld [vmem:[#allocation8 + $0x130c] sm:$0xf0]  ;;  %v7754_v41 = vld [vmem:[#allocation8 + $0x1068] sm:$0xf] }
 0x381   :  { %v8083_v12 = vor.u32 %v8955_v62, %v8082_v7  ;;  %v8864_v7 = vld [vmem:[#allocation8 + $0x1034] sm:$0xf0]  ;;  %v7914_v62 = vld [vmem:[#allocation8 + $0x11a8] sm:$0xf] }
 0x382   :  { %v4124_v43 = vpop.f32.mrf.mxu1  ;;  %5087 = vmatpush.bf16.msrb.mxu3 %v8131_v5  ;;  %5126 = vmatpush.bf16.msra.mxu2 %v8007_v40  ;;  %v4084_v54 = vadd.f32 %v9511_v37, %v4071_v52  ;;  %v7819_v37 = vor.u32 %v8888_v63, %v7818_v60  ;;  %v8167_v5 = vor.u32 %v8973_v36, %v8164_v4  ;;  %v3402_v60 = vperm.slane %v9515_v49, 2  ;;  %v8074_v36 = vld [vmem:[#allocation8 + $0x12e8] sm:$0xf]  ;;  %v8953_v4 = vld [vmem:[#allocation8 + $0x1304] sm:$0xf] }
 0x383   :  { %v7771_v40 = vor.u32 %v8876_v45, %v7770_v34  ;;  %v8904_v34 = vld [vmem:[#allocation8 + $0x1174] sm:$0xf0] }
 0x384   :  { %v4163_v18 = vpop.f32.mrf.mxu0  ;;  %v4162_v14 = vadd.f32 %v9509_v55, %v3402_v60  ;;  %v8944_v60 = vld [vmem:[#allocation8 + $0x12b4] sm:$0xf0] }
 0x385   :  { %v8115_v18 = vor.u32 %v8963_v23, %v8114_v44  ;;  %v8920_v23 = vld [vmem:[#allocation8 + $0x11f4] sm:$0xf0] }
 0x386   :  { %5127 = vmatpush.bf16.msra.mxu2 %v7991_v25  ;;  %v7755_v25 = vor.u32 %v8872_v33, %v7754_v41 }
 0x387   :  { %5088 = vmatpush.bf16.msrb.mxu3 %v8115_v18  ;;  %v8969_v18 = vld [vmem:[#allocation8 + $0x1384] sm:$0xf] }
 0x388   :  { %v4085_v2 = vpop.f32.mrf.mxu2  ;;  %v8151_v47 = vor.u32 %v8969_v18, %v8148_v50  ;;  %v7866_v18 = vld [vmem:[#allocation8 + $0x1148] sm:$0xf]  ;;  %v8900_v50 = vld [vmem:[#allocation8 + $0x1154] sm:$0xf0] }
 0x389   :  { %v7975_v2 = vor.u32 %v8925_v46, %v7972_v42  ;;  %v8965_v46 = vld [vmem:[#allocation8 + $0x1364] sm:$0xf]  ;;  %v8132_v42 = vld [vmem:[#allocation8 + $0x1370] sm:$0xf0] }
 0x38a   :  { %v9513_v22 = vpop.f32.mrf.mxu1 }
 0x38b   :  { %5089 = vmatpush.bf16.msrb.mxu3 %v8099_v26  ;;  %5128 = vmatpush.bf16.msra.mxu2 %v7975_v2  ;;  %v8916_v26 = vld [vmem:[#allocation8 + $0x11d4] sm:$0xf0]  ;;  %v7739_v2 = vor.u32 %v8868_v56, %v7738_v30  ;;  %v4175_v38 = vadd.f32 %v9513_v22, %v4162_v14  ;;  %v7823_v22 = vor.u32 %v8886_v27, %v7820_v3  ;;  %v7756_v14 = vld [vmem:[#allocation8 + $0x1078] sm:$0xf0]  ;;  %v8914_v3 = vld [vmem:[#allocation8 + $0x11cc] sm:$0xf] }
 0x38c   :  { %v7867_v30 = vor.u32 %v8900_v50, %v7866_v18  ;;  %v7740_v27 = vld [vmem:[#allocation8 + $0x1058] sm:$0xf0] }
 0x38d   :  { %v7900_v18 = vld [vmem:[#allocation8 + $0x1198] sm:$0xf0] }
 0x38f   :  { %5090 = vmatpush.bf16.msrb.mxu3 %v8083_v12  ;;  %5129 = vmatpush.bf16.msra.mxu2 %v7959_v17  ;;  %v8961_v12 = vld [vmem:[#allocation8 + $0x1344] sm:$0xf]  ;;  %v7706_v17 = vld [vmem:[#allocation8 + $0x1008] sm:$0xf] }
 0x390   :  { %v9517_v8 = vpop.f32.mrf.mxu2  ;;  %v8119_v13 = vor.u32 %v8961_v12, %v8116_v0  ;;  %v7707_v61 = vor.u32 %v8860_v48, %v7706_v17  ;;  %v8026_v12 = vld [vmem:[#allocation8 + $0x1288] sm:$0xf]  ;;  %v8940_v0 = vld [vmem:[#allocation8 + $0x1294] sm:$0xf0] }
 0x391   :  { %v4136_v24 = vadd.f32 %v9517_v8, %v4123_v35  ;;  %v7930_v8 = vld [vmem:[#allocation8 + $0x11c8] sm:$0xf]  ;;  %v8027_v48 = vor.u32 %v8940_v0, %v8026_v12  ;;  %v8946_v12 = vld [vmem:[#allocation8 + $0x12cc] sm:$0xf]  ;;  %v8060_v0 = vld [vmem:[#allocation8 + $0x12d8] sm:$0xf0] }
 0x392   :  { %v4176_v31 = vpop.f32.mrf.mxu1 }
 0x393   :  { %5135 = vmatpush.bf16.msra.mxu3 %v8199_v28  ;;  %v7898_v28 = vld [vmem:[#allocation8 + $0x1188] sm:$0xf] }
 0x397   :  { %5136 = vmatpush.bf16.msra.mxu3 %v8183_v11 }
 0x398   :  { %v4137_v43 = vpop.f32.mrf.mxu2 }
 0x399   :  { %v7946_v43 = vld [vmem:[#allocation8 + $0x11e8] sm:$0xf] }
 0x39a   :  { %v9520_v1 = vpop.f32.mrf.mxu0 }
 0x39b   :  { %5137 = vmatpush.bf16.msra.mxu3 %v8167_v5  ;;  %v8084_v5 = vld [vmem:[#allocation8 + $0x1310] sm:$0xf0] }
 0x39c   :  { %v8087_v41 = vor.u32 %v8953_v4, %v8084_v5  ;;  %v7916_v4 = vld [vmem:[#allocation8 + $0x11b8] sm:$0xf0] }
 0x39f   :  { %5138 = vmatpush.bf16.msra.mxu3 %v8151_v47  ;;  %v8058_v47 = vld [vmem:[#allocation8 + $0x12c8] sm:$0xf] }
 0x3a0   :  { %v4096_v57 = vpop.f32.mrf.mxu3 }
 0x3a1   :  { %v4097_v58 = vadd.f32 %v4096_v57, %v4084_v54  ;;  %v7947_v54 = vor.u32 %v8920_v23, %v7946_v43 }
 0x3a2   :  { %v4215_v53 = vpop.f32.mrf.mxu0 }
 0x3a3   :  { %v4256_v6 = vmax.f32 %v4097_v58, 0.0  ;;  %v9525_v10 = vpop.f32.mrf.mxu2  ;;  %v8135_v58 = vor.u32 %v8965_v46, %v8132_v42  ;;  %v7931_v53 = vor.u32 %v8916_v26, %v7930_v8  ;;  %v7850_v46 = vld [vmem:[#allocation8 + $0x1128] sm:$0xf]  ;;  %v8896_v42 = vld [vmem:[#allocation8 + $0x1134] sm:$0xf0] }
 0x3a4   :  { %v4188_v11 = vadd.f32 %v9525_v10, %v4175_v38  ;;  %v8010_v38 = vld [vmem:[#allocation8 + $0x1268] sm:$0xf] }
 0x3a5   :  { %v9527_v15 = vpack.c.bf16 %v4256_v6, %v4256_v6  ;;  %v7722_v6 = vld [vmem:[#allocation8 + $0x1028] sm:$0xf]  ;;  %5139 = vmatpush.bf16.msra.mxu3 %v8135_v58 }
 0x3a6   :  { %v7723_v16 = vor.u32 %v8864_v7, %v7722_v6  ;;  %v8042_v58 = vld [vmem:[#allocation8 + $0x12a8] sm:$0xf] }
 0x3a7   :  { %5052 = vmatmul.bf16.vlgmr.msrb.gmra.mxu0 %v9527_v15  ;;  %v8043_v6 = vor.u32 %v8944_v60, %v8042_v58 }
 0x3a8   :  { %5148 = vmatpush.bf16.msrb.mxu0 %v7819_v37  ;;  %v4098_v19 = vpop.f32.mrf.mxu3  ;;  %v8912_v37 = vld [vmem:[#allocation8 + $0x11b4] sm:$0xf0] }
 0x3a9   :  { %v7915_v51 = vor.u32 %v8912_v37, %v7914_v62  ;;  %v8908_v19 = vld [vmem:[#allocation8 + $0x1194] sm:$0xf0]  ;;  %5140 = vmatpush.bf16.msra.mxu3 %v8119_v13  ;;  %v7834_v62 = vld [vmem:[#allocation8 + $0x1108] sm:$0xf]  ;;  %v8870_v13 = vld [vmem:[#allocation8 + $0x106c] sm:$0xf] }
 0x3aa   :  { %v9532_v9 = vpop.f32.mrf.mxu1  ;;  %v8892_v37 = vld [vmem:[#allocation8 + $0x1114] sm:$0xf0] }
 0x3ab   :  { %v4189_v31 = vpop.f32.mrf.mxu2  ;;  %v7835_v17 = vor.u32 %v8892_v37, %v7834_v62  ;;  %v8898_v62 = vld [vmem:[#allocation8 + $0x114c] sm:$0xf]  ;;  %v7868_v37 = vld [vmem:[#allocation8 + $0x1158] sm:$0xf0] }
 0x3ac   :  { %5149 = vmatpush.bf16.msrb.mxu0 %v7803_v20  ;;  %v8957_v20 = vld [vmem:[#allocation8 + $0x1324] sm:$0xf]  ;;  %v7899_v31 = vor.u32 %v8908_v19, %v7898_v28  ;;  %v7759_v28 = vor.u32 %v8870_v13, %v7756_v14 }
 0x3ad   :  { %v8103_v29 = vor.u32 %v8957_v20, %v8100_v21  ;;  %v8936_v20 = vld [vmem:[#allocation8 + $0x1274] sm:$0xf0]  ;;  %v8866_v21 = vld [vmem:[#allocation8 + $0x104c] sm:$0xf] }
 0x3af   :  { %5141 = vmatpush.bf16.msra.mxu3 %v8103_v29  ;;  %v7932_v29 = vld [vmem:[#allocation8 + $0x11d8] sm:$0xf0] }
 0x3b0   :  { %5150 = vmatpush.bf16.msrb.mxu0 %v7787_v32  ;;  %v4148_v39 = vpop.f32.mrf.mxu3  ;;  %v7882_v32 = vld [vmem:[#allocation8 + $0x1168] sm:$0xf] }
 0x3b1   :  { %v4149_v44 = vadd.f32 %v4148_v39, %v4136_v24  ;;  %v8952_v24 = vld [vmem:[#allocation8 + $0x12f4] sm:$0xf0]  ;;  %v8882_v39 = vld [vmem:[#allocation8 + $0x10cc] sm:$0xf]  ;;  %v7883_v33 = vor.u32 %v8904_v34, %v7882_v32  ;;  %v7935_v32 = vor.u32 %v8914_v3, %v7932_v29  ;;  %v8154_v3 = vld [vmem:[#allocation8 + $0x1388] sm:$0xf] }
 0x3b2   :  { %v4228_v52 = vpop.f32.mrf.mxu1  ;;  %v8932_v34 = vld [vmem:[#allocation8 + $0x1254] sm:$0xf0] }
 0x3b3   :  { %v4257_v59 = vmax.f32 %v4149_v44, 0.0  ;;  %v8075_v44 = vor.u32 %v8952_v24, %v8074_v36  ;;  %5142 = vmatpush.bf16.msra.mxu3 %v8087_v41  ;;  %v8878_v52 = vld [vmem:[#allocation8 + $0x10ac] sm:$0xf]  ;;  %v8972_v29 = vld [vmem:[#allocation8 + $0x1394] sm:$0xf0] }
 0x3b4   :  { %5151 = vmatpush.bf16.msrb.mxu0 %v7771_v40  ;;  %v7804_v40 = vld [vmem:[#allocation8 + $0x10d8] sm:$0xf0]  ;;  %v8910_v36 = vld [vmem:[#allocation8 + $0x11ac] sm:$0xf] }
 0x3b5   :  { %v9536_v57 = vpack.c.bf16 %v4257_v59, %v4257_v59  ;;  %v7807_v23 = vor.u32 %v8882_v39, %v7804_v40  ;;  %v8948_v59 = vld [vmem:[#allocation8 + $0x12d4] sm:$0xf0]  ;;  %v7978_v39 = vld [vmem:[#allocation8 + $0x1228] sm:$0xf]  ;;  %v7919_v41 = vor.u32 %v8910_v36, %v7916_v4  ;;  %v8934_v4 = vld [vmem:[#allocation8 + $0x126c] sm:$0xf] }
 0x3b6   :  { %v8059_v8 = vor.u32 %v8948_v59, %v8058_v47  ;;  %v8968_v36 = vld [vmem:[#allocation8 + $0x1374] sm:$0xf0] }
 0x3b7   :  { %5065 = vmatmul.bf16.vlgmr.msrb.gmra.mxu1 %v9536_v57  ;;  %5104 = vmatmul.bf16.vlgmr.msra.gmra.mxu0 %v9527_v15 }
 0x3b8   :  { %5152 = vmatpush.bf16.msrb.mxu0 %v7755_v25  ;;  %5161 = vmatpush.bf16.msrb.mxu1 %v7947_v54  ;;  %v4150_v63 = vpop.f32.mrf.mxu3  ;;  %v7788_v25 = vld [vmem:[#allocation8 + $0x10b8] sm:$0xf0] }
 0x3b9   :  { %v7791_v26 = vor.u32 %v8878_v52, %v7788_v25  ;;  %v8874_v63 = vld [vmem:[#allocation8 + $0x108c] sm:$0xf]  ;;  %v7962_v52 = vld [vmem:[#allocation8 + $0x1208] sm:$0xf]  ;;  %v8924_v25 = vld [vmem:[#allocation8 + $0x1214] sm:$0xf0] }
 0x3bc   :  { %5153 = vmatpush.bf16.msrb.mxu0 %v7739_v2  ;;  %5162 = vmatpush.bf16.msrb.mxu1 %v7931_v53  ;;  %v7772_v2 = vld [vmem:[#allocation8 + $0x1098] sm:$0xf0]  ;;  %v7851_v53 = vor.u32 %v8896_v42, %v7850_v46  ;;  %v8950_v46 = vld [vmem:[#allocation8 + $0x12ec] sm:$0xf] }
 0x3bd   :  { %v7775_v7 = vor.u32 %v8874_v63, %v7772_v2  ;;  %v8076_v42 = vld [vmem:[#allocation8 + $0x12f8] sm:$0xf0] }
 0x3c0   :  { %5154 = vmatpush.bf16.msrb.mxu0 %v7723_v16  ;;  %5163 = vmatpush.bf16.msrb.mxu1 %v7915_v51  ;;  %v4200_v55 = vpop.f32.mrf.mxu3  ;;  %v8918_v16 = vld [vmem:[#allocation8 + $0x11ec] sm:$0xf]  ;;  %v7948_v51 = vld [vmem:[#allocation8 + $0x11f8] sm:$0xf0] }
 0x3c1   :  { %v4201_v35 = vadd.f32 %v4200_v55, %v4188_v11  ;;  %v9544_v45 = vpop.f32.mrf.mxu2  ;;  %v7951_v19 = vor.u32 %v8918_v16, %v7948_v51  ;;  %v3403_v11 = vperm.slane %v9515_v49, 3  ;;  %v8011_v55 = vor.u32 %v8936_v20, %v8010_v38  ;;  %v7852_v38 = vld [vmem:[#allocation8 + $0x1138] sm:$0xf0] }
 0x3c2   :  { %v7871_v16 = vor.u32 %v8898_v62, %v7868_v37  ;;  %v8063_v51 = vor.u32 %v8946_v12, %v8060_v0  ;;  %v8044_v20 = vld [vmem:[#allocation8 + $0x12b8] sm:$0xf0]  ;;  %v8966_v62 = vld [vmem:[#allocation8 + $0x136c] sm:$0xf] }
 0x3c3   :  { %v4258_v10 = vmax.f32 %v4201_v35, 0.0  ;;  %v8862_v35 = vld [vmem:[#allocation8 + $0x102c] sm:$0xf]  ;;  %v4214_v5 = vadd.f32 %v9520_v1, %v3403_v11  ;;  %v8140_v37 = vld [vmem:[#allocation8 + $0x1378] sm:$0xf0] }
 0x3c4   :  { %5155 = vmatpush.bf16.msrb.mxu0 %v7707_v61  ;;  %5164 = vmatpush.bf16.msrb.mxu1 %v7899_v31  ;;  %v7743_v61 = vor.u32 %v8866_v21, %v7740_v27  ;;  %v7994_v31 = vld [vmem:[#allocation8 + $0x1248] sm:$0xf]  ;;  %v8890_v11 = vld [vmem:[#allocation8 + $0x110c] sm:$0xf]  ;;  %v8143_v12 = vor.u32 %v8966_v62, %v8140_v37 }
 0x3c5   :  { %v9546_v43 = vpack.c.bf16 %v4258_v10, %v4258_v10  ;;  %v7995_v49 = vor.u32 %v8932_v34, %v7994_v31  ;;  %v4227_v40 = vadd.f32 %v9532_v9, %v4214_v5  ;;  %v8928_v10 = vld [vmem:[#allocation8 + $0x1234] sm:$0xf0]  ;;  %v8202_v9 = vld [vmem:[#allocation8 + $0x13e8] sm:$0xf]  ;;  %v8028_v31 = vld [vmem:[#allocation8 + $0x1298] sm:$0xf0] }
 0x3c6   :  { %v7979_v1 = vor.u32 %v8928_v10, %v7978_v39  ;;  %v8012_v5 = vld [vmem:[#allocation8 + $0x1278] sm:$0xf0]  ;;  %v8122_v39 = vld [vmem:[#allocation8 + $0x1348] sm:$0xf]  ;;  %v8962_v0 = vld [vmem:[#allocation8 + $0x134c] sm:$0xf] }
 0x3c7   :  { %5078 = vmatmul.bf16.vlgmr.msrb.gmra.mxu2 %v9546_v43  ;;  %5117 = vmatmul.bf16.vlgmr.msra.gmra.mxu1 %v9536_v57  ;;  %v4240_v50 = vadd.f32 %v9544_v45, %v4227_v40  ;;  %v7963_v45 = vor.u32 %v8924_v25, %v7962_v52  ;;  %v8964_v40 = vld [vmem:[#allocation8 + $0x1354] sm:$0xf0]  ;;  %v7996_v10 = vld [vmem:[#allocation8 + $0x1258] sm:$0xf0]  ;;  %v8090_v52 = vld [vmem:[#allocation8 + $0x1308] sm:$0xf] }
 0x3c8   :  { %5200 = vmatpush.bf16.msra.mxu0 %v7823_v22  ;;  %5165 = vmatpush.bf16.msrb.mxu1 %v7883_v33  ;;  %v4202_v54 = vpop.f32.mrf.mxu3  ;;  %v7724_v22 = vld [vmem:[#allocation8 + $0x1038] sm:$0xf0]  ;;  %v8858_v33 = vld [vmem:[#allocation8 + $0x100c] sm:$0xf]  ;;  %v8956_v25 = vld [vmem:[#allocation8 + $0x1314] sm:$0xf0] }
 0x3c9   :  { %5156 = vmatmul.bf16.vlgmr.msrb.gmra.mxu0 %v9527_v15  ;;  %5174 = vmatpush.bf16.msrb.mxu2 %v8075_v44  ;;  %v4241_v56 = vpop.f32.mrf.mxu2  ;;  %v7727_v24 = vor.u32 %v8862_v35, %v7724_v22  ;;  %v7708_v44 = vld [vmem:[#allocation8 + $0x1018] sm:$0xf0]  ;;  %v8138_v22 = vld [vmem:[#allocation8 + $0x1368] sm:$0xf] }
 0x3ca   :  { %v7711_v59 = vor.u32 %v8858_v33, %v7708_v44  ;;  %v8984_v56 = vld [vmem:[#allocation8 + $0x13f4] sm:$0xf0]  ;;  %v8123_v33 = vor.u32 %v8964_v40, %v8122_v39  ;;  %v8996_v40 = vld [vmem:[#allocation11 + $0x58] sm:$0xff] }
 0x3cb   :  { %v8203_v60 = vor.u32 %v8984_v56, %v8202_v9  ;;  %v8982_v9 = vld [vmem:[#allocation8 + $0x13ec] sm:$0xf]  ;;  %v8204_v56 = vld [vmem:[#allocation8 + $0x13f8] sm:$0xf0] }
 0x3cc   :  { %5201 = vmatpush.bf16.msra.mxu0 %v7807_v23  ;;  %5166 = vmatpush.bf16.msrb.mxu1 %v7867_v30  ;;  %v8906_v23 = vld [vmem:[#allocation8 + $0x118c] sm:$0xf] }
 0x3cd   :  { %5175 = vmatpush.bf16.msrb.mxu2 %v8059_v8  ;;  %v7903_v30 = vor.u32 %v8906_v23, %v7900_v18  ;;  %v8902_v8 = vld [vmem:[#allocation8 + $0x116c] sm:$0xf]  ;;  %v8106_v23 = vld [vmem:[#allocation8 + $0x1328] sm:$0xf]  ;;  %v8960_v18 = vld [vmem:[#allocation8 + $0x1334] sm:$0xf0] }
 0x3d0   :  { %5202 = vmatpush.bf16.msra.mxu0 %v7791_v26  ;;  %5167 = vmatpush.bf16.msrb.mxu1 %v7851_v53  ;;  %v7884_v26 = vld [vmem:[#allocation8 + $0x1178] sm:$0xf0]  ;;  %v8079_v53 = vor.u32 %v8950_v46, %v8076_v42  ;;  %v8978_v46 = vld [vmem:[#allocation8 + $0x13cc] sm:$0xf] }
 0x3d1   :  { %5176 = vmatpush.bf16.msrb.mxu2 %v8043_v6  ;;  %v7887_v2 = vor.u32 %v8902_v8, %v7884_v26  ;;  %v8186_v6 = vld [vmem:[#allocation8 + $0x13c8] sm:$0xf]  ;;  %v8091_v8 = vor.u32 %v8956_v25, %v8090_v52  ;;  %v8207_v26 = vor.u32 %v8982_v9, %v8204_v56  ;;  %v8188_v42 = vld [vmem:[#allocation8 + $0x13d8] sm:$0xf0]  ;;  %v9575_v52 = vld [vmem:[#allocation10 + $0x10] sm:$0xf] }
 0x3d2   :  { %v9003_v9 = vld [vmem:[#allocation11 + $0x90] sm:$0xff]  ;;  %v4397_v37 = vperm.slane %v9575_v52, 1 }
 0x3d4   :  { %5203 = vmatpush.bf16.msra.mxu0 %v7775_v7  ;;  %5168 = vmatpush.bf16.msrb.mxu1 %v7835_v17  ;;  %v8980_v7 = vld [vmem:[#allocation8 + $0x13d4] sm:$0xf0]  ;;  %v8170_v17 = vld [vmem:[#allocation8 + $0x13a8] sm:$0xf] }
 0x3d5   :  { %5177 = vmatpush.bf16.msrb.mxu2 %v8027_v48  ;;  %v8187_v14 = vor.u32 %v8980_v7, %v8186_v6  ;;  %v8976_v48 = vld [vmem:[#allocation8 + $0x13b4] sm:$0xf0]  ;;  %v8156_v6 = vld [vmem:[#allocation8 + $0x1398] sm:$0xf0] }
 0x3d6   :  { %v8171_v21 = vor.u32 %v8976_v48, %v8170_v17  ;;  %v8954_v48 = vld [vmem:[#allocation8 + $0x130c] sm:$0xf] }
 0x3d7   :  { %5130 = vmatmul.bf16.vlgmr.msra.gmra.mxu2 %v9546_v43  ;;  %5169 = vmatmul.bf16.vlgmr.msrb.gmra.mxu1 %v9536_v57 }
 0x3d8   :  { %5204 = vmatpush.bf16.msra.mxu0 %v7759_v28  ;;  %5213 = vmatpush.bf16.msra.mxu1 %v7951_v19  ;;  %v8894_v28 = vld [vmem:[#allocation8 + $0x112c] sm:$0xf] }
 0x3d9   :  { %5178 = vmatpush.bf16.msrb.mxu2 %v8011_v55  ;;  %v8942_v19 = vld [vmem:[#allocation8 + $0x12ac] sm:$0xf]  ;;  %v7836_v55 = vld [vmem:[#allocation8 + $0x1118] sm:$0xf0] }
 0x3da   :  { %v8047_v27 = vor.u32 %v8942_v19, %v8044_v20  ;;  %v7839_v34 = vor.u32 %v8890_v11, %v7836_v55  ;;  %v8992_v20 = vld [vmem:[#allocation11 + $0x38] sm:$0xff] }
 0x3dc   :  { %5205 = vmatpush.bf16.msra.mxu0 %v7743_v61  ;;  %5214 = vmatpush.bf16.msra.mxu1 %v7935_v32  ;;  %v8938_v61 = vld [vmem:[#allocation8 + $0x128c] sm:$0xf]  ;;  %v8155_v32 = vor.u32 %v8972_v29, %v8154_v3  ;;  %v8990_v3 = vld [vmem:[#allocation11 + $0x28] sm:$0xff]  ;;  %v8989_v29 = vld [vmem:[#allocation11 + $0x20] sm:$0xff] }
 0x3dd   :  { %5179 = vmatpush.bf16.msrb.mxu2 %v7995_v49  ;;  %v8031_v35 = vor.u32 %v8938_v61, %v8028_v31  ;;  %v8139_v49 = vor.u32 %v8968_v36, %v8138_v22  ;;  %v8988_v61 = vld [vmem:[#allocation11 + $0x18] sm:$0xff]  ;;  %v8986_v22 = vld [vmem:[#allocation11 + $0x8] sm:$0xff] }
 0x3de   :  { %v9000_v31 = vld [vmem:[#allocation11 + $0x78] sm:$0xff]  ;;  %v8998_v36 = vld [vmem:[#allocation11 + $0x68] sm:$0xff] }
 0x3e0   :  { %v4252_v47 = vpop.f32.mrf.mxu3  ;;  %5206 = vmatpush.bf16.msra.mxu0 %v7727_v24  ;;  %5215 = vmatpush.bf16.msra.mxu1 %v7919_v41  ;;  %v8015_v24 = vor.u32 %v8934_v4, %v8012_v5  ;;  %v8930_v41 = vld [vmem:[#allocation8 + $0x124c] sm:$0xf]  ;;  %v8985_v5 = vld [vmem:[#allocation11] sm:$0xff] }
 0x3e1   :  { %v4253_v54 = vadd.f32 %v4252_v47, %v4240_v50  ;;  %5180 = vmatpush.bf16.msrb.mxu2 %v7979_v1  ;;  %v7999_v44 = vor.u32 %v8930_v41, %v7996_v10  ;;  %v8926_v50 = vld [vmem:[#allocation8 + $0x122c] sm:$0xf]  ;;  %v7980_v47 = vld [vmem:[#allocation8 + $0x1238] sm:$0xf0]  ;;  %v8107_v1 = vor.u32 %v8960_v18, %v8106_v23 }
 0x3e2   :  { %v9008_v41 = vld [vmem:[#allocation11 + $0xb8] sm:$0xff]  ;;  %v8994_v18 = vld [vmem:[#allocation11 + $0x48] sm:$0xff] }
 0x3e3   :  { %v4259_v58 = vmax.f32 %v4253_v54, 0.0  ;;  %v8922_v54 = vld [vmem:[#allocation8 + $0x120c] sm:$0xf] }
 0x3e4   :  { %5207 = vmatpush.bf16.msra.mxu0 %v7711_v59  ;;  %5216 = vmatpush.bf16.msra.mxu1 %v7903_v30  ;;  %v7983_v59 = vor.u32 %v8926_v50, %v7980_v47  ;;  %v7964_v30 = vld [vmem:[#allocation8 + $0x1218] sm:$0xf0] }
 0x3e5   :  { %v9557_v63 = vpack.c.bf16 %v4259_v58, %v4259_v58  ;;  %5181 = vmatpush.bf16.msrb.mxu2 %v7963_v45  ;;  %v8191_v58 = vor.u32 %v8978_v46, %v8188_v42  ;;  %v8974_v45 = vld [vmem:[#allocation8 + $0x13ac] sm:$0xf]  ;;  %v9006_v50 = vld [vmem:[#allocation11 + $0xa8] sm:$0xff] }
 0x3e6   :  { %v9002_v42 = vld [vmem:[#allocation11 + $0x88] sm:$0xff] }
 0x3e7   :  { %5091 = vmatmul.bf16.vlgmr.msrb.gmra.mxu3 %v9557_v63  ;;  %5208 = vmatmul.bf16.vlgmr.msra.gmra.mxu0 %v9527_v15  ;;  %v7855_v15 = vor.u32 %v8894_v28, %v7852_v38 }
 0x3e8   :  { %5187 = vmatpush.bf16.msrb.mxu3 %v8203_v60  ;;  %v4254_v13 = vpop.f32.mrf.mxu3  ;;  %5217 = vmatpush.bf16.msra.mxu1 %v7887_v2  ;;  %v8172_v60 = vld [vmem:[#allocation8 + $0x13b8] sm:$0xf0] }
 0x3e9   :  { %5226 = vmatpush.bf16.msra.mxu2 %v8079_v53  ;;  %v8175_v2 = vor.u32 %v8974_v45, %v8172_v60  ;;  %v8970_v53 = vld [vmem:[#allocation8 + $0x138c] sm:$0xf]  ;;  %v8124_v13 = vld [vmem:[#allocation8 + $0x1358] sm:$0xf0]  ;;  %5520 = vmatpush.bf16.msrb.mxu0 %v8992_v20 }
 0x3ea   :  { %5182 = vmatmul.bf16.vlgmr.msrb.gmra.mxu2 %v9546_v43  ;;  %v8159_v7 = vor.u32 %v8970_v53, %v8156_v6  ;;  %v9001_v53 = vld [vmem:[#allocation11 + $0x80] sm:$0xff]  ;;  %v9016_v6 = vld [vmem:[#allocation11 + $0xf8] sm:$0xff] }
 0x3ec   :  { %5188 = vmatpush.bf16.msrb.mxu3 %v8187_v14  ;;  %5218 = vmatpush.bf16.msra.mxu1 %v7871_v16  ;;  %v8127_v14 = vor.u32 %v8962_v0, %v8124_v13  ;;  %v8958_v16 = vld [vmem:[#allocation8 + $0x132c] sm:$0xf]  ;;  %v9014_v13 = vld [vmem:[#allocation11 + $0xe8] sm:$0xff] }
 0x3ed   :  { %5227 = vmatpush.bf16.msra.mxu2 %v8063_v51  ;;  %v8108_v51 = vld [vmem:[#allocation8 + $0x1338] sm:$0xf0] }
 0x3ee   :  { %v8111_v17 = vor.u32 %v8958_v16, %v8108_v51 }
 0x3f0   :  { %5189 = vmatpush.bf16.msrb.mxu3 %v8171_v21  ;;  %5219 = vmatpush.bf16.msra.mxu1 %v7855_v15  ;;  %v8991_v21 = vld [vmem:[#allocation11 + $0x30] sm:$0xff] }
 0x3f1   :  { %5228 = vmatpush.bf16.msra.mxu2 %v8047_v27  ;;  %5521 = vmatpush.bf16.msrb.mxu0 %v8991_v21 }
 0x3f4   :  { %5190 = vmatpush.bf16.msrb.mxu3 %v8155_v32  ;;  %5220 = vmatpush.bf16.msra.mxu1 %v7839_v34  ;;  %v8999_v32 = vld [vmem:[#allocation11 + $0x70] sm:$0xff] }
 0x3f5   :  { %5229 = vmatpush.bf16.msra.mxu2 %v8031_v35  ;;  %5522 = vmatpush.bf16.msrb.mxu0 %v8990_v3  ;;  %v9011_v3 = vld [vmem:[#allocation11 + $0xd0] sm:$0xff] }
 0x3f7   :  { %5143 = vmatmul.bf16.vlgmr.msra.gmra.mxu3 %v9557_v63  ;;  %5221 = vmatmul.bf16.vlgmr.msra.gmra.mxu1 %v9536_v57  ;;  %v7967_v57 = vor.u32 %v8922_v54, %v7964_v30  ;;  %v4396_v54 = vperm.slane %v9575_v52, 0  ;;  %v9004_v30 = vld [vmem:[#allocation11 + $0x98] sm:$0xff] }
 0x3f8   :  { %5191 = vmatpush.bf16.msrb.mxu3 %v8139_v49  ;;  %5533 = vmatpush.bf16.msrb.mxu1 %v9000_v31  ;;  %v8997_v49 = vld [vmem:[#allocation11 + $0x60] sm:$0xff] }
 0x3f9   :  { %5230 = vmatpush.bf16.msra.mxu2 %v8015_v24  ;;  %5523 = vmatpush.bf16.msrb.mxu0 %v8989_v29  ;;  %v4398_v29 = vperm.slane %v9575_v52, 2 }
 0x3fc   :  { %5192 = vmatpush.bf16.msrb.mxu3 %v8123_v33  ;;  %5534 = vmatpush.bf16.msrb.mxu1 %v8999_v32  ;;  %v8995_v33 = vld [vmem:[#allocation11 + $0x50] sm:$0xff] }
 0x3fd   :  { %5231 = vmatpush.bf16.msra.mxu2 %v7999_v44  ;;  %5524 = vmatpush.bf16.msrb.mxu0 %v8988_v61  ;;  %v9007_v44 = vld [vmem:[#allocation11 + $0xb0] sm:$0xff] }
 0x400   :  { %5193 = vmatpush.bf16.msrb.mxu3 %v8107_v1  ;;  %5535 = vmatpush.bf16.msrb.mxu1 %v8998_v36  ;;  %v8993_v1 = vld [vmem:[#allocation11 + $0x40] sm:$0xff] }
 0x401   :  { %5232 = vmatpush.bf16.msra.mxu2 %v7983_v59  ;;  %v9005_v59 = vld [vmem:[#allocation11 + $0xa0] sm:$0xff] }
 0x404   :  { %5194 = vmatpush.bf16.msrb.mxu3 %v8091_v8  ;;  %5536 = vmatpush.bf16.msrb.mxu1 %v8997_v49 }
 0x405   :  { %5233 = vmatpush.bf16.msra.mxu2 %v7967_v57 }
 0x407   :  { %5195 = vmatmul.bf16.vlgmr.msrb.gmra.mxu3 %v9557_v63 }
 0x408   :  { %5239 = vmatpush.bf16.msra.mxu3 %v8207_v26  ;;  %5234 = vmatmul.bf16.vlgmr.msra.gmra.mxu2 %v9546_v43  ;;  %v8092_v43 = vld [vmem:[#allocation8 + $0x1318] sm:$0xf0] }
 0x409   :  { %v8095_v28 = vor.u32 %v8954_v48, %v8092_v43  ;;  %5537 = vmatpush.bf16.msrb.mxu1 %v8996_v40  ;;  %5546 = vmatpush.bf16.msrb.mxu2 %v9008_v41  ;;  %v9013_v48 = vld [vmem:[#allocation11 + $0xe0] sm:$0xff] }
 0x40c   :  { %5240 = vmatpush.bf16.msra.mxu3 %v8191_v58 }
 0x40d   :  { %5538 = vmatpush.bf16.msrb.mxu1 %v8995_v33  ;;  %5547 = vmatpush.bf16.msrb.mxu2 %v9007_v44 }
 0x410   :  { %5241 = vmatpush.bf16.msra.mxu3 %v8175_v2 }
 0x411   :  { %5539 = vmatpush.bf16.msrb.mxu1 %v8994_v18  ;;  %5548 = vmatpush.bf16.msrb.mxu2 %v9006_v50 }
 0x414   :  { %5242 = vmatpush.bf16.msra.mxu3 %v8159_v7 }
 0x415   :  { %5540 = vmatpush.bf16.msrb.mxu1 %v8993_v1  ;;  %5549 = vmatpush.bf16.msrb.mxu2 %v9005_v59 }
 0x418   :  { %5243 = vmatpush.bf16.msra.mxu3 %v8143_v12  ;;  %v9015_v12 = vld [vmem:[#allocation11 + $0xf0] sm:$0xff] }
 0x419   :  { %5550 = vmatpush.bf16.msrb.mxu2 %v9004_v30 }
 0x41c   :  { %5244 = vmatpush.bf16.msra.mxu3 %v8127_v14 }
 0x41d   :  { %5551 = vmatpush.bf16.msrb.mxu2 %v9003_v9 }
 0x420   :  { %5245 = vmatpush.bf16.msra.mxu3 %v8111_v17 }
 0x421   :  { %5552 = vmatpush.bf16.msrb.mxu2 %v9002_v42 }
 0x424   :  { %5246 = vmatpush.bf16.msra.mxu3 %v8095_v28  ;;  %v5053_v38 = vpop.f32.mrf.mxu0 }
 0x425   :  { %v5054_v8 = vadd.f32 %v5053_v38, %v4396_v54  ;;  %5553 = vmatpush.bf16.msrb.mxu2 %v9001_v53  ;;  %v9030_v54 = vld [vmem:[#allocation13] ss:$0 sm:$0xff] }
 0x427   :  { %5247 = vmatmul.bf16.vlgmr.msra.gmra.mxu3 %v9557_v63  ;;  %v8987_v63 = vld [vmem:[#allocation11 + $0x10] sm:$0xff] }
 0x428   :  { %5525 = vmatpush.bf16.msrb.mxu0 %v8987_v63  ;;  %5559 = vmatpush.bf16.msrb.mxu3 %v9016_v6  ;;  %v9009_v63 = vld [vmem:[#allocation11 + $0xc0] sm:$0xff] }
 0x42c   :  { %v5055_v19 = vpop.f32.mrf.mxu0  ;;  %5526 = vmatpush.bf16.msrb.mxu0 %v8986_v22  ;;  %5560 = vmatpush.bf16.msrb.mxu3 %v9015_v12 }
 0x42d   :  { %v9012_v19 = vld [vmem:[#allocation11 + $0xd8] sm:$0xff] }
 0x430   :  { %5527 = vmatpush.bf16.msrb.mxu0 %v8985_v5  ;;  %5561 = vmatpush.bf16.msrb.mxu3 %v9014_v13 }
 0x434   :  { %v5066_v15 = vpop.f32.mrf.mxu1  ;;  %v9567_v27 = vpop.f32.mrf.mxu0  ;;  %5562 = vmatpush.bf16.msrb.mxu3 %v9013_v48 }
 0x435   :  { %v5067_v26 = vadd.f32 %v5066_v15, %v5054_v8  ;;  %v5106_v14 = vadd.f32 %v9567_v27, %v4397_v37 }
 0x438   :  { %5563 = vmatpush.bf16.msrb.mxu3 %v9012_v19 }
 0x43c   :  { %v5068_v11 = vpop.f32.mrf.mxu1  ;;  %v5107_v55 = vpop.f32.mrf.mxu0  ;;  %5564 = vmatpush.bf16.msrb.mxu3 %v9011_v3 }
 0x43d   :  { %v9010_v55 = vld [vmem:[#allocation11 + $0xc8] sm:$0xff] }
 0x440   :  { %5565 = vmatpush.bf16.msrb.mxu3 %v9010_v55 }
 0x444   :  { %v9569_v34 = vpop.f32.mrf.mxu1  ;;  %5566 = vmatpush.bf16.msrb.mxu3 %v9009_v63 }
 0x445   :  { %v5119_v17 = vadd.f32 %v9569_v34, %v5106_v14 }
 0x446   :  { %v9571_v35 = vpop.f32.mrf.mxu0 }
 0x447   :  { %v5158_v11 = vadd.f32 %v9571_v35, %v4398_v29 }
 0x44a   :  { %v5079_v4 = vpop.f32.mrf.mxu2 }
 0x44b   :  { %v5080_v46 = vadd.f32 %v5079_v4, %v5067_v26 }
 0x44c   :  { %v5120_v24 = vpop.f32.mrf.mxu1 }
 0x44d   :  { %v4399_v24 = vperm.slane %v9575_v52, 3 }
 0x44e   :  { %v5159_v39 = vpop.f32.mrf.mxu0 }
 0x452   :  { %v5081_v10 = vpop.f32.mrf.mxu2 }
 0x454   :  { %v9573_v23 = vpop.f32.mrf.mxu1 }
 0x455   :  { %v5171_v61 = vadd.f32 %v9573_v23, %v5158_v11 }
 0x45a   :  { %v5131_v47 = vpop.f32.mrf.mxu2 }
 0x45b   :  { %v5132_v43 = vadd.f32 %v5131_v47, %v5119_v17 }
 0x45c   :  { %v5172_v25 = vpop.f32.mrf.mxu1 }
 0x462   :  { %v5133_v57 = vpop.f32.mrf.mxu2 }
 0x464   :  { %v5209_v56 = vpop.f32.mrf.mxu0 }
 0x465   :  { %v5210_v39 = vadd.f32 %v5209_v56, %v4399_v24 }
 0x46a   :  { %v5092_v58 = vpop.f32.mrf.mxu3 }
 0x46b   :  { %v5093_v45 = vadd.f32 %v5092_v58, %v5080_v46 }
 0x46c   :  { %v5211_v60 = vpop.f32.mrf.mxu0 }
 0x46d   :  { %v5252_v2 = vmax.f32 %v5093_v45, 0.0  ;;  %v5183_v7 = vpop.f32.mrf.mxu2 }
 0x46e   :  { %v5184_v31 = vadd.f32 %v5183_v7, %v5171_v61 }
 0x46f   :  { %v5256_v62 = vpack.c.bf16 %v5252_v2, %v5252_v2 }
 0x471   :  { %5528 = vmatmul.bf16.vlgmr.msrb.gmra.mxu0 %v5256_v62 }
 0x472   :  { %v5094_v0 = vpop.f32.mrf.mxu3 }
 0x474   :  { %v5222_v16 = vpop.f32.mrf.mxu1 }
 0x475   :  { %v5185_v51 = vpop.f32.mrf.mxu2  ;;  %v5223_v40 = vadd.f32 %v5222_v16, %v5210_v39 }
 0x47a   :  { %v5144_v28 = vpop.f32.mrf.mxu3 }
 0x47b   :  { %v5145_v38 = vadd.f32 %v5144_v28, %v5132_v43 }
 0x47c   :  { %v5224_v21 = vpop.f32.mrf.mxu1 }
 0x47d   :  { %v5253_v20 = vmax.f32 %v5145_v38, 0.0 }
 0x47f   :  { %v5257_v15 = vpack.c.bf16 %v5253_v20, %v5253_v20 }
 0x481   :  { %5541 = vmatmul.bf16.vlgmr.msrb.gmra.mxu1 %v5257_v15 }
 0x482   :  { %v5146_v27 = vpop.f32.mrf.mxu3 }
 0x48a   :  { %v5196_v32 = vpop.f32.mrf.mxu3 }
 0x48b   :  { %v5197_v34 = vadd.f32 %v5196_v32, %v5184_v31  ;;  %v5235_v22 = vpop.f32.mrf.mxu2 }
 0x48c   :  { %v5236_v35 = vadd.f32 %v5235_v22, %v5223_v40 }
 0x48d   :  { %v5254_v36 = vmax.f32 %v5197_v34, 0.0 }
 0x48f   :  { %v5258_v4 = vpack.c.bf16 %v5254_v36, %v5254_v36 }
 0x491   :  { %5554 = vmatmul.bf16.vlgmr.msrb.gmra.mxu2 %v5258_v4 }
 0x492   :  { %v5198_v5 = vpop.f32.mrf.mxu3 }
 0x493   :  { %v5237_v49 = vpop.f32.mrf.mxu2 }
 0x4aa   :  { %v5248_v41 = vpop.f32.mrf.mxu3 }
 0x4ab   :  { %v5249_v10 = vadd.f32 %v5248_v41, %v5236_v35 }
 0x4ad   :  { %v5255_v33 = vmax.f32 %v5249_v10, 0.0 }
 0x4af   :  { %v5259_v44 = vpack.c.bf16 %v5255_v33, %v5255_v33 }
 0x4b1   :  { %5567 = vmatmul.bf16.vlgmr.msrb.gmra.mxu3 %v5259_v44 }
 0x4b2   :  { %v5250_v23 = vpop.f32.mrf.mxu3 }
 0x4ee   :  { %v5529_v18 = vpop.f32.mrf.mxu0 }
 0x4ef   :  { %v5530_v30 = vadd.f32 %v9030_v54, %v5529_v18 }
 0x4f6   :  { %v5531_v50 = vpop.f32.mrf.mxu0 }
 0x4fe   :  { %v5542_v47 = vpop.f32.mrf.mxu1 }
 0x4ff   :  { %v5543_v9 = vadd.f32 %v5542_v47, %v5530_v30 }
 0x506   :  { %v5544_v1 = vpop.f32.mrf.mxu1 }
 0x514   :  { %v5555_v59 = vpop.f32.mrf.mxu2 }
 0x515   :  { %v5556_v8 = vadd.f32 %v5555_v59, %v5543_v9 }
 0x51c   :  { %v5557_v25 = vpop.f32.mrf.mxu2 }
 0x534   :  { %v5568_v52 = vpop.f32.mrf.mxu3 }
 0x535   :  { %v5569_v56 = vadd.f32 %v5568_v52, %v5556_v8 }
 0x537   :  { %v8336_v57 = vmul.f32 -1.442695, %v5569_v56 }
 0x539   :  { %9031 = vpow2.f32 %v8336_v57 }
 0x53c   :  { %v5570_v26 = vpop.f32.mrf.mxu3 }
 0x53f   :  { %v9032_v46 = vpop.eup %9031 }
 0x540   :  { %v5575_v42 = vadd.f32 1.0, %v9032_v46 }
 0x542   :  { %9033 = vrcp.f32 %v5575_v42  ;;  %v5587_v2 = vand.u32 2147483648, %v5575_v42  ;;  %v5585_v6 = vand.u32 2147483647, %v5575_v42  ;;  %vm5581_vm3 = vweird.f32 %v5575_v42 }
 0x544   :  { %v5588_v62 = vor.u32 1.1754944e-38, %v5587_v2  ;;  %vm5586_vm5 = vcmp.eq.f32.partialorder %v5585_v6, 8.507059e+37 }
 0x548   :  { %v9034_v58 = vpop.eup %9033 }
 0x549   :  { %v5577_v45 = vmul.f32 %v9034_v58, %v5575_v42  ;;  %vm5582_vm2 = vweird.f32 %v9034_v58 }
 0x54a   :  { %vm5583_vm4 = vmor %vm5581_vm3, %vm5582_vm2 }
 0x54b   :  { %v5578_v60 = vsub.f32 1.0, %v5577_v45 }
 0x54d   :  { %v5579_v53 = vmul.f32 %v9034_v58, %v5578_v60 }
 0x54f   :  { %v5580_v7 = vadd.f32 %v9034_v58, %v5579_v53 }
 0x551   :  { %v5584_v37 = vsel %vm5583_vm4, %v9034_v58, %v5580_v7 }
 0x552   :  { %v5589_v12 = vsel %vm5586_vm5, %v5588_v62, %v5584_v37 }
 0x553   :  { %5591 = vst [vmem:[#allocation14] sm:$0xff] %v5589_v12 }
 0x554   :  { %5602 = dma.vmem_to_hbm [thread:$0]  %s5598_s6, 128, %s5600_s14, [#allocation4]  }
 0x555   :  { %9235 = dma.done.wait [#allocation4], 128  }
 0x556   :  { %9236 = vsyncadd [#allocation4], 4294967168 }
 0x557   :  { %5607 = vsyncpa [#allocation3], 1 }
 0x558   :  { %5608 = vsyncpa [#allocation6], 1 }
 0x559   :  { %5609 = vsyncpa [#allocation9], 1 }
 0x55a   :  { %5610 = vsyncpa [#allocation12], 1 }
 0x55b   :  { %5611 = vsyncpa [#allocation4], 1 }

</bundles_post_ra>
